<compile_context>
chip_gen: v5e
topology: v5e:2x2
jax: 0.10.0
libtpu: 0.0.40
codegen_flags: <defaults>
</compile_context>

<pallas_src>
import numpy as np

import jax
import jax.numpy as jnp
from jax import lax
from jax.experimental import pallas as pl
from jax.experimental.pallas import tpu as pltpu


# --------------------------- static helpers ---------------------------------

def _round_up(n, m):
    return ((n + m - 1) // m) * m


def _conv_taps(KH, KW, ph, pw):
    # Output(h, w) = sum_{kh,kw} x[h + kh - ph, w + kw - pw] * w[kh, kw]
    return [(kh - ph, kw - pw) for kh in range(KH) for kw in range(KW)]


# ConvTranspose2d(k=4, stride=2, pad=1) phase split: output row oy = 2*h + ry
# draws from input rows h + dy with kernel row kh, where (dy, kh) are:
_DECONV_PHASE = {
    0: ((-1, 3), (0, 1)),   # ry == 0
    1: ((0, 2), (1, 0)),    # ry == 1
}


def _phase_taps(ry, rx):
    return [(dy, dx) for (dy, _) in _DECONV_PHASE[ry]
            for (dx, _) in _DECONV_PHASE[rx]]


def _mask_table(H, W, tap_lists):
    """Flat (H*W,) f32 validity masks for every distinct spatial shift."""
    idx, rows = {}, []
    hh, ww = np.meshgrid(np.arange(H), np.arange(W), indexing="ij")
    for taps in tap_lists:
        for dh, dw in taps:
            if (dh, dw) in idx:
                continue
            ok = ((hh + dh >= 0) & (hh + dh < H) &
                  (ww + dw >= 0) & (ww + dw < W))
            idx[(dh, dw)] = len(rows)
            rows.append(ok.reshape(-1).astype(np.float32))
    return idx, np.stack(rows, axis=0)


# --------------------------- fused kernel ------------------------------------

def _make_fused_kernel(H, W, has_x2, taps_1k, taps_k1, taps_33, mask_idx):
    phase_taps = {(ry, rx): _phase_taps(ry, rx)
                  for ry in (0, 1) for rx in (0, 1)}

    def kernel(*refs):
        if has_x2:
            (x1_ref, x2_ref, masks_ref, w1a, w1b, w2a, w2b,
             wbra, wbrb, wdec, o_ref) = refs
        else:
            (x1_ref, masks_ref, w1a, w1b, w2a, w2b,
             wbra, wbrb, wdec, o_ref) = refs

        def shift(a, dh, dw):
            # a: (C, H*W) row-major image; result[c, h*W+w] =
            # a[c, (h+dh)*W + (w+dw)] when (h+dh, w+dw) is in range, else 0.
            if dh == 0 and dw == 0:
                return a
            b = jnp.roll(a, -(dh * W + dw), axis=1)
            return b * masks_ref[pl.ds(mask_idx[(dh, dw)], 1), :]

        def conv(a, w_mat, taps):
            # im2col: stack the shifted copies along the contraction axis
            # (n_taps * C_pad rows) and do one lane-dense (C_out, H*W) matmul.
            patches = jnp.concatenate([shift(a, dh, dw) for dh, dw in taps],
                                      axis=0)
            return lax.dot_general(w_mat, patches, (((1,), (0,)), ((), ())),
                                   preferred_element_type=jnp.float32)

        x = x1_ref[0]                                      # (Cin_p, H*W)

        # GCM: two separable large-kernel branches, summed.
        b1 = conv(conv(x, w1a[...], taps_1k), w1b[...], taps_k1)
        b2 = conv(conv(x, w2a[...], taps_k1), w2b[...], taps_1k)
        g = b1 + b2

        # BR (weights shared across uses): z + conv3x3(relu(conv3x3(z)))
        def br(z):
            h = jnp.maximum(conv(z, wbra[...], taps_33), 0.0)
            return z + conv(h, wbrb[...], taps_33)

        y = br(g)
        if has_x2:
            y = br(y + x2_ref[0])

        # Phase-split ConvTranspose2d: 4 tiny convs, no zero-dilated buffer.
        for ry in (0, 1):
            for rx in (0, 1):
                o_ref[0, 2 * ry + rx] = conv(y, wdec[2 * ry + rx],
                                             phase_taps[(ry, rx)])

    return kernel


# --------------------------- weight packing ----------------------------------

def _pack_conv_weight(w_hwio, cin_p, cout_p):
    # (KH, KW, Cin, Cout) -> (Cout_p, KH*KW*Cin_p); tap order == _conv_taps.
    KH, KW, Cin, Cout = w_hwio.shape
    w = jnp.pad(w_hwio, ((0, 0), (0, 0), (0, cin_p - Cin), (0, cout_p - Cout)))
    return jnp.transpose(w, (3, 0, 1, 2)).reshape(cout_p, KH * KW * cin_p)


def _pack_deconv_weight(w_t, cin_p, cout_p):
    # w_t: PyTorch ConvTranspose2d weight, shape (Cin, Cout, 4, 4).
    Cin, Cout, _, _ = w_t.shape
    w = jnp.pad(w_t, ((0, cin_p - Cin), (0, cout_p - Cout), (0, 0), (0, 0)))
    phases = []
    for ry in (0, 1):
        for rx in (0, 1):
            taps = [jnp.transpose(w[:, :, kh, kw])           # (Cout_p, Cin_p)
                    for (_, kh) in _DECONV_PHASE[ry]
                    for (_, kw) in _DECONV_PHASE[rx]]
            phases.append(jnp.concatenate(taps, axis=1))     # (Cout_p, 4*Cin_p)
    return jnp.stack(phases, axis=0)                         # (4, Cout_p, 4*Cin_p)


# --------------------------- forward (Pallas path) ----------------------------

def gcn_br_br_deconv(params, x1_nchw, x2_nchw=None, k=15):
    N, Cin, H, W = x1_nchw.shape
    num_class = params["gcm_c1a"].shape[-1]
    HW = H * W
    pad = (k - 1) // 2
    cin_p = _round_up(max(Cin, 8), 8)
    c_p = _round_up(max(num_class, 8), 8)
    has_x2 = x2_nchw is not None

    taps_1k = _conv_taps(1, k, 0, pad)
    taps_k1 = _conv_taps(k, 1, pad, 0)
    taps_33 = _conv_taps(3, 3, 1, 1)
    all_phase = [_phase_taps(ry, rx) for ry in (0, 1) for rx in (0, 1)]
    mask_idx, mask_rows = _mask_table(
        H, W, [taps_1k, taps_k1, taps_33] + all_phase)
    masks = jnp.asarray(mask_rows)                          # (n_masks, H*W)

    def _full_spec(arr):
        zeros = (0,) * arr.ndim
        return pl.BlockSpec(arr.shape, lambda n: zeros)

    # Channel-pad activations to a sublane multiple; spatial stays flattened.
    x1 = jnp.pad(x1_nchw.reshape(N, Cin, HW),
                 ((0, 0), (0, cin_p - Cin), (0, 0)))
    args = [x1]
    in_specs = [pl.BlockSpec((1, cin_p, HW), lambda n: (n, 0, 0))]
    if has_x2:
        x2 = jnp.pad(x2_nchw.reshape(N, num_class, HW),
                     ((0, 0), (0, c_p - num_class), (0, 0)))
        args.append(x2)
        in_specs.append(pl.BlockSpec((1, c_p, HW), lambda n: (n, 0, 0)))

    fixed = [
        masks,
        _pack_conv_weight(params["gcm_c1a"], cin_p, c_p),
        _pack_conv_weight(params["gcm_c1b"], c_p, c_p),
        _pack_conv_weight(params["gcm_c2a"], cin_p, c_p),
        _pack_conv_weight(params["gcm_c2b"], c_p, c_p),
        _pack_conv_weight(params["br_a"], c_p, c_p),
        _pack_conv_weight(params["br_b"], c_p, c_p),
        _pack_deconv_weight(params["deconv_t"], c_p, c_p),
    ]
    for arr in fixed:
        args.append(arr)
        in_specs.append(_full_spec(arr))

    kernel = _make_fused_kernel(H, W, has_x2,
                                taps_1k, taps_k1, taps_33, mask_idx)

    out = pl.pallas_call(
        kernel,
        out_shape=jax.ShapeDtypeStruct((N, 4, c_p, HW), jnp.float32),
        grid=(N,),
        in_specs=in_specs,
        out_specs=pl.BlockSpec((1, 4, c_p, HW), lambda n: (n, 0, 0, 0)),
        compiler_params=pltpu.CompilerParams(
            dimension_semantics=("parallel",)),
    )(*args)

    # Sub-pixel interleave of the 4 deconv phases (pure layout, outside the
    # kernel): out[n, ry, rx, c, h, w] -> final[n, c, 2h+ry, 2w+rx].
    out = out.reshape(N, 2, 2, c_p, H, W)
    out = jnp.transpose(out, (0, 3, 4, 1, 5, 2)).reshape(N, c_p, 2 * H, 2 * W)
    return out[:, :num_class]


# --------------------------- parameters --------------------------------------

def init_params(key, in_channels, num_class, k=15):
    ks = jax.random.split(key, 7)

    def w(kk, shape):
        return jax.random.normal(kk, shape, jnp.float32) * 0.05

    p = {
        # GCM branch 1: (1,k) then (k,1)   -- HWIO layout
        "gcm_c1a": w(ks[0], (1, k, in_channels, num_class)),
        "gcm_c1b": w(ks[1], (k, 1, num_class, num_class)),
        # GCM branch 2: (k,1) then (1,k)
        "gcm_c2a": w(ks[2], (k, 1, in_channels, num_class)),
        "gcm_c2b": w(ks[3], (1, k, num_class, num_class)),
        # BR (shared module, used twice): two 3x3 convs
        "br_a": w(ks[4], (3, 3, num_class, num_class)),
        "br_b": w(ks[5], (3, 3, num_class, num_class)),
        # ConvTranspose2d weight in PyTorch layout (Cin, Cout, 4, 4)
        "deconv_t": w(ks[6], (num_class, num_class, 4, 4)),
    }
    # Forward-conv-equivalent weight (HWIO) for the reference implementation.
    p["deconv_conv"] = jnp.transpose(p["deconv_t"][:, :, ::-1, ::-1],
                                     (2, 3, 0, 1))
    return p


# --------------------------- pure-JAX reference -------------------------------

def _conv_ref(x, w, pad_h, pad_w, lhs_dilation=1):
    return lax.conv_general_dilated(
        x, w, window_strides=(1, 1),
        padding=[(pad_h, pad_h), (pad_w, pad_w)],
        lhs_dilation=(lhs_dilation, lhs_dilation),
        dimension_numbers=("NHWC", "HWIO", "NHWC"))


def gcn_ref(params, x1_nchw, x2_nchw=None, k=15):
    pad = (k - 1) // 2
    x = jnp.transpose(x1_nchw, (0, 2, 3, 1))
    a = _conv_ref(_conv_ref(x, params["gcm_c1a"], 0, pad),
                  params["gcm_c1b"], pad, 0)
    b = _conv_ref(_conv_ref(x, params["gcm_c2a"], pad, 0),
                  params["gcm_c2b"], 0, pad)
    g = a + b

    def br(z):
        h = jnp.maximum(_conv_ref(z, params["br_a"], 1, 1), 0.0)
        return z + _conv_ref(h, params["br_b"], 1, 1)

    y = br(g)
    if x2_nchw is not None:
        y = br(y + jnp.transpose(x2_nchw, (0, 2, 3, 1)))
    out = _conv_ref(y, params["deconv_conv"], 2, 2, lhs_dilation=2)
    return jnp.transpose(out, (0, 3, 1, 2))


# --------------------------------- main ---------------------------------------

if __name__ == "__main__":
    key = jax.random.PRNGKey(0)
    k_x1, k_x2, k_p = jax.random.split(key, 3)

    in_channels, num_class, k = 4, 4, 15
    N, H, W = 2, 16, 16

    x1 = jax.random.normal(k_x1, (N, in_channels, H, W), jnp.float32)
    x2 = jax.random.normal(k_x2, (N, num_class, H, W), jnp.float32)
    params = init_params(k_p, in_channels, num_class, k)

    fwd1 = jax.jit(lambda p, a: gcn_br_br_deconv(p, a, None, k))
    fwd2 = jax.jit(lambda p, a, b: gcn_br_br_deconv(p, a, b, k))

    out1 = jax.block_until_ready(fwd1(params, x1))
    out2 = jax.block_until_ready(fwd2(params, x1, x2))

    assert out1.shape == (N, num_class, 2 * H, 2 * W), out1.shape
    assert out2.shape == (N, num_class, 2 * H, 2 * W), out2.shape

    ref1 = gcn_ref(params, x1, None, k)
    ref2 = gcn_ref(params, x1, x2, k)
    assert jnp.allclose(out1, ref1, atol=1e-4, rtol=1e-4)
    assert jnp.allclose(out2, ref2, atol=1e-4, rtol=1e-4)

    print("KERNEL_OK")
</pallas_src>

<mosaic_0001>
module attributes {stable_mosaic.version = 11 : i64} {
  func.func @kernel(%arg0: i32, %arg1: memref<1x8x256xf32, #tpu.memory_space<vmem>>, %arg2: memref<33x256xf32, #tpu.memory_space<vmem>>, %arg3: memref<8x120xf32, #tpu.memory_space<vmem>>, %arg4: memref<8x120xf32, #tpu.memory_space<vmem>>, %arg5: memref<8x120xf32, #tpu.memory_space<vmem>>, %arg6: memref<8x120xf32, #tpu.memory_space<vmem>>, %arg7: memref<8x72xf32, #tpu.memory_space<vmem>>, %arg8: memref<8x72xf32, #tpu.memory_space<vmem>>, %arg9: memref<4x8x32xf32, #tpu.memory_space<vmem>>, %arg10: memref<1x4x8x256xf32, #tpu.memory_space<vmem>>) attributes {dimension_semantics = [#tpu.dimension_semantics<parallel>], iteration_bounds = array<i64: 2>, scalar_prefetch = 0 : i64, scratch_operands = 0 : i64, tpu.core_type = #tpu.core_type<tc>, window_params = [{transform_indices = @transform_0, window_bounds = array<i64: 1, 8, 256>}, {pipeline_mode = #tpu.pipeline_mode<synchronous>, transform_indices = @transform_1, window_bounds = array<i64: 33, 256>}, {pipeline_mode = #tpu.pipeline_mode<synchronous>, transform_indices = @transform_2, window_bounds = array<i64: 8, 120>}, {pipeline_mode = #tpu.pipeline_mode<synchronous>, transform_indices = @transform_3, window_bounds = array<i64: 8, 120>}, {pipeline_mode = #tpu.pipeline_mode<synchronous>, transform_indices = @transform_4, window_bounds = array<i64: 8, 120>}, {pipeline_mode = #tpu.pipeline_mode<synchronous>, transform_indices = @transform_5, window_bounds = array<i64: 8, 120>}, {pipeline_mode = #tpu.pipeline_mode<synchronous>, transform_indices = @transform_6, window_bounds = array<i64: 8, 72>}, {pipeline_mode = #tpu.pipeline_mode<synchronous>, transform_indices = @transform_7, window_bounds = array<i64: 8, 72>}, {pipeline_mode = #tpu.pipeline_mode<synchronous>, transform_indices = @transform_8, window_bounds = array<i64: 4, 8, 32>}, {transform_indices = @transform_9, window_bounds = array<i64: 1, 4, 8, 256>}]} {
    %c0 = arith.constant 0 : index
    %c0_0 = arith.constant 0 : index
    %c0_1 = arith.constant 0 : index
    %0 = vector.load %arg1[%c0, %c0_0, %c0_1] : memref<1x8x256xf32, #tpu.memory_space<vmem>>, vector<1x8x256xf32>
    %1 = vector.shape_cast %0 : vector<1x8x256xf32> to vector<8x256xf32>
    %c0_2 = arith.constant 0 : index
    %c0_3 = arith.constant 0 : index
    %2 = vector.load %arg3[%c0_2, %c0_3] : memref<8x120xf32, #tpu.memory_space<vmem>>, vector<8x120xf32>
    %3 = vector.extract_strided_slice %1 {offsets = [0, 249], sizes = [8, 7], strides = [1, 1]} : vector<8x256xf32> to vector<8x7xf32>
    %4 = vector.extract_strided_slice %1 {offsets = [0, 0], sizes = [8, 249], strides = [1, 1]} : vector<8x256xf32> to vector<8x249xf32>
    %5 = tpu.concatenate %3, %4 in 1 : vector<8x7xf32>, vector<8x249xf32> -> vector<8x256xf32>
    %c0_4 = arith.constant 0 : index
    %c0_5 = arith.constant 0 : index
    %6 = vector.load %arg2[%c0_4, %c0_5] : memref<33x256xf32, #tpu.memory_space<vmem>>, vector<1x256xf32>
    %7 = vector.broadcast %6 : vector<1x256xf32> to vector<8x256xf32>
    %8 = arith.mulf %5, %7 : vector<8x256xf32>
    %9 = vector.extract_strided_slice %1 {offsets = [0, 250], sizes = [8, 6], strides = [1, 1]} : vector<8x256xf32> to vector<8x6xf32>
    %10 = vector.extract_strided_slice %1 {offsets = [0, 0], sizes = [8, 250], strides = [1, 1]} : vector<8x256xf32> to vector<8x250xf32>
    %11 = tpu.concatenate %9, %10 in 1 : vector<8x6xf32>, vector<8x250xf32> -> vector<8x256xf32>
    %c1 = arith.constant 1 : index
    %c0_6 = arith.constant 0 : index
    %12 = vector.load %arg2[%c1, %c0_6] : memref<33x256xf32, #tpu.memory_space<vmem>>, vector<1x256xf32>
    %13 = vector.broadcast %12 : vector<1x256xf32> to vector<8x256xf32>
    %14 = arith.mulf %11, %13 : vector<8x256xf32>
    %15 = vector.extract_strided_slice %1 {offsets = [0, 251], sizes = [8, 5], strides = [1, 1]} : vector<8x256xf32> to vector<8x5xf32>
    %16 = vector.extract_strided_slice %1 {offsets = [0, 0], sizes = [8, 251], strides = [1, 1]} : vector<8x256xf32> to vector<8x251xf32>
    %17 = tpu.concatenate %15, %16 in 1 : vector<8x5xf32>, vector<8x251xf32> -> vector<8x256xf32>
    %c2 = arith.constant 2 : index
    %c0_7 = arith.constant 0 : index
    %18 = vector.load %arg2[%c2, %c0_7] : memref<33x256xf32, #tpu.memory_space<vmem>>, vector<1x256xf32>
    %19 = vector.broadcast %18 : vector<1x256xf32> to vector<8x256xf32>
    %20 = arith.mulf %17, %19 : vector<8x256xf32>
    %21 = vector.extract_strided_slice %1 {offsets = [0, 252], sizes = [8, 4], strides = [1, 1]} : vector<8x256xf32> to vector<8x4xf32>
    %22 = vector.extract_strided_slice %1 {offsets = [0, 0], sizes = [8, 252], strides = [1, 1]} : vector<8x256xf32> to vector<8x252xf32>
    %23 = tpu.concatenate %21, %22 in 1 : vector<8x4xf32>, vector<8x252xf32> -> vector<8x256xf32>
    %c3 = arith.constant 3 : index
    %c0_8 = arith.constant 0 : index
    %24 = vector.load %arg2[%c3, %c0_8] : memref<33x256xf32, #tpu.memory_space<vmem>>, vector<1x256xf32>
    %25 = vector.broadcast %24 : vector<1x256xf32> to vector<8x256xf32>
    %26 = arith.mulf %23, %25 : vector<8x256xf32>
    %27 = vector.extract_strided_slice %1 {offsets = [0, 253], sizes = [8, 3], strides = [1, 1]} : vector<8x256xf32> to vector<8x3xf32>
    %28 = vector.extract_strided_slice %1 {offsets = [0, 0], sizes = [8, 253], strides = [1, 1]} : vector<8x256xf32> to vector<8x253xf32>
    %29 = tpu.concatenate %27, %28 in 1 : vector<8x3xf32>, vector<8x253xf32> -> vector<8x256xf32>
    %c4 = arith.constant 4 : index
    %c0_9 = arith.constant 0 : index
    %30 = vector.load %arg2[%c4, %c0_9] : memref<33x256xf32, #tpu.memory_space<vmem>>, vector<1x256xf32>
    %31 = vector.broadcast %30 : vector<1x256xf32> to vector<8x256xf32>
    %32 = arith.mulf %29, %31 : vector<8x256xf32>
    %33 = vector.extract_strided_slice %1 {offsets = [0, 254], sizes = [8, 2], strides = [1, 1]} : vector<8x256xf32> to vector<8x2xf32>
    %34 = vector.extract_strided_slice %1 {offsets = [0, 0], sizes = [8, 254], strides = [1, 1]} : vector<8x256xf32> to vector<8x254xf32>
    %35 = tpu.concatenate %33, %34 in 1 : vector<8x2xf32>, vector<8x254xf32> -> vector<8x256xf32>
    %c5 = arith.constant 5 : index
    %c0_10 = arith.constant 0 : index
    %36 = vector.load %arg2[%c5, %c0_10] : memref<33x256xf32, #tpu.memory_space<vmem>>, vector<1x256xf32>
    %37 = vector.broadcast %36 : vector<1x256xf32> to vector<8x256xf32>
    %38 = arith.mulf %35, %37 : vector<8x256xf32>
    %39 = vector.extract_strided_slice %1 {offsets = [0, 255], sizes = [8, 1], strides = [1, 1]} : vector<8x256xf32> to vector<8x1xf32>
    %40 = vector.extract_strided_slice %1 {offsets = [0, 0], sizes = [8, 255], strides = [1, 1]} : vector<8x256xf32> to vector<8x255xf32>
    %41 = tpu.concatenate %39, %40 in 1 : vector<8x1xf32>, vector<8x255xf32> -> vector<8x256xf32>
    %c6 = arith.constant 6 : index
    %c0_11 = arith.constant 0 : index
    %42 = vector.load %arg2[%c6, %c0_11] : memref<33x256xf32, #tpu.memory_space<vmem>>, vector<1x256xf32>
    %43 = vector.broadcast %42 : vector<1x256xf32> to vector<8x256xf32>
    %44 = arith.mulf %41, %43 : vector<8x256xf32>
    %45 = vector.extract_strided_slice %1 {offsets = [0, 1], sizes = [8, 255], strides = [1, 1]} : vector<8x256xf32> to vector<8x255xf32>
    %46 = vector.extract_strided_slice %1 {offsets = [0, 0], sizes = [8, 1], strides = [1, 1]} : vector<8x256xf32> to vector<8x1xf32>
    %47 = tpu.concatenate %45, %46 in 1 : vector<8x255xf32>, vector<8x1xf32> -> vector<8x256xf32>
    %c8 = arith.constant 8 : index
    %c0_12 = arith.constant 0 : index
    %48 = vector.load %arg2[%c8, %c0_12] : memref<33x256xf32, #tpu.memory_space<vmem>>, vector<1x256xf32>
    %49 = vector.broadcast %48 : vector<1x256xf32> to vector<8x256xf32>
    %50 = arith.mulf %47, %49 : vector<8x256xf32>
    %51 = vector.extract_strided_slice %1 {offsets = [0, 2], sizes = [8, 254], strides = [1, 1]} : vector<8x256xf32> to vector<8x254xf32>
    %52 = vector.extract_strided_slice %1 {offsets = [0, 0], sizes = [8, 2], strides = [1, 1]} : vector<8x256xf32> to vector<8x2xf32>
    %53 = tpu.concatenate %51, %52 in 1 : vector<8x254xf32>, vector<8x2xf32> -> vector<8x256xf32>
    %c9 = arith.constant 9 : index
    %c0_13 = arith.constant 0 : index
    %54 = vector.load %arg2[%c9, %c0_13] : memref<33x256xf32, #tpu.memory_space<vmem>>, vector<1x256xf32>
    %55 = vector.broadcast %54 : vector<1x256xf32> to vector<8x256xf32>
    %56 = arith.mulf %53, %55 : vector<8x256xf32>
    %57 = vector.extract_strided_slice %1 {offsets = [0, 3], sizes = [8, 253], strides = [1, 1]} : vector<8x256xf32> to vector<8x253xf32>
    %58 = vector.extract_strided_slice %1 {offsets = [0, 0], sizes = [8, 3], strides = [1, 1]} : vector<8x256xf32> to vector<8x3xf32>
    %59 = tpu.concatenate %57, %58 in 1 : vector<8x253xf32>, vector<8x3xf32> -> vector<8x256xf32>
    %c10 = arith.constant 10 : index
    %c0_14 = arith.constant 0 : index
    %60 = vector.load %arg2[%c10, %c0_14] : memref<33x256xf32, #tpu.memory_space<vmem>>, vector<1x256xf32>
    %61 = vector.broadcast %60 : vector<1x256xf32> to vector<8x256xf32>
    %62 = arith.mulf %59, %61 : vector<8x256xf32>
    %63 = vector.extract_strided_slice %1 {offsets = [0, 4], sizes = [8, 252], strides = [1, 1]} : vector<8x256xf32> to vector<8x252xf32>
    %64 = vector.extract_strided_slice %1 {offsets = [0, 0], sizes = [8, 4], strides = [1, 1]} : vector<8x256xf32> to vector<8x4xf32>
    %65 = tpu.concatenate %63, %64 in 1 : vector<8x252xf32>, vector<8x4xf32> -> vector<8x256xf32>
    %c11 = arith.constant 11 : index
    %c0_15 = arith.constant 0 : index
    %66 = vector.load %arg2[%c11, %c0_15] : memref<33x256xf32, #tpu.memory_space<vmem>>, vector<1x256xf32>
    %67 = vector.broadcast %66 : vector<1x256xf32> to vector<8x256xf32>
    %68 = arith.mulf %65, %67 : vector<8x256xf32>
    %69 = vector.extract_strided_slice %1 {offsets = [0, 5], sizes = [8, 251], strides = [1, 1]} : vector<8x256xf32> to vector<8x251xf32>
    %70 = vector.extract_strided_slice %1 {offsets = [0, 0], sizes = [8, 5], strides = [1, 1]} : vector<8x256xf32> to vector<8x5xf32>
    %71 = tpu.concatenate %69, %70 in 1 : vector<8x251xf32>, vector<8x5xf32> -> vector<8x256xf32>
    %c12 = arith.constant 12 : index
    %c0_16 = arith.constant 0 : index
    %72 = vector.load %arg2[%c12, %c0_16] : memref<33x256xf32, #tpu.memory_space<vmem>>, vector<1x256xf32>
    %73 = vector.broadcast %72 : vector<1x256xf32> to vector<8x256xf32>
    %74 = arith.mulf %71, %73 : vector<8x256xf32>
    %75 = vector.extract_strided_slice %1 {offsets = [0, 6], sizes = [8, 250], strides = [1, 1]} : vector<8x256xf32> to vector<8x250xf32>
    %76 = vector.extract_strided_slice %1 {offsets = [0, 0], sizes = [8, 6], strides = [1, 1]} : vector<8x256xf32> to vector<8x6xf32>
    %77 = tpu.concatenate %75, %76 in 1 : vector<8x250xf32>, vector<8x6xf32> -> vector<8x256xf32>
    %c13 = arith.constant 13 : index
    %c0_17 = arith.constant 0 : index
    %78 = vector.load %arg2[%c13, %c0_17] : memref<33x256xf32, #tpu.memory_space<vmem>>, vector<1x256xf32>
    %79 = vector.broadcast %78 : vector<1x256xf32> to vector<8x256xf32>
    %80 = arith.mulf %77, %79 : vector<8x256xf32>
    %81 = vector.extract_strided_slice %1 {offsets = [0, 7], sizes = [8, 249], strides = [1, 1]} : vector<8x256xf32> to vector<8x249xf32>
    %82 = vector.extract_strided_slice %1 {offsets = [0, 0], sizes = [8, 7], strides = [1, 1]} : vector<8x256xf32> to vector<8x7xf32>
    %83 = tpu.concatenate %81, %82 in 1 : vector<8x249xf32>, vector<8x7xf32> -> vector<8x256xf32>
    %c14 = arith.constant 14 : index
    %c0_18 = arith.constant 0 : index
    %84 = vector.load %arg2[%c14, %c0_18] : memref<33x256xf32, #tpu.memory_space<vmem>>, vector<1x256xf32>
    %85 = vector.broadcast %84 : vector<1x256xf32> to vector<8x256xf32>
    %86 = arith.mulf %83, %85 : vector<8x256xf32>
    %87 = tpu.concatenate %8, %14, %20, %26, %32, %38, %44, %1, %50, %56, %62, %68, %74, %80, %86 in 0 : vector<8x256xf32>, vector<8x256xf32>, vector<8x256xf32>, vector<8x256xf32>, vector<8x256xf32>, vector<8x256xf32>, vector<8x256xf32>, vector<8x256xf32>, vector<8x256xf32>, vector<8x256xf32>, vector<8x256xf32>, vector<8x256xf32>, vector<8x256xf32>, vector<8x256xf32>, vector<8x256xf32> -> vector<120x256xf32>
    %cst = arith.constant dense<0.000000e+00> : vector<8x256xf32>
    %88 = tpu.matmul %2, %87, %cst {dimension_numbers = #tpu.dot_dimension_numbers<[1], [0], [0], [1], [0, 0, 1, 1], [], []>} : vector<8x120xf32>, vector<120x256xf32>, vector<8x256xf32> -> vector<8x256xf32>
    %c0_19 = arith.constant 0 : index
    %c0_20 = arith.constant 0 : index
    %89 = vector.load %arg4[%c0_19, %c0_20] : memref<8x120xf32, #tpu.memory_space<vmem>>, vector<8x120xf32>
    %90 = vector.extract_strided_slice %88 {offsets = [0, 144], sizes = [8, 112], strides = [1, 1]} : vector<8x256xf32> to vector<8x112xf32>
    %91 = vector.extract_strided_slice %88 {offsets = [0, 0], sizes = [8, 144], strides = [1, 1]} : vector<8x256xf32> to vector<8x144xf32>
    %92 = tpu.concatenate %90, %91 in 1 : vector<8x112xf32>, vector<8x144xf32> -> vector<8x256xf32>
    %c15 = arith.constant 15 : index
    %c0_21 = arith.constant 0 : index
    %93 = vector.load %arg2[%c15, %c0_21] : memref<33x256xf32, #tpu.memory_space<vmem>>, vector<1x256xf32>
    %94 = vector.broadcast %93 : vector<1x256xf32> to vector<8x256xf32>
    %95 = arith.mulf %92, %94 : vector<8x256xf32>
    %96 = vector.extract_strided_slice %88 {offsets = [0, 160], sizes = [8, 96], strides = [1, 1]} : vector<8x256xf32> to vector<8x96xf32>
    %97 = vector.extract_strided_slice %88 {offsets = [0, 0], sizes = [8, 160], strides = [1, 1]} : vector<8x256xf32> to vector<8x160xf32>
    %98 = tpu.concatenate %96, %97 in 1 : vector<8x96xf32>, vector<8x160xf32> -> vector<8x256xf32>
    %c16 = arith.constant 16 : index
    %c0_22 = arith.constant 0 : index
    %99 = vector.load %arg2[%c16, %c0_22] : memref<33x256xf32, #tpu.memory_space<vmem>>, vector<1x256xf32>
    %100 = vector.broadcast %99 : vector<1x256xf32> to vector<8x256xf32>
    %101 = arith.mulf %98, %100 : vector<8x256xf32>
    %102 = vector.extract_strided_slice %88 {offsets = [0, 176], sizes = [8, 80], strides = [1, 1]} : vector<8x256xf32> to vector<8x80xf32>
    %103 = vector.extract_strided_slice %88 {offsets = [0, 0], sizes = [8, 176], strides = [1, 1]} : vector<8x256xf32> to vector<8x176xf32>
    %104 = tpu.concatenate %102, %103 in 1 : vector<8x80xf32>, vector<8x176xf32> -> vector<8x256xf32>
    %c17 = arith.constant 17 : index
    %c0_23 = arith.constant 0 : index
    %105 = vector.load %arg2[%c17, %c0_23] : memref<33x256xf32, #tpu.memory_space<vmem>>, vector<1x256xf32>
    %106 = vector.broadcast %105 : vector<1x256xf32> to vector<8x256xf32>
    %107 = arith.mulf %104, %106 : vector<8x256xf32>
    %108 = vector.extract_strided_slice %88 {offsets = [0, 192], sizes = [8, 64], strides = [1, 1]} : vector<8x256xf32> to vector<8x64xf32>
    %109 = vector.extract_strided_slice %88 {offsets = [0, 0], sizes = [8, 192], strides = [1, 1]} : vector<8x256xf32> to vector<8x192xf32>
    %110 = tpu.concatenate %108, %109 in 1 : vector<8x64xf32>, vector<8x192xf32> -> vector<8x256xf32>
    %c18 = arith.constant 18 : index
    %c0_24 = arith.constant 0 : index
    %111 = vector.load %arg2[%c18, %c0_24] : memref<33x256xf32, #tpu.memory_space<vmem>>, vector<1x256xf32>
    %112 = vector.broadcast %111 : vector<1x256xf32> to vector<8x256xf32>
    %113 = arith.mulf %110, %112 : vector<8x256xf32>
    %114 = vector.extract_strided_slice %88 {offsets = [0, 208], sizes = [8, 48], strides = [1, 1]} : vector<8x256xf32> to vector<8x48xf32>
    %115 = vector.extract_strided_slice %88 {offsets = [0, 0], sizes = [8, 208], strides = [1, 1]} : vector<8x256xf32> to vector<8x208xf32>
    %116 = tpu.concatenate %114, %115 in 1 : vector<8x48xf32>, vector<8x208xf32> -> vector<8x256xf32>
    %c19 = arith.constant 19 : index
    %c0_25 = arith.constant 0 : index
    %117 = vector.load %arg2[%c19, %c0_25] : memref<33x256xf32, #tpu.memory_space<vmem>>, vector<1x256xf32>
    %118 = vector.broadcast %117 : vector<1x256xf32> to vector<8x256xf32>
    %119 = arith.mulf %116, %118 : vector<8x256xf32>
    %120 = vector.extract_strided_slice %88 {offsets = [0, 224], sizes = [8, 32], strides = [1, 1]} : vector<8x256xf32> to vector<8x32xf32>
    %121 = vector.extract_strided_slice %88 {offsets = [0, 0], sizes = [8, 224], strides = [1, 1]} : vector<8x256xf32> to vector<8x224xf32>
    %122 = tpu.concatenate %120, %121 in 1 : vector<8x32xf32>, vector<8x224xf32> -> vector<8x256xf32>
    %c20 = arith.constant 20 : index
    %c0_26 = arith.constant 0 : index
    %123 = vector.load %arg2[%c20, %c0_26] : memref<33x256xf32, #tpu.memory_space<vmem>>, vector<1x256xf32>
    %124 = vector.broadcast %123 : vector<1x256xf32> to vector<8x256xf32>
    %125 = arith.mulf %122, %124 : vector<8x256xf32>
    %126 = vector.extract_strided_slice %88 {offsets = [0, 240], sizes = [8, 16], strides = [1, 1]} : vector<8x256xf32> to vector<8x16xf32>
    %127 = vector.extract_strided_slice %88 {offsets = [0, 0], sizes = [8, 240], strides = [1, 1]} : vector<8x256xf32> to vector<8x240xf32>
    %128 = tpu.concatenate %126, %127 in 1 : vector<8x16xf32>, vector<8x240xf32> -> vector<8x256xf32>
    %c21 = arith.constant 21 : index
    %c0_27 = arith.constant 0 : index
    %129 = vector.load %arg2[%c21, %c0_27] : memref<33x256xf32, #tpu.memory_space<vmem>>, vector<1x256xf32>
    %130 = vector.broadcast %129 : vector<1x256xf32> to vector<8x256xf32>
    %131 = arith.mulf %128, %130 : vector<8x256xf32>
    %132 = vector.extract_strided_slice %88 {offsets = [0, 16], sizes = [8, 240], strides = [1, 1]} : vector<8x256xf32> to vector<8x240xf32>
    %133 = vector.extract_strided_slice %88 {offsets = [0, 0], sizes = [8, 16], strides = [1, 1]} : vector<8x256xf32> to vector<8x16xf32>
    %134 = tpu.concatenate %132, %133 in 1 : vector<8x240xf32>, vector<8x16xf32> -> vector<8x256xf32>
    %c22 = arith.constant 22 : index
    %c0_28 = arith.constant 0 : index
    %135 = vector.load %arg2[%c22, %c0_28] : memref<33x256xf32, #tpu.memory_space<vmem>>, vector<1x256xf32>
    %136 = vector.broadcast %135 : vector<1x256xf32> to vector<8x256xf32>
    %137 = arith.mulf %134, %136 : vector<8x256xf32>
    %138 = vector.extract_strided_slice %88 {offsets = [0, 32], sizes = [8, 224], strides = [1, 1]} : vector<8x256xf32> to vector<8x224xf32>
    %139 = vector.extract_strided_slice %88 {offsets = [0, 0], sizes = [8, 32], strides = [1, 1]} : vector<8x256xf32> to vector<8x32xf32>
    %140 = tpu.concatenate %138, %139 in 1 : vector<8x224xf32>, vector<8x32xf32> -> vector<8x256xf32>
    %c23 = arith.constant 23 : index
    %c0_29 = arith.constant 0 : index
    %141 = vector.load %arg2[%c23, %c0_29] : memref<33x256xf32, #tpu.memory_space<vmem>>, vector<1x256xf32>
    %142 = vector.broadcast %141 : vector<1x256xf32> to vector<8x256xf32>
    %143 = arith.mulf %140, %142 : vector<8x256xf32>
    %144 = vector.extract_strided_slice %88 {offsets = [0, 48], sizes = [8, 208], strides = [1, 1]} : vector<8x256xf32> to vector<8x208xf32>
    %145 = vector.extract_strided_slice %88 {offsets = [0, 0], sizes = [8, 48], strides = [1, 1]} : vector<8x256xf32> to vector<8x48xf32>
    %146 = tpu.concatenate %144, %145 in 1 : vector<8x208xf32>, vector<8x48xf32> -> vector<8x256xf32>
    %c24 = arith.constant 24 : index
    %c0_30 = arith.constant 0 : index
    %147 = vector.load %arg2[%c24, %c0_30] : memref<33x256xf32, #tpu.memory_space<vmem>>, vector<1x256xf32>
    %148 = vector.broadcast %147 : vector<1x256xf32> to vector<8x256xf32>
    %149 = arith.mulf %146, %148 : vector<8x256xf32>
    %150 = vector.extract_strided_slice %88 {offsets = [0, 64], sizes = [8, 192], strides = [1, 1]} : vector<8x256xf32> to vector<8x192xf32>
    %151 = vector.extract_strided_slice %88 {offsets = [0, 0], sizes = [8, 64], strides = [1, 1]} : vector<8x256xf32> to vector<8x64xf32>
    %152 = tpu.concatenate %150, %151 in 1 : vector<8x192xf32>, vector<8x64xf32> -> vector<8x256xf32>
    %c25 = arith.constant 25 : index
    %c0_31 = arith.constant 0 : index
    %153 = vector.load %arg2[%c25, %c0_31] : memref<33x256xf32, #tpu.memory_space<vmem>>, vector<1x256xf32>
    %154 = vector.broadcast %153 : vector<1x256xf32> to vector<8x256xf32>
    %155 = arith.mulf %152, %154 : vector<8x256xf32>
    %156 = vector.extract_strided_slice %88 {offsets = [0, 80], sizes = [8, 176], strides = [1, 1]} : vector<8x256xf32> to vector<8x176xf32>
    %157 = vector.extract_strided_slice %88 {offsets = [0, 0], sizes = [8, 80], strides = [1, 1]} : vector<8x256xf32> to vector<8x80xf32>
    %158 = tpu.concatenate %156, %157 in 1 : vector<8x176xf32>, vector<8x80xf32> -> vector<8x256xf32>
    %c26 = arith.constant 26 : index
    %c0_32 = arith.constant 0 : index
    %159 = vector.load %arg2[%c26, %c0_32] : memref<33x256xf32, #tpu.memory_space<vmem>>, vector<1x256xf32>
    %160 = vector.broadcast %159 : vector<1x256xf32> to vector<8x256xf32>
    %161 = arith.mulf %158, %160 : vector<8x256xf32>
    %162 = vector.extract_strided_slice %88 {offsets = [0, 96], sizes = [8, 160], strides = [1, 1]} : vector<8x256xf32> to vector<8x160xf32>
    %163 = vector.extract_strided_slice %88 {offsets = [0, 0], sizes = [8, 96], strides = [1, 1]} : vector<8x256xf32> to vector<8x96xf32>
    %164 = tpu.concatenate %162, %163 in 1 : vector<8x160xf32>, vector<8x96xf32> -> vector<8x256xf32>
    %c27 = arith.constant 27 : index
    %c0_33 = arith.constant 0 : index
    %165 = vector.load %arg2[%c27, %c0_33] : memref<33x256xf32, #tpu.memory_space<vmem>>, vector<1x256xf32>
    %166 = vector.broadcast %165 : vector<1x256xf32> to vector<8x256xf32>
    %167 = arith.mulf %164, %166 : vector<8x256xf32>
    %168 = vector.extract_strided_slice %88 {offsets = [0, 112], sizes = [8, 144], strides = [1, 1]} : vector<8x256xf32> to vector<8x144xf32>
    %169 = vector.extract_strided_slice %88 {offsets = [0, 0], sizes = [8, 112], strides = [1, 1]} : vector<8x256xf32> to vector<8x112xf32>
    %170 = tpu.concatenate %168, %169 in 1 : vector<8x144xf32>, vector<8x112xf32> -> vector<8x256xf32>
    %c28 = arith.constant 28 : index
    %c0_34 = arith.constant 0 : index
    %171 = vector.load %arg2[%c28, %c0_34] : memref<33x256xf32, #tpu.memory_space<vmem>>, vector<1x256xf32>
    %172 = vector.broadcast %171 : vector<1x256xf32> to vector<8x256xf32>
    %173 = arith.mulf %170, %172 : vector<8x256xf32>
    %174 = tpu.concatenate %95, %101, %107, %113, %119, %125, %131, %88, %137, %143, %149, %155, %161, %167, %173 in 0 : vector<8x256xf32>, vector<8x256xf32>, vector<8x256xf32>, vector<8x256xf32>, vector<8x256xf32>, vector<8x256xf32>, vector<8x256xf32>, vector<8x256xf32>, vector<8x256xf32>, vector<8x256xf32>, vector<8x256xf32>, vector<8x256xf32>, vector<8x256xf32>, vector<8x256xf32>, vector<8x256xf32> -> vector<120x256xf32>
    %cst_35 = arith.constant dense<0.000000e+00> : vector<8x256xf32>
    %175 = tpu.matmul %89, %174, %cst_35 {dimension_numbers = #tpu.dot_dimension_numbers<[1], [0], [0], [1], [0, 0, 1, 1], [], []>} : vector<8x120xf32>, vector<120x256xf32>, vector<8x256xf32> -> vector<8x256xf32>
    %c0_36 = arith.constant 0 : index
    %c0_37 = arith.constant 0 : index
    %176 = vector.load %arg5[%c0_36, %c0_37] : memref<8x120xf32, #tpu.memory_space<vmem>>, vector<8x120xf32>
    %177 = vector.extract_strided_slice %1 {offsets = [0, 144], sizes = [8, 112], strides = [1, 1]} : vector<8x256xf32> to vector<8x112xf32>
    %178 = vector.extract_strided_slice %1 {offsets = [0, 0], sizes = [8, 144], strides = [1, 1]} : vector<8x256xf32> to vector<8x144xf32>
    %179 = tpu.concatenate %177, %178 in 1 : vector<8x112xf32>, vector<8x144xf32> -> vector<8x256xf32>
    %c15_38 = arith.constant 15 : index
    %c0_39 = arith.constant 0 : index
    %180 = vector.load %arg2[%c15_38, %c0_39] : memref<33x256xf32, #tpu.memory_space<vmem>>, vector<1x256xf32>
    %181 = vector.broadcast %180 : vector<1x256xf32> to vector<8x256xf32>
    %182 = arith.mulf %179, %181 : vector<8x256xf32>
    %183 = vector.extract_strided_slice %1 {offsets = [0, 160], sizes = [8, 96], strides = [1, 1]} : vector<8x256xf32> to vector<8x96xf32>
    %184 = vector.extract_strided_slice %1 {offsets = [0, 0], sizes = [8, 160], strides = [1, 1]} : vector<8x256xf32> to vector<8x160xf32>
    %185 = tpu.concatenate %183, %184 in 1 : vector<8x96xf32>, vector<8x160xf32> -> vector<8x256xf32>
    %c16_40 = arith.constant 16 : index
    %c0_41 = arith.constant 0 : index
    %186 = vector.load %arg2[%c16_40, %c0_41] : memref<33x256xf32, #tpu.memory_space<vmem>>, vector<1x256xf32>
    %187 = vector.broadcast %186 : vector<1x256xf32> to vector<8x256xf32>
    %188 = arith.mulf %185, %187 : vector<8x256xf32>
    %189 = vector.extract_strided_slice %1 {offsets = [0, 176], sizes = [8, 80], strides = [1, 1]} : vector<8x256xf32> to vector<8x80xf32>
    %190 = vector.extract_strided_slice %1 {offsets = [0, 0], sizes = [8, 176], strides = [1, 1]} : vector<8x256xf32> to vector<8x176xf32>
    %191 = tpu.concatenate %189, %190 in 1 : vector<8x80xf32>, vector<8x176xf32> -> vector<8x256xf32>
    %c17_42 = arith.constant 17 : index
    %c0_43 = arith.constant 0 : index
    %192 = vector.load %arg2[%c17_42, %c0_43] : memref<33x256xf32, #tpu.memory_space<vmem>>, vector<1x256xf32>
    %193 = vector.broadcast %192 : vector<1x256xf32> to vector<8x256xf32>
    %194 = arith.mulf %191, %193 : vector<8x256xf32>
    %195 = vector.extract_strided_slice %1 {offsets = [0, 192], sizes = [8, 64], strides = [1, 1]} : vector<8x256xf32> to vector<8x64xf32>
    %196 = vector.extract_strided_slice %1 {offsets = [0, 0], sizes = [8, 192], strides = [1, 1]} : vector<8x256xf32> to vector<8x192xf32>
    %197 = tpu.concatenate %195, %196 in 1 : vector<8x64xf32>, vector<8x192xf32> -> vector<8x256xf32>
    %c18_44 = arith.constant 18 : index
    %c0_45 = arith.constant 0 : index
    %198 = vector.load %arg2[%c18_44, %c0_45] : memref<33x256xf32, #tpu.memory_space<vmem>>, vector<1x256xf32>
    %199 = vector.broadcast %198 : vector<1x256xf32> to vector<8x256xf32>
    %200 = arith.mulf %197, %199 : vector<8x256xf32>
    %201 = vector.extract_strided_slice %1 {offsets = [0, 208], sizes = [8, 48], strides = [1, 1]} : vector<8x256xf32> to vector<8x48xf32>
    %202 = vector.extract_strided_slice %1 {offsets = [0, 0], sizes = [8, 208], strides = [1, 1]} : vector<8x256xf32> to vector<8x208xf32>
    %203 = tpu.concatenate %201, %202 in 1 : vector<8x48xf32>, vector<8x208xf32> -> vector<8x256xf32>
    %c19_46 = arith.constant 19 : index
    %c0_47 = arith.constant 0 : index
    %204 = vector.load %arg2[%c19_46, %c0_47] : memref<33x256xf32, #tpu.memory_space<vmem>>, vector<1x256xf32>
    %205 = vector.broadcast %204 : vector<1x256xf32> to vector<8x256xf32>
    %206 = arith.mulf %203, %205 : vector<8x256xf32>
    %207 = vector.extract_strided_slice %1 {offsets = [0, 224], sizes = [8, 32], strides = [1, 1]} : vector<8x256xf32> to vector<8x32xf32>
    %208 = vector.extract_strided_slice %1 {offsets = [0, 0], sizes = [8, 224], strides = [1, 1]} : vector<8x256xf32> to vector<8x224xf32>
    %209 = tpu.concatenate %207, %208 in 1 : vector<8x32xf32>, vector<8x224xf32> -> vector<8x256xf32>
    %c20_48 = arith.constant 20 : index
    %c0_49 = arith.constant 0 : index
    %210 = vector.load %arg2[%c20_48, %c0_49] : memref<33x256xf32, #tpu.memory_space<vmem>>, vector<1x256xf32>
    %211 = vector.broadcast %210 : vector<1x256xf32> to vector<8x256xf32>
    %212 = arith.mulf %209, %211 : vector<8x256xf32>
    %213 = vector.extract_strided_slice %1 {offsets = [0, 240], sizes = [8, 16], strides = [1, 1]} : vector<8x256xf32> to vector<8x16xf32>
    %214 = vector.extract_strided_slice %1 {offsets = [0, 0], sizes = [8, 240], strides = [1, 1]} : vector<8x256xf32> to vector<8x240xf32>
    %215 = tpu.concatenate %213, %214 in 1 : vector<8x16xf32>, vector<8x240xf32> -> vector<8x256xf32>
    %c21_50 = arith.constant 21 : index
    %c0_51 = arith.constant 0 : index
    %216 = vector.load %arg2[%c21_50, %c0_51] : memref<33x256xf32, #tpu.memory_space<vmem>>, vector<1x256xf32>
    %217 = vector.broadcast %216 : vector<1x256xf32> to vector<8x256xf32>
    %218 = arith.mulf %215, %217 : vector<8x256xf32>
    %219 = vector.extract_strided_slice %1 {offsets = [0, 16], sizes = [8, 240], strides = [1, 1]} : vector<8x256xf32> to vector<8x240xf32>
    %220 = vector.extract_strided_slice %1 {offsets = [0, 0], sizes = [8, 16], strides = [1, 1]} : vector<8x256xf32> to vector<8x16xf32>
    %221 = tpu.concatenate %219, %220 in 1 : vector<8x240xf32>, vector<8x16xf32> -> vector<8x256xf32>
    %c22_52 = arith.constant 22 : index
    %c0_53 = arith.constant 0 : index
    %222 = vector.load %arg2[%c22_52, %c0_53] : memref<33x256xf32, #tpu.memory_space<vmem>>, vector<1x256xf32>
    %223 = vector.broadcast %222 : vector<1x256xf32> to vector<8x256xf32>
    %224 = arith.mulf %221, %223 : vector<8x256xf32>
    %225 = vector.extract_strided_slice %1 {offsets = [0, 32], sizes = [8, 224], strides = [1, 1]} : vector<8x256xf32> to vector<8x224xf32>
    %226 = vector.extract_strided_slice %1 {offsets = [0, 0], sizes = [8, 32], strides = [1, 1]} : vector<8x256xf32> to vector<8x32xf32>
    %227 = tpu.concatenate %225, %226 in 1 : vector<8x224xf32>, vector<8x32xf32> -> vector<8x256xf32>
    %c23_54 = arith.constant 23 : index
    %c0_55 = arith.constant 0 : index
    %228 = vector.load %arg2[%c23_54, %c0_55] : memref<33x256xf32, #tpu.memory_space<vmem>>, vector<1x256xf32>
    %229 = vector.broadcast %228 : vector<1x256xf32> to vector<8x256xf32>
    %230 = arith.mulf %227, %229 : vector<8x256xf32>
    %231 = vector.extract_strided_slice %1 {offsets = [0, 48], sizes = [8, 208], strides = [1, 1]} : vector<8x256xf32> to vector<8x208xf32>
    %232 = vector.extract_strided_slice %1 {offsets = [0, 0], sizes = [8, 48], strides = [1, 1]} : vector<8x256xf32> to vector<8x48xf32>
    %233 = tpu.concatenate %231, %232 in 1 : vector<8x208xf32>, vector<8x48xf32> -> vector<8x256xf32>
    %c24_56 = arith.constant 24 : index
    %c0_57 = arith.constant 0 : index
    %234 = vector.load %arg2[%c24_56, %c0_57] : memref<33x256xf32, #tpu.memory_space<vmem>>, vector<1x256xf32>
    %235 = vector.broadcast %234 : vector<1x256xf32> to vector<8x256xf32>
    %236 = arith.mulf %233, %235 : vector<8x256xf32>
    %237 = vector.extract_strided_slice %1 {offsets = [0, 64], sizes = [8, 192], strides = [1, 1]} : vector<8x256xf32> to vector<8x192xf32>
    %238 = vector.extract_strided_slice %1 {offsets = [0, 0], sizes = [8, 64], strides = [1, 1]} : vector<8x256xf32> to vector<8x64xf32>
    %239 = tpu.concatenate %237, %238 in 1 : vector<8x192xf32>, vector<8x64xf32> -> vector<8x256xf32>
    %c25_58 = arith.constant 25 : index
    %c0_59 = arith.constant 0 : index
    %240 = vector.load %arg2[%c25_58, %c0_59] : memref<33x256xf32, #tpu.memory_space<vmem>>, vector<1x256xf32>
    %241 = vector.broadcast %240 : vector<1x256xf32> to vector<8x256xf32>
    %242 = arith.mulf %239, %241 : vector<8x256xf32>
    %243 = vector.extract_strided_slice %1 {offsets = [0, 80], sizes = [8, 176], strides = [1, 1]} : vector<8x256xf32> to vector<8x176xf32>
    %244 = vector.extract_strided_slice %1 {offsets = [0, 0], sizes = [8, 80], strides = [1, 1]} : vector<8x256xf32> to vector<8x80xf32>
    %245 = tpu.concatenate %243, %244 in 1 : vector<8x176xf32>, vector<8x80xf32> -> vector<8x256xf32>
    %c26_60 = arith.constant 26 : index
    %c0_61 = arith.constant 0 : index
    %246 = vector.load %arg2[%c26_60, %c0_61] : memref<33x256xf32, #tpu.memory_space<vmem>>, vector<1x256xf32>
    %247 = vector.broadcast %246 : vector<1x256xf32> to vector<8x256xf32>
    %248 = arith.mulf %245, %247 : vector<8x256xf32>
    %249 = vector.extract_strided_slice %1 {offsets = [0, 96], sizes = [8, 160], strides = [1, 1]} : vector<8x256xf32> to vector<8x160xf32>
    %250 = vector.extract_strided_slice %1 {offsets = [0, 0], sizes = [8, 96], strides = [1, 1]} : vector<8x256xf32> to vector<8x96xf32>
    %251 = tpu.concatenate %249, %250 in 1 : vector<8x160xf32>, vector<8x96xf32> -> vector<8x256xf32>
    %c27_62 = arith.constant 27 : index
    %c0_63 = arith.constant 0 : index
    %252 = vector.load %arg2[%c27_62, %c0_63] : memref<33x256xf32, #tpu.memory_space<vmem>>, vector<1x256xf32>
    %253 = vector.broadcast %252 : vector<1x256xf32> to vector<8x256xf32>
    %254 = arith.mulf %251, %253 : vector<8x256xf32>
    %255 = vector.extract_strided_slice %1 {offsets = [0, 112], sizes = [8, 144], strides = [1, 1]} : vector<8x256xf32> to vector<8x144xf32>
    %256 = vector.extract_strided_slice %1 {offsets = [0, 0], sizes = [8, 112], strides = [1, 1]} : vector<8x256xf32> to vector<8x112xf32>
    %257 = tpu.concatenate %255, %256 in 1 : vector<8x144xf32>, vector<8x112xf32> -> vector<8x256xf32>
    %c28_64 = arith.constant 28 : index
    %c0_65 = arith.constant 0 : index
    %258 = vector.load %arg2[%c28_64, %c0_65] : memref<33x256xf32, #tpu.memory_space<vmem>>, vector<1x256xf32>
    %259 = vector.broadcast %258 : vector<1x256xf32> to vector<8x256xf32>
    %260 = arith.mulf %257, %259 : vector<8x256xf32>
    %261 = tpu.concatenate %182, %188, %194, %200, %206, %212, %218, %1, %224, %230, %236, %242, %248, %254, %260 in 0 : vector<8x256xf32>, vector<8x256xf32>, vector<8x256xf32>, vector<8x256xf32>, vector<8x256xf32>, vector<8x256xf32>, vector<8x256xf32>, vector<8x256xf32>, vector<8x256xf32>, vector<8x256xf32>, vector<8x256xf32>, vector<8x256xf32>, vector<8x256xf32>, vector<8x256xf32>, vector<8x256xf32> -> vector<120x256xf32>
    %cst_66 = arith.constant dense<0.000000e+00> : vector<8x256xf32>
    %262 = tpu.matmul %176, %261, %cst_66 {dimension_numbers = #tpu.dot_dimension_numbers<[1], [0], [0], [1], [0, 0, 1, 1], [], []>} : vector<8x120xf32>, vector<120x256xf32>, vector<8x256xf32> -> vector<8x256xf32>
    %c0_67 = arith.constant 0 : index
    %c0_68 = arith.constant 0 : index
    %263 = vector.load %arg6[%c0_67, %c0_68] : memref<8x120xf32, #tpu.memory_space<vmem>>, vector<8x120xf32>
    %264 = vector.extract_strided_slice %262 {offsets = [0, 249], sizes = [8, 7], strides = [1, 1]} : vector<8x256xf32> to vector<8x7xf32>
    %265 = vector.extract_strided_slice %262 {offsets = [0, 0], sizes = [8, 249], strides = [1, 1]} : vector<8x256xf32> to vector<8x249xf32>
    %266 = tpu.concatenate %264, %265 in 1 : vector<8x7xf32>, vector<8x249xf32> -> vector<8x256xf32>
    %c0_69 = arith.constant 0 : index
    %c0_70 = arith.constant 0 : index
    %267 = vector.load %arg2[%c0_69, %c0_70] : memref<33x256xf32, #tpu.memory_space<vmem>>, vector<1x256xf32>
    %268 = vector.broadcast %267 : vector<1x256xf32> to vector<8x256xf32>
    %269 = arith.mulf %266, %268 : vector<8x256xf32>
    %270 = vector.extract_strided_slice %262 {offsets = [0, 250], sizes = [8, 6], strides = [1, 1]} : vector<8x256xf32> to vector<8x6xf32>
    %271 = vector.extract_strided_slice %262 {offsets = [0, 0], sizes = [8, 250], strides = [1, 1]} : vector<8x256xf32> to vector<8x250xf32>
    %272 = tpu.concatenate %270, %271 in 1 : vector<8x6xf32>, vector<8x250xf32> -> vector<8x256xf32>
    %c1_71 = arith.constant 1 : index
    %c0_72 = arith.constant 0 : index
    %273 = vector.load %arg2[%c1_71, %c0_72] : memref<33x256xf32, #tpu.memory_space<vmem>>, vector<1x256xf32>
    %274 = vector.broadcast %273 : vector<1x256xf32> to vector<8x256xf32>
    %275 = arith.mulf %272, %274 : vector<8x256xf32>
    %276 = vector.extract_strided_slice %262 {offsets = [0, 251], sizes = [8, 5], strides = [1, 1]} : vector<8x256xf32> to vector<8x5xf32>
    %277 = vector.extract_strided_slice %262 {offsets = [0, 0], sizes = [8, 251], strides = [1, 1]} : vector<8x256xf32> to vector<8x251xf32>
    %278 = tpu.concatenate %276, %277 in 1 : vector<8x5xf32>, vector<8x251xf32> -> vector<8x256xf32>
    %c2_73 = arith.constant 2 : index
    %c0_74 = arith.constant 0 : index
    %279 = vector.load %arg2[%c2_73, %c0_74] : memref<33x256xf32, #tpu.memory_space<vmem>>, vector<1x256xf32>
    %280 = vector.broadcast %279 : vector<1x256xf32> to vector<8x256xf32>
    %281 = arith.mulf %278, %280 : vector<8x256xf32>
    %282 = vector.extract_strided_slice %262 {offsets = [0, 252], sizes = [8, 4], strides = [1, 1]} : vector<8x256xf32> to vector<8x4xf32>
    %283 = vector.extract_strided_slice %262 {offsets = [0, 0], sizes = [8, 252], strides = [1, 1]} : vector<8x256xf32> to vector<8x252xf32>
    %284 = tpu.concatenate %282, %283 in 1 : vector<8x4xf32>, vector<8x252xf32> -> vector<8x256xf32>
    %c3_75 = arith.constant 3 : index
    %c0_76 = arith.constant 0 : index
    %285 = vector.load %arg2[%c3_75, %c0_76] : memref<33x256xf32, #tpu.memory_space<vmem>>, vector<1x256xf32>
    %286 = vector.broadcast %285 : vector<1x256xf32> to vector<8x256xf32>
    %287 = arith.mulf %284, %286 : vector<8x256xf32>
    %288 = vector.extract_strided_slice %262 {offsets = [0, 253], sizes = [8, 3], strides = [1, 1]} : vector<8x256xf32> to vector<8x3xf32>
    %289 = vector.extract_strided_slice %262 {offsets = [0, 0], sizes = [8, 253], strides = [1, 1]} : vector<8x256xf32> to vector<8x253xf32>
    %290 = tpu.concatenate %288, %289 in 1 : vector<8x3xf32>, vector<8x253xf32> -> vector<8x256xf32>
    %c4_77 = arith.constant 4 : index
    %c0_78 = arith.constant 0 : index
    %291 = vector.load %arg2[%c4_77, %c0_78] : memref<33x256xf32, #tpu.memory_space<vmem>>, vector<1x256xf32>
    %292 = vector.broadcast %291 : vector<1x256xf32> to vector<8x256xf32>
    %293 = arith.mulf %290, %292 : vector<8x256xf32>
    %294 = vector.extract_strided_slice %262 {offsets = [0, 254], sizes = [8, 2], strides = [1, 1]} : vector<8x256xf32> to vector<8x2xf32>
    %295 = vector.extract_strided_slice %262 {offsets = [0, 0], sizes = [8, 254], strides = [1, 1]} : vector<8x256xf32> to vector<8x254xf32>
    %296 = tpu.concatenate %294, %295 in 1 : vector<8x2xf32>, vector<8x254xf32> -> vector<8x256xf32>
    %c5_79 = arith.constant 5 : index
    %c0_80 = arith.constant 0 : index
    %297 = vector.load %arg2[%c5_79, %c0_80] : memref<33x256xf32, #tpu.memory_space<vmem>>, vector<1x256xf32>
    %298 = vector.broadcast %297 : vector<1x256xf32> to vector<8x256xf32>
    %299 = arith.mulf %296, %298 : vector<8x256xf32>
    %300 = vector.extract_strided_slice %262 {offsets = [0, 255], sizes = [8, 1], strides = [1, 1]} : vector<8x256xf32> to vector<8x1xf32>
    %301 = vector.extract_strided_slice %262 {offsets = [0, 0], sizes = [8, 255], strides = [1, 1]} : vector<8x256xf32> to vector<8x255xf32>
    %302 = tpu.concatenate %300, %301 in 1 : vector<8x1xf32>, vector<8x255xf32> -> vector<8x256xf32>
    %c6_81 = arith.constant 6 : index
    %c0_82 = arith.constant 0 : index
    %303 = vector.load %arg2[%c6_81, %c0_82] : memref<33x256xf32, #tpu.memory_space<vmem>>, vector<1x256xf32>
    %304 = vector.broadcast %303 : vector<1x256xf32> to vector<8x256xf32>
    %305 = arith.mulf %302, %304 : vector<8x256xf32>
    %306 = vector.extract_strided_slice %262 {offsets = [0, 1], sizes = [8, 255], strides = [1, 1]} : vector<8x256xf32> to vector<8x255xf32>
    %307 = vector.extract_strided_slice %262 {offsets = [0, 0], sizes = [8, 1], strides = [1, 1]} : vector<8x256xf32> to vector<8x1xf32>
    %308 = tpu.concatenate %306, %307 in 1 : vector<8x255xf32>, vector<8x1xf32> -> vector<8x256xf32>
    %c8_83 = arith.constant 8 : index
    %c0_84 = arith.constant 0 : index
    %309 = vector.load %arg2[%c8_83, %c0_84] : memref<33x256xf32, #tpu.memory_space<vmem>>, vector<1x256xf32>
    %310 = vector.broadcast %309 : vector<1x256xf32> to vector<8x256xf32>
    %311 = arith.mulf %308, %310 : vector<8x256xf32>
    %312 = vector.extract_strided_slice %262 {offsets = [0, 2], sizes = [8, 254], strides = [1, 1]} : vector<8x256xf32> to vector<8x254xf32>
    %313 = vector.extract_strided_slice %262 {offsets = [0, 0], sizes = [8, 2], strides = [1, 1]} : vector<8x256xf32> to vector<8x2xf32>
    %314 = tpu.concatenate %312, %313 in 1 : vector<8x254xf32>, vector<8x2xf32> -> vector<8x256xf32>
    %c9_85 = arith.constant 9 : index
    %c0_86 = arith.constant 0 : index
    %315 = vector.load %arg2[%c9_85, %c0_86] : memref<33x256xf32, #tpu.memory_space<vmem>>, vector<1x256xf32>
    %316 = vector.broadcast %315 : vector<1x256xf32> to vector<8x256xf32>
    %317 = arith.mulf %314, %316 : vector<8x256xf32>
    %318 = vector.extract_strided_slice %262 {offsets = [0, 3], sizes = [8, 253], strides = [1, 1]} : vector<8x256xf32> to vector<8x253xf32>
    %319 = vector.extract_strided_slice %262 {offsets = [0, 0], sizes = [8, 3], strides = [1, 1]} : vector<8x256xf32> to vector<8x3xf32>
    %320 = tpu.concatenate %318, %319 in 1 : vector<8x253xf32>, vector<8x3xf32> -> vector<8x256xf32>
    %c10_87 = arith.constant 10 : index
    %c0_88 = arith.constant 0 : index
    %321 = vector.load %arg2[%c10_87, %c0_88] : memref<33x256xf32, #tpu.memory_space<vmem>>, vector<1x256xf32>
    %322 = vector.broadcast %321 : vector<1x256xf32> to vector<8x256xf32>
    %323 = arith.mulf %320, %322 : vector<8x256xf32>
    %324 = vector.extract_strided_slice %262 {offsets = [0, 4], sizes = [8, 252], strides = [1, 1]} : vector<8x256xf32> to vector<8x252xf32>
    %325 = vector.extract_strided_slice %262 {offsets = [0, 0], sizes = [8, 4], strides = [1, 1]} : vector<8x256xf32> to vector<8x4xf32>
    %326 = tpu.concatenate %324, %325 in 1 : vector<8x252xf32>, vector<8x4xf32> -> vector<8x256xf32>
    %c11_89 = arith.constant 11 : index
    %c0_90 = arith.constant 0 : index
    %327 = vector.load %arg2[%c11_89, %c0_90] : memref<33x256xf32, #tpu.memory_space<vmem>>, vector<1x256xf32>
    %328 = vector.broadcast %327 : vector<1x256xf32> to vector<8x256xf32>
    %329 = arith.mulf %326, %328 : vector<8x256xf32>
    %330 = vector.extract_strided_slice %262 {offsets = [0, 5], sizes = [8, 251], strides = [1, 1]} : vector<8x256xf32> to vector<8x251xf32>
    %331 = vector.extract_strided_slice %262 {offsets = [0, 0], sizes = [8, 5], strides = [1, 1]} : vector<8x256xf32> to vector<8x5xf32>
    %332 = tpu.concatenate %330, %331 in 1 : vector<8x251xf32>, vector<8x5xf32> -> vector<8x256xf32>
    %c12_91 = arith.constant 12 : index
    %c0_92 = arith.constant 0 : index
    %333 = vector.load %arg2[%c12_91, %c0_92] : memref<33x256xf32, #tpu.memory_space<vmem>>, vector<1x256xf32>
    %334 = vector.broadcast %333 : vector<1x256xf32> to vector<8x256xf32>
    %335 = arith.mulf %332, %334 : vector<8x256xf32>
    %336 = vector.extract_strided_slice %262 {offsets = [0, 6], sizes = [8, 250], strides = [1, 1]} : vector<8x256xf32> to vector<8x250xf32>
    %337 = vector.extract_strided_slice %262 {offsets = [0, 0], sizes = [8, 6], strides = [1, 1]} : vector<8x256xf32> to vector<8x6xf32>
    %338 = tpu.concatenate %336, %337 in 1 : vector<8x250xf32>, vector<8x6xf32> -> vector<8x256xf32>
    %c13_93 = arith.constant 13 : index
    %c0_94 = arith.constant 0 : index
    %339 = vector.load %arg2[%c13_93, %c0_94] : memref<33x256xf32, #tpu.memory_space<vmem>>, vector<1x256xf32>
    %340 = vector.broadcast %339 : vector<1x256xf32> to vector<8x256xf32>
    %341 = arith.mulf %338, %340 : vector<8x256xf32>
    %342 = vector.extract_strided_slice %262 {offsets = [0, 7], sizes = [8, 249], strides = [1, 1]} : vector<8x256xf32> to vector<8x249xf32>
    %343 = vector.extract_strided_slice %262 {offsets = [0, 0], sizes = [8, 7], strides = [1, 1]} : vector<8x256xf32> to vector<8x7xf32>
    %344 = tpu.concatenate %342, %343 in 1 : vector<8x249xf32>, vector<8x7xf32> -> vector<8x256xf32>
    %c14_95 = arith.constant 14 : index
    %c0_96 = arith.constant 0 : index
    %345 = vector.load %arg2[%c14_95, %c0_96] : memref<33x256xf32, #tpu.memory_space<vmem>>, vector<1x256xf32>
    %346 = vector.broadcast %345 : vector<1x256xf32> to vector<8x256xf32>
    %347 = arith.mulf %344, %346 : vector<8x256xf32>
    %348 = tpu.concatenate %269, %275, %281, %287, %293, %299, %305, %262, %311, %317, %323, %329, %335, %341, %347 in 0 : vector<8x256xf32>, vector<8x256xf32>, vector<8x256xf32>, vector<8x256xf32>, vector<8x256xf32>, vector<8x256xf32>, vector<8x256xf32>, vector<8x256xf32>, vector<8x256xf32>, vector<8x256xf32>, vector<8x256xf32>, vector<8x256xf32>, vector<8x256xf32>, vector<8x256xf32>, vector<8x256xf32> -> vector<120x256xf32>
    %cst_97 = arith.constant dense<0.000000e+00> : vector<8x256xf32>
    %349 = tpu.matmul %263, %348, %cst_97 {dimension_numbers = #tpu.dot_dimension_numbers<[1], [0], [0], [1], [0, 0, 1, 1], [], []>} : vector<8x120xf32>, vector<120x256xf32>, vector<8x256xf32> -> vector<8x256xf32>
    %350 = arith.addf %175, %349 : vector<8x256xf32>
    %c0_98 = arith.constant 0 : index
    %c0_99 = arith.constant 0 : index
    %351 = vector.load %arg7[%c0_98, %c0_99] : memref<8x72xf32, #tpu.memory_space<vmem>>, vector<8x72xf32>
    %352 = vector.extract_strided_slice %350 {offsets = [0, 239], sizes = [8, 17], strides = [1, 1]} : vector<8x256xf32> to vector<8x17xf32>
    %353 = vector.extract_strided_slice %350 {offsets = [0, 0], sizes = [8, 239], strides = [1, 1]} : vector<8x256xf32> to vector<8x239xf32>
    %354 = tpu.concatenate %352, %353 in 1 : vector<8x17xf32>, vector<8x239xf32> -> vector<8x256xf32>
    %c29 = arith.constant 29 : index
    %c0_100 = arith.constant 0 : index
    %355 = vector.load %arg2[%c29, %c0_100] : memref<33x256xf32, #tpu.memory_space<vmem>>, vector<1x256xf32>
    %356 = vector.broadcast %355 : vector<1x256xf32> to vector<8x256xf32>
    %357 = arith.mulf %354, %356 : vector<8x256xf32>
    %358 = vector.extract_strided_slice %350 {offsets = [0, 240], sizes = [8, 16], strides = [1, 1]} : vector<8x256xf32> to vector<8x16xf32>
    %359 = vector.extract_strided_slice %350 {offsets = [0, 0], sizes = [8, 240], strides = [1, 1]} : vector<8x256xf32> to vector<8x240xf32>
    %360 = tpu.concatenate %358, %359 in 1 : vector<8x16xf32>, vector<8x240xf32> -> vector<8x256xf32>
    %c21_101 = arith.constant 21 : index
    %c0_102 = arith.constant 0 : index
    %361 = vector.load %arg2[%c21_101, %c0_102] : memref<33x256xf32, #tpu.memory_space<vmem>>, vector<1x256xf32>
    %362 = vector.broadcast %361 : vector<1x256xf32> to vector<8x256xf32>
    %363 = arith.mulf %360, %362 : vector<8x256xf32>
    %364 = vector.extract_strided_slice %350 {offsets = [0, 241], sizes = [8, 15], strides = [1, 1]} : vector<8x256xf32> to vector<8x15xf32>
    %365 = vector.extract_strided_slice %350 {offsets = [0, 0], sizes = [8, 241], strides = [1, 1]} : vector<8x256xf32> to vector<8x241xf32>
    %366 = tpu.concatenate %364, %365 in 1 : vector<8x15xf32>, vector<8x241xf32> -> vector<8x256xf32>
    %c30 = arith.constant 30 : index
    %c0_103 = arith.constant 0 : index
    %367 = vector.load %arg2[%c30, %c0_103] : memref<33x256xf32, #tpu.memory_space<vmem>>, vector<1x256xf32>
    %368 = vector.broadcast %367 : vector<1x256xf32> to vector<8x256xf32>
    %369 = arith.mulf %366, %368 : vector<8x256xf32>
    %370 = vector.extract_strided_slice %350 {offsets = [0, 255], sizes = [8, 1], strides = [1, 1]} : vector<8x256xf32> to vector<8x1xf32>
    %371 = vector.extract_strided_slice %350 {offsets = [0, 0], sizes = [8, 255], strides = [1, 1]} : vector<8x256xf32> to vector<8x255xf32>
    %372 = tpu.concatenate %370, %371 in 1 : vector<8x1xf32>, vector<8x255xf32> -> vector<8x256xf32>
    %c6_104 = arith.constant 6 : index
    %c0_105 = arith.constant 0 : index
    %373 = vector.load %arg2[%c6_104, %c0_105] : memref<33x256xf32, #tpu.memory_space<vmem>>, vector<1x256xf32>
    %374 = vector.broadcast %373 : vector<1x256xf32> to vector<8x256xf32>
    %375 = arith.mulf %372, %374 : vector<8x256xf32>
    %376 = vector.extract_strided_slice %350 {offsets = [0, 1], sizes = [8, 255], strides = [1, 1]} : vector<8x256xf32> to vector<8x255xf32>
    %377 = vector.extract_strided_slice %350 {offsets = [0, 0], sizes = [8, 1], strides = [1, 1]} : vector<8x256xf32> to vector<8x1xf32>
    %378 = tpu.concatenate %376, %377 in 1 : vector<8x255xf32>, vector<8x1xf32> -> vector<8x256xf32>
    %c8_106 = arith.constant 8 : index
    %c0_107 = arith.constant 0 : index
    %379 = vector.load %arg2[%c8_106, %c0_107] : memref<33x256xf32, #tpu.memory_space<vmem>>, vector<1x256xf32>
    %380 = vector.broadcast %379 : vector<1x256xf32> to vector<8x256xf32>
    %381 = arith.mulf %378, %380 : vector<8x256xf32>
    %382 = vector.extract_strided_slice %350 {offsets = [0, 15], sizes = [8, 241], strides = [1, 1]} : vector<8x256xf32> to vector<8x241xf32>
    %383 = vector.extract_strided_slice %350 {offsets = [0, 0], sizes = [8, 15], strides = [1, 1]} : vector<8x256xf32> to vector<8x15xf32>
    %384 = tpu.concatenate %382, %383 in 1 : vector<8x241xf32>, vector<8x15xf32> -> vector<8x256xf32>
    %c31 = arith.constant 31 : index
    %c0_108 = arith.constant 0 : index
    %385 = vector.load %arg2[%c31, %c0_108] : memref<33x256xf32, #tpu.memory_space<vmem>>, vector<1x256xf32>
    %386 = vector.broadcast %385 : vector<1x256xf32> to vector<8x256xf32>
    %387 = arith.mulf %384, %386 : vector<8x256xf32>
    %388 = vector.extract_strided_slice %350 {offsets = [0, 16], sizes = [8, 240], strides = [1, 1]} : vector<8x256xf32> to vector<8x240xf32>
    %389 = vector.extract_strided_slice %350 {offsets = [0, 0], sizes = [8, 16], strides = [1, 1]} : vector<8x256xf32> to vector<8x16xf32>
    %390 = tpu.concatenate %388, %389 in 1 : vector<8x240xf32>, vector<8x16xf32> -> vector<8x256xf32>
    %c22_109 = arith.constant 22 : index
    %c0_110 = arith.constant 0 : index
    %391 = vector.load %arg2[%c22_109, %c0_110] : memref<33x256xf32, #tpu.memory_space<vmem>>, vector<1x256xf32>
    %392 = vector.broadcast %391 : vector<1x256xf32> to vector<8x256xf32>
    %393 = arith.mulf %390, %392 : vector<8x256xf32>
    %394 = vector.extract_strided_slice %350 {offsets = [0, 17], sizes = [8, 239], strides = [1, 1]} : vector<8x256xf32> to vector<8x239xf32>
    %395 = vector.extract_strided_slice %350 {offsets = [0, 0], sizes = [8, 17], strides = [1, 1]} : vector<8x256xf32> to vector<8x17xf32>
    %396 = tpu.concatenate %394, %395 in 1 : vector<8x239xf32>, vector<8x17xf32> -> vector<8x256xf32>
    %c32 = arith.constant 32 : index
    %c0_111 = arith.constant 0 : index
    %397 = vector.load %arg2[%c32, %c0_111] : memref<33x256xf32, #tpu.memory_space<vmem>>, vector<1x256xf32>
    %398 = vector.broadcast %397 : vector<1x256xf32> to vector<8x256xf32>
    %399 = arith.mulf %396, %398 : vector<8x256xf32>
    %400 = tpu.concatenate %357, %363, %369, %375, %350, %381, %387, %393, %399 in 0 : vector<8x256xf32>, vector<8x256xf32>, vector<8x256xf32>, vector<8x256xf32>, vector<8x256xf32>, vector<8x256xf32>, vector<8x256xf32>, vector<8x256xf32>, vector<8x256xf32> -> vector<72x256xf32>
    %cst_112 = arith.constant dense<0.000000e+00> : vector<8x256xf32>
    %401 = tpu.matmul %351, %400, %cst_112 {dimension_numbers = #tpu.dot_dimension_numbers<[1], [0], [0], [1], [0, 0, 1, 1], [], []>} : vector<8x72xf32>, vector<72x256xf32>, vector<8x256xf32> -> vector<8x256xf32>
    %cst_113 = arith.constant 0.000000e+00 : f32
    %402 = vector.broadcast %cst_113 : f32 to vector<8x256xf32>
    %403 = arith.maximumf %401, %402 : vector<8x256xf32>
    %c0_114 = arith.constant 0 : index
    %c0_115 = arith.constant 0 : index
    %404 = vector.load %arg8[%c0_114, %c0_115] : memref<8x72xf32, #tpu.memory_space<vmem>>, vector<8x72xf32>
    %405 = vector.extract_strided_slice %403 {offsets = [0, 239], sizes = [8, 17], strides = [1, 1]} : vector<8x256xf32> to vector<8x17xf32>
    %406 = vector.extract_strided_slice %403 {offsets = [0, 0], sizes = [8, 239], strides = [1, 1]} : vector<8x256xf32> to vector<8x239xf32>
    %407 = tpu.concatenate %405, %406 in 1 : vector<8x17xf32>, vector<8x239xf32> -> vector<8x256xf32>
    %c29_116 = arith.constant 29 : index
    %c0_117 = arith.constant 0 : index
    %408 = vector.load %arg2[%c29_116, %c0_117] : memref<33x256xf32, #tpu.memory_space<vmem>>, vector<1x256xf32>
    %409 = vector.broadcast %408 : vector<1x256xf32> to vector<8x256xf32>
    %410 = arith.mulf %407, %409 : vector<8x256xf32>
    %411 = vector.extract_strided_slice %403 {offsets = [0, 240], sizes = [8, 16], strides = [1, 1]} : vector<8x256xf32> to vector<8x16xf32>
    %412 = vector.extract_strided_slice %403 {offsets = [0, 0], sizes = [8, 240], strides = [1, 1]} : vector<8x256xf32> to vector<8x240xf32>
    %413 = tpu.concatenate %411, %412 in 1 : vector<8x16xf32>, vector<8x240xf32> -> vector<8x256xf32>
    %c21_118 = arith.constant 21 : index
    %c0_119 = arith.constant 0 : index
    %414 = vector.load %arg2[%c21_118, %c0_119] : memref<33x256xf32, #tpu.memory_space<vmem>>, vector<1x256xf32>
    %415 = vector.broadcast %414 : vector<1x256xf32> to vector<8x256xf32>
    %416 = arith.mulf %413, %415 : vector<8x256xf32>
    %417 = vector.extract_strided_slice %403 {offsets = [0, 241], sizes = [8, 15], strides = [1, 1]} : vector<8x256xf32> to vector<8x15xf32>
    %418 = vector.extract_strided_slice %403 {offsets = [0, 0], sizes = [8, 241], strides = [1, 1]} : vector<8x256xf32> to vector<8x241xf32>
    %419 = tpu.concatenate %417, %418 in 1 : vector<8x15xf32>, vector<8x241xf32> -> vector<8x256xf32>
    %c30_120 = arith.constant 30 : index
    %c0_121 = arith.constant 0 : index
    %420 = vector.load %arg2[%c30_120, %c0_121] : memref<33x256xf32, #tpu.memory_space<vmem>>, vector<1x256xf32>
    %421 = vector.broadcast %420 : vector<1x256xf32> to vector<8x256xf32>
    %422 = arith.mulf %419, %421 : vector<8x256xf32>
    %423 = vector.extract_strided_slice %403 {offsets = [0, 255], sizes = [8, 1], strides = [1, 1]} : vector<8x256xf32> to vector<8x1xf32>
    %424 = vector.extract_strided_slice %403 {offsets = [0, 0], sizes = [8, 255], strides = [1, 1]} : vector<8x256xf32> to vector<8x255xf32>
    %425 = tpu.concatenate %423, %424 in 1 : vector<8x1xf32>, vector<8x255xf32> -> vector<8x256xf32>
    %c6_122 = arith.constant 6 : index
    %c0_123 = arith.constant 0 : index
    %426 = vector.load %arg2[%c6_122, %c0_123] : memref<33x256xf32, #tpu.memory_space<vmem>>, vector<1x256xf32>
    %427 = vector.broadcast %426 : vector<1x256xf32> to vector<8x256xf32>
    %428 = arith.mulf %425, %427 : vector<8x256xf32>
    %429 = vector.extract_strided_slice %403 {offsets = [0, 1], sizes = [8, 255], strides = [1, 1]} : vector<8x256xf32> to vector<8x255xf32>
    %430 = vector.extract_strided_slice %403 {offsets = [0, 0], sizes = [8, 1], strides = [1, 1]} : vector<8x256xf32> to vector<8x1xf32>
    %431 = tpu.concatenate %429, %430 in 1 : vector<8x255xf32>, vector<8x1xf32> -> vector<8x256xf32>
    %c8_124 = arith.constant 8 : index
    %c0_125 = arith.constant 0 : index
    %432 = vector.load %arg2[%c8_124, %c0_125] : memref<33x256xf32, #tpu.memory_space<vmem>>, vector<1x256xf32>
    %433 = vector.broadcast %432 : vector<1x256xf32> to vector<8x256xf32>
    %434 = arith.mulf %431, %433 : vector<8x256xf32>
    %435 = vector.extract_strided_slice %403 {offsets = [0, 15], sizes = [8, 241], strides = [1, 1]} : vector<8x256xf32> to vector<8x241xf32>
    %436 = vector.extract_strided_slice %403 {offsets = [0, 0], sizes = [8, 15], strides = [1, 1]} : vector<8x256xf32> to vector<8x15xf32>
    %437 = tpu.concatenate %435, %436 in 1 : vector<8x241xf32>, vector<8x15xf32> -> vector<8x256xf32>
    %c31_126 = arith.constant 31 : index
    %c0_127 = arith.constant 0 : index
    %438 = vector.load %arg2[%c31_126, %c0_127] : memref<33x256xf32, #tpu.memory_space<vmem>>, vector<1x256xf32>
    %439 = vector.broadcast %438 : vector<1x256xf32> to vector<8x256xf32>
    %440 = arith.mulf %437, %439 : vector<8x256xf32>
    %441 = vector.extract_strided_slice %403 {offsets = [0, 16], sizes = [8, 240], strides = [1, 1]} : vector<8x256xf32> to vector<8x240xf32>
    %442 = vector.extract_strided_slice %403 {offsets = [0, 0], sizes = [8, 16], strides = [1, 1]} : vector<8x256xf32> to vector<8x16xf32>
    %443 = tpu.concatenate %441, %442 in 1 : vector<8x240xf32>, vector<8x16xf32> -> vector<8x256xf32>
    %c22_128 = arith.constant 22 : index
    %c0_129 = arith.constant 0 : index
    %444 = vector.load %arg2[%c22_128, %c0_129] : memref<33x256xf32, #tpu.memory_space<vmem>>, vector<1x256xf32>
    %445 = vector.broadcast %444 : vector<1x256xf32> to vector<8x256xf32>
    %446 = arith.mulf %443, %445 : vector<8x256xf32>
    %447 = vector.extract_strided_slice %403 {offsets = [0, 17], sizes = [8, 239], strides = [1, 1]} : vector<8x256xf32> to vector<8x239xf32>
    %448 = vector.extract_strided_slice %403 {offsets = [0, 0], sizes = [8, 17], strides = [1, 1]} : vector<8x256xf32> to vector<8x17xf32>
    %449 = tpu.concatenate %447, %448 in 1 : vector<8x239xf32>, vector<8x17xf32> -> vector<8x256xf32>
    %c32_130 = arith.constant 32 : index
    %c0_131 = arith.constant 0 : index
    %450 = vector.load %arg2[%c32_130, %c0_131] : memref<33x256xf32, #tpu.memory_space<vmem>>, vector<1x256xf32>
    %451 = vector.broadcast %450 : vector<1x256xf32> to vector<8x256xf32>
    %452 = arith.mulf %449, %451 : vector<8x256xf32>
    %453 = tpu.concatenate %410, %416, %422, %428, %403, %434, %440, %446, %452 in 0 : vector<8x256xf32>, vector<8x256xf32>, vector<8x256xf32>, vector<8x256xf32>, vector<8x256xf32>, vector<8x256xf32>, vector<8x256xf32>, vector<8x256xf32>, vector<8x256xf32> -> vector<72x256xf32>
    %cst_132 = arith.constant dense<0.000000e+00> : vector<8x256xf32>
    %454 = tpu.matmul %404, %453, %cst_132 {dimension_numbers = #tpu.dot_dimension_numbers<[1], [0], [0], [1], [0, 0, 1, 1], [], []>} : vector<8x72xf32>, vector<72x256xf32>, vector<8x256xf32> -> vector<8x256xf32>
    %455 = arith.addf %350, %454 : vector<8x256xf32>
    %c0_133 = arith.constant 0 : index
    %c0_134 = arith.constant 0 : index
    %c0_135 = arith.constant 0 : index
    %456 = vector.load %arg9[%c0_133, %c0_134, %c0_135] : memref<4x8x32xf32, #tpu.memory_space<vmem>>, vector<1x8x32xf32>
    %457 = vector.shape_cast %456 : vector<1x8x32xf32> to vector<8x32xf32>
    %458 = vector.extract_strided_slice %455 {offsets = [0, 239], sizes = [8, 17], strides = [1, 1]} : vector<8x256xf32> to vector<8x17xf32>
    %459 = vector.extract_strided_slice %455 {offsets = [0, 0], sizes = [8, 239], strides = [1, 1]} : vector<8x256xf32> to vector<8x239xf32>
    %460 = tpu.concatenate %458, %459 in 1 : vector<8x17xf32>, vector<8x239xf32> -> vector<8x256xf32>
    %c29_136 = arith.constant 29 : index
    %c0_137 = arith.constant 0 : index
    %461 = vector.load %arg2[%c29_136, %c0_137] : memref<33x256xf32, #tpu.memory_space<vmem>>, vector<1x256xf32>
    %462 = vector.broadcast %461 : vector<1x256xf32> to vector<8x256xf32>
    %463 = arith.mulf %460, %462 : vector<8x256xf32>
    %464 = vector.extract_strided_slice %455 {offsets = [0, 240], sizes = [8, 16], strides = [1, 1]} : vector<8x256xf32> to vector<8x16xf32>
    %465 = vector.extract_strided_slice %455 {offsets = [0, 0], sizes = [8, 240], strides = [1, 1]} : vector<8x256xf32> to vector<8x240xf32>
    %466 = tpu.concatenate %464, %465 in 1 : vector<8x16xf32>, vector<8x240xf32> -> vector<8x256xf32>
    %c21_138 = arith.constant 21 : index
    %c0_139 = arith.constant 0 : index
    %467 = vector.load %arg2[%c21_138, %c0_139] : memref<33x256xf32, #tpu.memory_space<vmem>>, vector<1x256xf32>
    %468 = vector.broadcast %467 : vector<1x256xf32> to vector<8x256xf32>
    %469 = arith.mulf %466, %468 : vector<8x256xf32>
    %470 = vector.extract_strided_slice %455 {offsets = [0, 255], sizes = [8, 1], strides = [1, 1]} : vector<8x256xf32> to vector<8x1xf32>
    %471 = vector.extract_strided_slice %455 {offsets = [0, 0], sizes = [8, 255], strides = [1, 1]} : vector<8x256xf32> to vector<8x255xf32>
    %472 = tpu.concatenate %470, %471 in 1 : vector<8x1xf32>, vector<8x255xf32> -> vector<8x256xf32>
    %c6_140 = arith.constant 6 : index
    %c0_141 = arith.constant 0 : index
    %473 = vector.load %arg2[%c6_140, %c0_141] : memref<33x256xf32, #tpu.memory_space<vmem>>, vector<1x256xf32>
    %474 = vector.broadcast %473 : vector<1x256xf32> to vector<8x256xf32>
    %475 = arith.mulf %472, %474 : vector<8x256xf32>
    %476 = tpu.concatenate %463, %469, %475, %455 in 0 : vector<8x256xf32>, vector<8x256xf32>, vector<8x256xf32>, vector<8x256xf32> -> vector<32x256xf32>
    %cst_142 = arith.constant dense<0.000000e+00> : vector<8x256xf32>
    %477 = tpu.matmul %457, %476, %cst_142 {dimension_numbers = #tpu.dot_dimension_numbers<[1], [0], [0], [1], [0, 0, 1, 1], [], []>} : vector<8x32xf32>, vector<32x256xf32>, vector<8x256xf32> -> vector<8x256xf32>
    %c0_143 = arith.constant 0 : index
    %c0_144 = arith.constant 0 : index
    %c0_145 = arith.constant 0 : index
    %c0_146 = arith.constant 0 : index
    %478 = vector.load %arg10[%c0_143, %c0_144, %c0_145, %c0_146] : memref<1x4x8x256xf32, #tpu.memory_space<vmem>>, vector<1x1x8x256xf32>
    %479 = vector.shape_cast %478 : vector<1x1x8x256xf32> to vector<8x256xf32>
    %480 = vector.shape_cast %477 : vector<8x256xf32> to vector<1x1x8x256xf32>
    tpu.vector_store %arg10[%c0_143, %c0_144, %c0_145, %c0_146], %480 {strides = array<i32>} : memref<1x4x8x256xf32, #tpu.memory_space<vmem>>, vector<1x1x8x256xf32>,
    %c1_147 = arith.constant 1 : index
    %c0_148 = arith.constant 0 : index
    %c0_149 = arith.constant 0 : index
    %481 = vector.load %arg9[%c1_147, %c0_148, %c0_149] : memref<4x8x32xf32, #tpu.memory_space<vmem>>, vector<1x8x32xf32>
    %482 = vector.shape_cast %481 : vector<1x8x32xf32> to vector<8x32xf32>
    %483 = vector.extract_strided_slice %455 {offsets = [0, 240], sizes = [8, 16], strides = [1, 1]} : vector<8x256xf32> to vector<8x16xf32>
    %484 = vector.extract_strided_slice %455 {offsets = [0, 0], sizes = [8, 240], strides = [1, 1]} : vector<8x256xf32> to vector<8x240xf32>
    %485 = tpu.concatenate %483, %484 in 1 : vector<8x16xf32>, vector<8x240xf32> -> vector<8x256xf32>
    %c21_150 = arith.constant 21 : index
    %c0_151 = arith.constant 0 : index
    %486 = vector.load %arg2[%c21_150, %c0_151] : memref<33x256xf32, #tpu.memory_space<vmem>>, vector<1x256xf32>
    %487 = vector.broadcast %486 : vector<1x256xf32> to vector<8x256xf32>
    %488 = arith.mulf %485, %487 : vector<8x256xf32>
    %489 = vector.extract_strided_slice %455 {offsets = [0, 241], sizes = [8, 15], strides = [1, 1]} : vector<8x256xf32> to vector<8x15xf32>
    %490 = vector.extract_strided_slice %455 {offsets = [0, 0], sizes = [8, 241], strides = [1, 1]} : vector<8x256xf32> to vector<8x241xf32>
    %491 = tpu.concatenate %489, %490 in 1 : vector<8x15xf32>, vector<8x241xf32> -> vector<8x256xf32>
    %c30_152 = arith.constant 30 : index
    %c0_153 = arith.constant 0 : index
    %492 = vector.load %arg2[%c30_152, %c0_153] : memref<33x256xf32, #tpu.memory_space<vmem>>, vector<1x256xf32>
    %493 = vector.broadcast %492 : vector<1x256xf32> to vector<8x256xf32>
    %494 = arith.mulf %491, %493 : vector<8x256xf32>
    %495 = vector.extract_strided_slice %455 {offsets = [0, 1], sizes = [8, 255], strides = [1, 1]} : vector<8x256xf32> to vector<8x255xf32>
    %496 = vector.extract_strided_slice %455 {offsets = [0, 0], sizes = [8, 1], strides = [1, 1]} : vector<8x256xf32> to vector<8x1xf32>
    %497 = tpu.concatenate %495, %496 in 1 : vector<8x255xf32>, vector<8x1xf32> -> vector<8x256xf32>
    %c8_154 = arith.constant 8 : index
    %c0_155 = arith.constant 0 : index
    %498 = vector.load %arg2[%c8_154, %c0_155] : memref<33x256xf32, #tpu.memory_space<vmem>>, vector<1x256xf32>
    %499 = vector.broadcast %498 : vector<1x256xf32> to vector<8x256xf32>
    %500 = arith.mulf %497, %499 : vector<8x256xf32>
    %501 = tpu.concatenate %488, %494, %455, %500 in 0 : vector<8x256xf32>, vector<8x256xf32>, vector<8x256xf32>, vector<8x256xf32> -> vector<32x256xf32>
    %cst_156 = arith.constant dense<0.000000e+00> : vector<8x256xf32>
    %502 = tpu.matmul %482, %501, %cst_156 {dimension_numbers = #tpu.dot_dimension_numbers<[1], [0], [0], [1], [0, 0, 1, 1], [], []>} : vector<8x32xf32>, vector<32x256xf32>, vector<8x256xf32> -> vector<8x256xf32>
    %c0_157 = arith.constant 0 : index
    %c1_158 = arith.constant 1 : index
    %c0_159 = arith.constant 0 : index
    %c0_160 = arith.constant 0 : index
    %503 = vector.load %arg10[%c0_157, %c1_158, %c0_159, %c0_160] : memref<1x4x8x256xf32, #tpu.memory_space<vmem>>, vector<1x1x8x256xf32>
    %504 = vector.shape_cast %503 : vector<1x1x8x256xf32> to vector<8x256xf32>
    %505 = vector.shape_cast %502 : vector<8x256xf32> to vector<1x1x8x256xf32>
    tpu.vector_store %arg10[%c0_157, %c1_158, %c0_159, %c0_160], %505 {strides = array<i32>} : memref<1x4x8x256xf32, #tpu.memory_space<vmem>>, vector<1x1x8x256xf32>,
    %c2_161 = arith.constant 2 : index
    %c0_162 = arith.constant 0 : index
    %c0_163 = arith.constant 0 : index
    %506 = vector.load %arg9[%c2_161, %c0_162, %c0_163] : memref<4x8x32xf32, #tpu.memory_space<vmem>>, vector<1x8x32xf32>
    %507 = vector.shape_cast %506 : vector<1x8x32xf32> to vector<8x32xf32>
    %508 = vector.extract_strided_slice %455 {offsets = [0, 255], sizes = [8, 1], strides = [1, 1]} : vector<8x256xf32> to vector<8x1xf32>
    %509 = vector.extract_strided_slice %455 {offsets = [0, 0], sizes = [8, 255], strides = [1, 1]} : vector<8x256xf32> to vector<8x255xf32>
    %510 = tpu.concatenate %508, %509 in 1 : vector<8x1xf32>, vector<8x255xf32> -> vector<8x256xf32>
    %c6_164 = arith.constant 6 : index
    %c0_165 = arith.constant 0 : index
    %511 = vector.load %arg2[%c6_164, %c0_165] : memref<33x256xf32, #tpu.memory_space<vmem>>, vector<1x256xf32>
    %512 = vector.broadcast %511 : vector<1x256xf32> to vector<8x256xf32>
    %513 = arith.mulf %510, %512 : vector<8x256xf32>
    %514 = vector.extract_strided_slice %455 {offsets = [0, 15], sizes = [8, 241], strides = [1, 1]} : vector<8x256xf32> to vector<8x241xf32>
    %515 = vector.extract_strided_slice %455 {offsets = [0, 0], sizes = [8, 15], strides = [1, 1]} : vector<8x256xf32> to vector<8x15xf32>
    %516 = tpu.concatenate %514, %515 in 1 : vector<8x241xf32>, vector<8x15xf32> -> vector<8x256xf32>
    %c31_166 = arith.constant 31 : index
    %c0_167 = arith.constant 0 : index
    %517 = vector.load %arg2[%c31_166, %c0_167] : memref<33x256xf32, #tpu.memory_space<vmem>>, vector<1x256xf32>
    %518 = vector.broadcast %517 : vector<1x256xf32> to vector<8x256xf32>
    %519 = arith.mulf %516, %518 : vector<8x256xf32>
    %520 = vector.extract_strided_slice %455 {offsets = [0, 16], sizes = [8, 240], strides = [1, 1]} : vector<8x256xf32> to vector<8x240xf32>
    %521 = vector.extract_strided_slice %455 {offsets = [0, 0], sizes = [8, 16], strides = [1, 1]} : vector<8x256xf32> to vector<8x16xf32>
    %522 = tpu.concatenate %520, %521 in 1 : vector<8x240xf32>, vector<8x16xf32> -> vector<8x256xf32>
    %c22_168 = arith.constant 22 : index
    %c0_169 = arith.constant 0 : index
    %523 = vector.load %arg2[%c22_168, %c0_169] : memref<33x256xf32, #tpu.memory_space<vmem>>, vector<1x256xf32>
    %524 = vector.broadcast %523 : vector<1x256xf32> to vector<8x256xf32>
    %525 = arith.mulf %522, %524 : vector<8x256xf32>
    %526 = tpu.concatenate %513, %455, %519, %525 in 0 : vector<8x256xf32>, vector<8x256xf32>, vector<8x256xf32>, vector<8x256xf32> -> vector<32x256xf32>
    %cst_170 = arith.constant dense<0.000000e+00> : vector<8x256xf32>
    %527 = tpu.matmul %507, %526, %cst_170 {dimension_numbers = #tpu.dot_dimension_numbers<[1], [0], [0], [1], [0, 0, 1, 1], [], []>} : vector<8x32xf32>, vector<32x256xf32>, vector<8x256xf32> -> vector<8x256xf32>
    %c0_171 = arith.constant 0 : index
    %c2_172 = arith.constant 2 : index
    %c0_173 = arith.constant 0 : index
    %c0_174 = arith.constant 0 : index
    %528 = vector.load %arg10[%c0_171, %c2_172, %c0_173, %c0_174] : memref<1x4x8x256xf32, #tpu.memory_space<vmem>>, vector<1x1x8x256xf32>
    %529 = vector.shape_cast %528 : vector<1x1x8x256xf32> to vector<8x256xf32>
    %530 = vector.shape_cast %527 : vector<8x256xf32> to vector<1x1x8x256xf32>
    tpu.vector_store %arg10[%c0_171, %c2_172, %c0_173, %c0_174], %530 {strides = array<i32>} : memref<1x4x8x256xf32, #tpu.memory_space<vmem>>, vector<1x1x8x256xf32>,
    %c3_175 = arith.constant 3 : index
    %c0_176 = arith.constant 0 : index
    %c0_177 = arith.constant 0 : index
    %531 = vector.load %arg9[%c3_175, %c0_176, %c0_177] : memref<4x8x32xf32, #tpu.memory_space<vmem>>, vector<1x8x32xf32>
    %532 = vector.shape_cast %531 : vector<1x8x32xf32> to vector<8x32xf32>
    %533 = vector.extract_strided_slice %455 {offsets = [0, 1], sizes = [8, 255], strides = [1, 1]} : vector<8x256xf32> to vector<8x255xf32>
    %534 = vector.extract_strided_slice %455 {offsets = [0, 0], sizes = [8, 1], strides = [1, 1]} : vector<8x256xf32> to vector<8x1xf32>
    %535 = tpu.concatenate %533, %534 in 1 : vector<8x255xf32>, vector<8x1xf32> -> vector<8x256xf32>
    %c8_178 = arith.constant 8 : index
    %c0_179 = arith.constant 0 : index
    %536 = vector.load %arg2[%c8_178, %c0_179] : memref<33x256xf32, #tpu.memory_space<vmem>>, vector<1x256xf32>
    %537 = vector.broadcast %536 : vector<1x256xf32> to vector<8x256xf32>
    %538 = arith.mulf %535, %537 : vector<8x256xf32>
    %539 = vector.extract_strided_slice %455 {offsets = [0, 16], sizes = [8, 240], strides = [1, 1]} : vector<8x256xf32> to vector<8x240xf32>
    %540 = vector.extract_strided_slice %455 {offsets = [0, 0], sizes = [8, 16], strides = [1, 1]} : vector<8x256xf32> to vector<8x16xf32>
    %541 = tpu.concatenate %539, %540 in 1 : vector<8x240xf32>, vector<8x16xf32> -> vector<8x256xf32>
    %c22_180 = arith.constant 22 : index
    %c0_181 = arith.constant 0 : index
    %542 = vector.load %arg2[%c22_180, %c0_181] : memref<33x256xf32, #tpu.memory_space<vmem>>, vector<1x256xf32>
    %543 = vector.broadcast %542 : vector<1x256xf32> to vector<8x256xf32>
    %544 = arith.mulf %541, %543 : vector<8x256xf32>
    %545 = vector.extract_strided_slice %455 {offsets = [0, 17], sizes = [8, 239], strides = [1, 1]} : vector<8x256xf32> to vector<8x239xf32>
    %546 = vector.extract_strided_slice %455 {offsets = [0, 0], sizes = [8, 17], strides = [1, 1]} : vector<8x256xf32> to vector<8x17xf32>
    %547 = tpu.concatenate %545, %546 in 1 : vector<8x239xf32>, vector<8x17xf32> -> vector<8x256xf32>
    %c32_182 = arith.constant 32 : index
    %c0_183 = arith.constant 0 : index
    %548 = vector.load %arg2[%c32_182, %c0_183] : memref<33x256xf32, #tpu.memory_space<vmem>>, vector<1x256xf32>
    %549 = vector.broadcast %548 : vector<1x256xf32> to vector<8x256xf32>
    %550 = arith.mulf %547, %549 : vector<8x256xf32>
    %551 = tpu.concatenate %455, %538, %544, %550 in 0 : vector<8x256xf32>, vector<8x256xf32>, vector<8x256xf32>, vector<8x256xf32> -> vector<32x256xf32>
    %cst_184 = arith.constant dense<0.000000e+00> : vector<8x256xf32>
    %552 = tpu.matmul %532, %551, %cst_184 {dimension_numbers = #tpu.dot_dimension_numbers<[1], [0], [0], [1], [0, 0, 1, 1], [], []>} : vector<8x32xf32>, vector<32x256xf32>, vector<8x256xf32> -> vector<8x256xf32>
    %c0_185 = arith.constant 0 : index
    %c3_186 = arith.constant 3 : index
    %c0_187 = arith.constant 0 : index
    %c0_188 = arith.constant 0 : index
    %553 = vector.load %arg10[%c0_185, %c3_186, %c0_187, %c0_188] : memref<1x4x8x256xf32, #tpu.memory_space<vmem>>, vector<1x1x8x256xf32>
    %554 = vector.shape_cast %553 : vector<1x1x8x256xf32> to vector<8x256xf32>
    %555 = vector.shape_cast %552 : vector<8x256xf32> to vector<1x1x8x256xf32>
    tpu.vector_store %arg10[%c0_185, %c3_186, %c0_187, %c0_188], %555 {strides = array<i32>} : memref<1x4x8x256xf32, #tpu.memory_space<vmem>>, vector<1x1x8x256xf32>,
    return
  }
  func.func @transform_0(%arg0: i32) -> (i32, i32, i32) {
    %c0_i32 = arith.constant 0 : i32
    %c0_i32_0 = arith.constant 0 : i32
    %c0_i32_1 = arith.constant 0 : i32
    return %arg0, %c0_i32, %c0_i32_0 : i32, i32, i32
  }
  func.func @transform_1(%arg0: i32) -> (i32, i32) {
    %c0_i32 = arith.constant 0 : i32
    %c0_i32_0 = arith.constant 0 : i32
    %c0_i32_1 = arith.constant 0 : i32
    return %c0_i32, %c0_i32_0 : i32, i32
  }
  func.func @transform_2(%arg0: i32) -> (i32, i32) {
    %c0_i32 = arith.constant 0 : i32
    %c0_i32_0 = arith.constant 0 : i32
    %c0_i32_1 = arith.constant 0 : i32
    return %c0_i32, %c0_i32_0 : i32, i32
  }
  func.func @transform_3(%arg0: i32) -> (i32, i32) {
    %c0_i32 = arith.constant 0 : i32
    %c0_i32_0 = arith.constant 0 : i32
    %c0_i32_1 = arith.constant 0 : i32
    return %c0_i32, %c0_i32_0 : i32, i32
  }
  func.func @transform_4(%arg0: i32) -> (i32, i32) {
    %c0_i32 = arith.constant 0 : i32
    %c0_i32_0 = arith.constant 0 : i32
    %c0_i32_1 = arith.constant 0 : i32
    return %c0_i32, %c0_i32_0 : i32, i32
  }
  func.func @transform_5(%arg0: i32) -> (i32, i32) {
    %c0_i32 = arith.constant 0 : i32
    %c0_i32_0 = arith.constant 0 : i32
    %c0_i32_1 = arith.constant 0 : i32
    return %c0_i32, %c0_i32_0 : i32, i32
  }
  func.func @transform_6(%arg0: i32) -> (i32, i32) {
    %c0_i32 = arith.constant 0 : i32
    %c0_i32_0 = arith.constant 0 : i32
    %c0_i32_1 = arith.constant 0 : i32
    return %c0_i32, %c0_i32_0 : i32, i32
  }
  func.func @transform_7(%arg0: i32) -> (i32, i32) {
    %c0_i32 = arith.constant 0 : i32
    %c0_i32_0 = arith.constant 0 : i32
    %c0_i32_1 = arith.constant 0 : i32
    return %c0_i32, %c0_i32_0 : i32, i32
  }
  func.func @transform_8(%arg0: i32) -> (i32, i32, i32) {
    %c0_i32 = arith.constant 0 : i32
    %c0_i32_0 = arith.constant 0 : i32
    %c0_i32_1 = arith.constant 0 : i32
    %c0_i32_2 = arith.constant 0 : i32
    return %c0_i32, %c0_i32_0, %c0_i32_1 : i32, i32, i32
  }
  func.func @transform_9(%arg0: i32) -> (i32, i32, i32, i32) {
    %c0_i32 = arith.constant 0 : i32
    %c0_i32_0 = arith.constant 0 : i32
    %c0_i32_1 = arith.constant 0 : i32
    %c0_i32_2 = arith.constant 0 : i32
    return %arg0, %c0_i32, %c0_i32_0, %c0_i32_1 : i32, i32, i32, i32
  }
}

</mosaic_0001>

<bundles_post_ra>
// kernel: _lambda_.1
= control target key start
LH: loop header
LB: loop body
LE: loop exit
PB: predicated region body
PF: predicated region fallthrough
CT: control target
= control target key end

     0   :  { %s2124_s30 = smov 0   ;;  %s3208_s0 = inlined_call_operand.vmem [shape: f32[2,8,256], index: 0, kind: input, shape index: {}]   ;;  %s3209_s1 = inlined_call_operand.vmem [shape: f32[33,256], index: 1, kind: input, shape index: {}]   ;;  %s3210_s2 = inlined_call_operand.vmem [shape: f32[8,120], index: 2, kind: input, shape index: {}]   ;;  %s3211_s3 = inlined_call_operand.vmem [shape: f32[8,120], index: 3, kind: input, shape index: {}]   ;;  %s3212_s4 = inlined_call_operand.vmem [shape: f32[8,120], index: 4, kind: input, shape index: {}]   ;;  %s3213_s5 = inlined_call_operand.vmem [shape: f32[8,120], index: 5, kind: input, shape index: {}]   ;;  %s3214_s6 = inlined_call_operand.vmem [shape: f32[8,72], index: 6, kind: input, shape index: {}]   ;;  %s3215_s7 = inlined_call_operand.vmem [shape: f32[8,72], index: 7, kind: input, shape index: {}]   ;;  %s3216_s8 = inlined_call_operand.vmem [shape: f32[4,8,32], index: 8, kind: input, shape index: {}]   ;;  %s3217_s9 = inlined_call_operand.vmem [shape: f32[2,4,8,256], index: 9, kind: output, shape index: {}]  }
   0x1 LB: > { %s1926_s10 = sadd.s32 4294967295, %s2047_s30   ;;  %p1930_p0 = scmp.ge.s32.totalorder %s2047_s30, 1  ;;  %s2047_s30 = sphi %s2124_s30, %s19_s30  }
   0x2   : > { %p287_p1 = scmp.lt.s32.totalorder %s2047_s30, 3 }
   0x4   : > { %p288_p2 = pnand %p1930_p0, %p287_p1 }
   0x5   : > { %p323_p3 = scmp.lt.s32.totalorder (!%p288_p2), %s1926_s10, 1  ;;  %s2049_s15 = smov (!%p288_p2), 16  }
   0x6   : > { %291 = sbr.rel (%p288_p2) target bundleno = 1588 (0x634), region = 56  ;;  %s2050_s16 = smov (!%p288_p2), 121  }
   0x7   : > { %s2051_s17 = smov (!%p288_p2), 122   ;;  %s2052_s18 = smov (!%p288_p2), 32  }
   0x8   : > { %s2053_s19 = smov (!%p288_p2), 123   ;;  %s2054_s20 = smov (!%p288_p2), 48  }
   0x9   : > { %s2055_s21 = smov (!%p288_p2), 124   ;;  %s2056_s22 = smov (!%p288_p2), 64  }
   0xa   : > { %s2057_s23 = smov (!%p288_p2), 125   ;;  %s2058_s24 = smov (!%p288_p2), 80  }
   0xb   : > { %s3344_s10 = smov (!%p323_p3, %s1926_s10), 1  ;;  %s2059_s25 = smov 126   ;;  %v2229_v8 = vld [vmem:[%s3209_s1 + $0x16] ss:$8 sm:$0x3]  ;;  %vm569_vm0 = vcmask 998400  }
   0xc   : > { %s2006_s11 = sshll.u32 %s3344_s10, 4  ;;  %s2060_s26 = smov 96   ;;  %v2234_v9 = vld [vmem:[%s3209_s1 + $0x34] ss:$8 sm:$0x3]  ;;  %vm588_vm1 = vcmask 990208  }
   0xd   : > { %s327_s14 = scalar_lea.vmem %s3208_s0, %s2006_s11  ;;  %s3228_s27 = smov 127   ;;  %v3245_v10 = vperm.slane %v2229_v8, 0  ;;  %v2240_v11 = vld [vmem:[%s3209_s1 + $0x15] ss:$8 sm:$0x3]  ;;  %v3244_v12 = vperm.slane %v2229_v8, 1 }
   0xe   : > { %v2138_v0 = vld [vmem:[%s327_s14 + $0x8] sm:$0xff]  ;;  %v2140_v1 = vld [vmem:[%s327_s14] sm:$0xff]  ;;  %s2062_s28 = smov 112   ;;  %s3226_s29 = smov 1   ;;  %vm769_vm2 = vcmask 130048   ;;  %v840_v13 = vperm.slane %v2234_v9, 0 }
   0xf   : > { %913 = vrot.lane.b32.xlu1 %v2138_v0, %s2049_s15  ;;  %584 = vrot.lane.b32.xlu0 %v2140_v1, %s2050_s16  ;;  %s3218_s11 = smov 2   ;;  %s3220_s12 = smov 3   ;;  %v841_v14 = vperm.slane %v2234_v9, 1  ;;  %v3243_v19 = vperm.slane %v2240_v11, 0  ;;  %v3242_v20 = vperm.slane %v2240_v11, 1  ;;  %vm750_vm3 = vcmask 261120  }
  0x10   : > { %565 = vrot.lane.b32.xlu2 %v2140_v1, %s2051_s17  ;;  %s3224_s13 = smov 4   ;;  %s3222_s14 = smov 5   ;;  %v2270_v29 = vld [vmem:[%s3209_s1 + $0x33] ss:$8 sm:$0x3]  ;;  %vm550_vm4 = vcmask 1006592  }
  0x11   : > { %v831_v33 = vperm.slane %v2270_v29, 0  ;;  %v832_v34 = vperm.slane %v2270_v29, 1  ;;  %v2295_v41 = vld [vmem:[%s3209_s1 + $0x14] ss:$8 sm:$0x3]  ;;  %vm731_vm5 = vcmask 392192  }
  0x12   : > { %v2300_v42 = vld [vmem:[%s3209_s1 + $0x32] ss:$8 sm:$0x3]  ;;  %v3241_v44 = vperm.slane %v2295_v41, 0  ;;  %v3240_v45 = vperm.slane %v2295_v41, 1  ;;  %vm531_vm6 = vcmask 1014784  }
  0x13   : > { %v822_v46 = vperm.slane %v2300_v42, 0  ;;  %v823_v47 = vperm.slane %v2300_v42, 1  ;;  %v2327_v58 = vld [vmem:[%s3209_s1 + $0x13] ss:$8 sm:$0x3]  ;;  %vm712_vm7 = vcmask 523264  }
  0x14   : > { %v3239_v59 = vperm.slane %v2327_v58, 0  ;;  %v3238_v60 = vperm.slane %v2327_v58, 1  ;;  %vm512_vm8 = vcmask 1022976   ;;  %vm693_vm9 = vcmask 654336  }
  0x15   : > { %vm493_vm10 = vcmask 1031168   ;;  %vm674_vm11 = vcmask 785408   ;;  %vm3262_vm12 = vcmask 1039360   ;;  %vm655_vm13 = vcmask 916480  }
  0x16   : > { %vm3253_vm14 = vcmask 7168   ;;  %vm3251_vm15 = vcmask 15360  }
  0x17   : > { %916 = vrot.lane.b32.xlu1 %v2140_v1, %s2049_s15  ;;  %586 = vrot.lane.b32.xlu0 %v2138_v0, %s2050_s16 }
  0x18   : > { %567 = vrot.lane.b32.xlu2 %v2138_v0, %s2051_s17 }
  0x1f   : > { %905 = vrot.lane.b32.xlu1 %v2140_v1, %s2052_s18  ;;  %902 = vrot.lane.b32.xlu0 %v2138_v0, %s2052_s18 }
  0x20   : > { %546 = vrot.lane.b32.xlu2 %v2140_v1, %s2053_s19 }
  0x27   : > { %891 = vrot.lane.b32.xlu1 %v2138_v0, %s2054_s20  ;;  %548 = vrot.lane.b32.xlu0 %v2138_v0, %s2053_s19 }
  0x28   : > { %894 = vrot.lane.b32.xlu2 %v2140_v1, %s2054_s20 }
  0x2f   : > { %529 = vrot.lane.b32.xlu1 %v2138_v0, %s2055_s21  ;;  %527 = vrot.lane.b32.xlu0 %v2140_v1, %s2055_s21 }
  0x30   : > { %880 = vrot.lane.b32.xlu2 %v2138_v0, %s2056_s22 }
  0x37   : > { %508 = vrot.lane.b32.xlu1 %v2140_v1, %s2057_s23  ;;  %883 = vrot.lane.b32.xlu0 %v2140_v1, %s2056_s22 }
  0x38   : > { %510 = vrot.lane.b32.xlu2 %v2138_v0, %s2057_s23 }
  0x3f   : > { %872 = vrot.lane.b32.xlu1 %v2140_v1, %s2058_s24  ;;  %869 = vrot.lane.b32.xlu0 %v2138_v0, %s2058_s24 }
  0x40   : > { %489 = vrot.lane.b32.xlu2 %v2140_v1, %s2059_s25 }
  0x47   : > { %858 = vrot.lane.b32.xlu1 %v2138_v0, %s2060_s26  ;;  %491 = vrot.lane.b32.xlu0 %v2138_v0, %s2059_s25 }
  0x48   : > { %861 = vrot.lane.b32.xlu2 %v2140_v1, %s2060_s26 }
  0x4f   : > { %472 = vrot.lane.b32.xlu1 %v2138_v0, %s3228_s27  ;;  %470 = vrot.lane.b32.xlu0 %v2140_v1, %s3228_s27 }
  0x50   : > { %847 = vrot.lane.b32.xlu2 %v2138_v0, %s2062_s28 }
  0x57   : > { %451 = vrot.lane.b32.xlu1 %v2138_v0, %s3226_s29  ;;  %850 = vrot.lane.b32.xlu0 %v2140_v1, %s2062_s28 }
  0x58   : > { %454 = vrot.lane.b32.xlu2 %v2140_v1, %s3226_s29  ;;  %s2070_s29 = smov 111  }
  0x5f   : > { %435 = vrot.lane.b32.xlu1 %v2140_v1, %s3218_s11  ;;  %432 = vrot.lane.b32.xlu0 %v2138_v0, %s3218_s11  ;;  %s3230_s11 = smov 6  }
  0x60   : > { %413 = vrot.lane.b32.xlu2 %v2138_v0, %s3220_s12 }
  0x67   : > { %394 = vrot.lane.b32.xlu1 %v2138_v0, %s3224_s13  ;;  %416 = vrot.lane.b32.xlu0 %v2140_v1, %s3220_s12  ;;  %s3232_s12 = smov 7  }
  0x68   : > { %397 = vrot.lane.b32.xlu2 %v2140_v1, %s3224_s13  ;;  %s2073_s13 = smov 17  }
  0x6a   : > { %v566_v2 = vpop.permute.xlu2 %565 }
  0x6f   : > { %378 = vrot.lane.b32.xlu1 %v2140_v1, %s3222_s14  ;;  %375 = vrot.lane.b32.xlu0 %v2138_v0, %s3222_s14 }
  0x70   : > { %356 = vrot.lane.b32.xlu2 %v2138_v0, %s3230_s11 }
  0x72   : > { %v568_v3 = vpop.permute.xlu2 %567 }
  0x73   : > { %v570_v15 = vsel %vm569_vm0, %v566_v2, %v568_v3  ;;  %v574_v16 = vsel %vm569_vm0, %v568_v3, %v566_v2 }
  0x74   : > { %v582_v31 = vmul.f32 %v3243_v19, %v570_v15  ;;  %v583_v32 = vmul.f32 %v3242_v20, %v574_v16 }
  0x77   : > { %359 = vrot.lane.b32.xlu0 %v2140_v1, %s3230_s11  ;;  %337 = vrot.lane.b32.xlu1 %v2138_v0, %s3232_s12  ;;  %s2071_s11 = smov 113  }
  0x78   : > { %341 = vrot.lane.b32.xlu2 %v2140_v1, %s3232_s12  ;;  %s2072_s12 = smov 15  }
  0x7a   : > { %v547_v4 = vpop.permute.xlu2 %546 }
  0x81   : > { %v914_v5 = vpop.permute.xlu1 %913  ;;  %v585_v6 = vpop.permute.xlu0 %584 }
  0x82   : > { %v895_v7 = vpop.permute.xlu2 %894 }
  0x89   : > { %v917_v17 = vpop.permute.xlu1 %916  ;;  %v587_v18 = vpop.permute.xlu0 %586 }
  0x8a   : > { %v589_v21 = vsel %vm588_vm1, %v585_v6, %v587_v18  ;;  %v593_v22 = vsel %vm588_vm1, %v587_v18, %v585_v6  ;;  %v2252_v23 = vsel %vm769_vm2, %v917_v17, %v914_v5  ;;  %v2255_v24 = vsel %vm769_vm2, %v914_v5, %v917_v17  ;;  %v2272_v30 = vpop.permute.xlu2 %880  ;;  %v2340_v6 = vld [vmem:[%s3209_s1 + $0x31] ss:$8 sm:$0x3] }
  0x8b   : > { %v601_v25 = vmul.f32 %v3245_v10, %v589_v21  ;;  %v602_v26 = vmul.f32 %v3244_v12, %v593_v22  ;;  %v936_v27 = vmul.f32 %v2252_v23, %v840_v13  ;;  %v937_v28 = vmul.f32 %v2255_v24, %v841_v14 }
  0x8c   : > { %v813_v15 = vperm.slane %v2340_v6, 0  ;;  %v814_v16 = vperm.slane %v2340_v6, 1 }
  0x8d   : > { %608 = vmatpush.msra.mxu0 %v601_v25  ;;  %628 = vmatpush.msra.mxu1 %v602_v26 }
  0x8e   : > { %942 = vmatpush.msra.mxu2 %v936_v27  ;;  %962 = vmatpush.msra.mxu3 %v937_v28 }
  0x8f   : > { %609 = vmatpush.msra.mxu0 %v582_v31  ;;  %629 = vmatpush.msra.mxu1 %v583_v32 }
  0x91   : > { %v906_v35 = vpop.permute.xlu1 %905  ;;  %v903_v36 = vpop.permute.xlu0 %902 }
  0x92   : > { %v2281_v37 = vsel %vm750_vm3, %v906_v35, %v903_v36  ;;  %v2284_v38 = vsel %vm750_vm3, %v903_v36, %v906_v35  ;;  %v511_v43 = vpop.permute.xlu2 %510 }
  0x93   : > { %v934_v39 = vmul.f32 %v2281_v37, %v831_v33  ;;  %v935_v40 = vmul.f32 %v2284_v38, %v832_v34 }
  0x95   : > { %943 = vmatpush.msra.mxu2 %v934_v39  ;;  %963 = vmatpush.msra.mxu3 %v935_v40  ;;  %v2374_v39 = vld [vmem:[%s3209_s1 + $0x30] ss:$8 sm:$0x3] }
  0x96   : > { %v804_v40 = vperm.slane %v2374_v39, 0 }
  0x99   : > { %v892_v48 = vpop.permute.xlu1 %891  ;;  %v549_v49 = vpop.permute.xlu0 %548 }
  0x9a   : > { %v551_v50 = vsel %vm550_vm4, %v547_v4, %v549_v49  ;;  %v555_v51 = vsel %vm550_vm4, %v549_v49, %v547_v4  ;;  %v2309_v52 = vsel %vm731_vm5, %v895_v7, %v892_v48  ;;  %v2312_v53 = vsel %vm731_vm5, %v892_v48, %v895_v7  ;;  %v490_v61 = vpop.permute.xlu2 %489  ;;  %v2345_v7 = vld [vmem:[%s3209_s1 + $0x12] ss:$8 sm:$0x3] }
  0x9b   : > { %v563_v54 = vmul.f32 %v3241_v44, %v551_v50  ;;  %v564_v55 = vmul.f32 %v3240_v45, %v555_v51  ;;  %v932_v56 = vmul.f32 %v2309_v52, %v822_v46  ;;  %v933_v57 = vmul.f32 %v2312_v53, %v823_v47  ;;  %v2487_v44 = vld [vmem:[%s3209_s1 + $0x23] ss:$8 sm:$0x3] }
  0x9c   : > { %v3237_v17 = vperm.slane %v2345_v7, 0  ;;  %v3236_v18 = vperm.slane %v2345_v7, 1 }
  0x9d   : > { %610 = vmatpush.msra.mxu0 %v563_v54  ;;  %630 = vmatpush.msra.mxu1 %v564_v55 }
  0x9e   : > { %944 = vmatpush.msra.mxu2 %v932_v56  ;;  %964 = vmatpush.msra.mxu3 %v933_v57  ;;  %v2393_v56 = vld [vmem:[%s3209_s1 + $0x11] ss:$8 sm:$0x3]  ;;  %v2398_v57 = vld [vmem:[%s3209_s1 + $0x27] ss:$8 sm:$0x3] }
  0xa1   : > { %v530_v62 = vpop.permute.xlu1 %529  ;;  %v528_v63 = vpop.permute.xlu0 %527 }
  0xa2   : > { %v532_v2 = vsel %vm531_vm6, %v528_v63, %v530_v62  ;;  %v536_v3 = vsel %vm531_vm6, %v530_v62, %v528_v63  ;;  %v862_v31 = vpop.permute.xlu2 %861  ;;  %v3235_v63 = vperm.slane %v2393_v56, 0 }
  0xa3   : > { %v544_v4 = vmul.f32 %v3239_v59, %v532_v2  ;;  %v545_v5 = vmul.f32 %v3238_v60, %v536_v3  ;;  %v3234_v2 = vperm.slane %v2393_v56, 1  ;;  %v3247_v3 = vperm.slane %v2398_v57, 0 }
  0xa5   : > { %611 = vmatpush.msra.mxu0 %v544_v4  ;;  %631 = vmatpush.msra.mxu1 %v545_v5  ;;  %v3246_v4 = vperm.slane %v2398_v57, 1 }
  0xa9   : > { %v509_v21 = vpop.permute.xlu1 %508  ;;  %v884_v22 = vpop.permute.xlu0 %883 }
  0xaa   : > { %v2353_v25 = vsel %vm712_vm7, %v884_v22, %v2272_v30  ;;  %v2357_v26 = vsel %vm712_vm7, %v2272_v30, %v884_v22  ;;  %v513_v27 = vsel %vm512_vm8, %v509_v21, %v511_v43  ;;  %v517_v28 = vsel %vm512_vm8, %v511_v43, %v509_v21  ;;  %v848_v62 = vpop.permute.xlu2 %847 }
  0xab   : > { %v930_v32 = vmul.f32 %v2353_v25, %v813_v15  ;;  %v931_v35 = vmul.f32 %v2357_v26, %v814_v16  ;;  %v525_v36 = vmul.f32 %v3237_v17, %v513_v27  ;;  %v526_v30 = vmul.f32 %v3236_v18, %v517_v28 }
  0xac   : > { %v805_v43 = vperm.slane %v2374_v39, 1 }
  0xad   : > { %945 = vmatpush.msra.mxu2 %v930_v32  ;;  %965 = vmatpush.msra.mxu3 %v931_v35 }
  0xae   : > { %612 = vmatpush.msra.mxu0 %v525_v36  ;;  %632 = vmatpush.msra.mxu1 %v526_v30 }
  0xb1   : > { %v873_v48 = vpop.permute.xlu1 %872  ;;  %v870_v49 = vpop.permute.xlu0 %869 }
  0xb2   : > { %v2379_v50 = vsel %vm693_vm9, %v873_v48, %v870_v49  ;;  %v2382_v51 = vsel %vm693_vm9, %v870_v49, %v873_v48  ;;  %v1941_v48 = vld [vmem:[%s3209_s1 + $0x10] ss:$8 sm:$0x3] }
  0xb3   : > { %v928_v54 = vmul.f32 %v2379_v50, %v804_v40  ;;  %v929_v55 = vmul.f32 %v2382_v51, %v805_v43  ;;  %v2425_v49 = vperm.slane %v1941_v48, 0 }
  0xb5   : > { %946 = vmatpush.msra.mxu2 %v928_v54  ;;  %966 = vmatpush.msra.mxu3 %v929_v55  ;;  %v2427_v54 = vperm.slane %v1941_v48, 1 }
  0xb9   : > { %v859_v5 = vpop.permute.xlu1 %858  ;;  %v492_v21 = vpop.permute.xlu0 %491 }
  0xba   : > { %v494_v22 = vsel %vm493_vm10, %v490_v61, %v492_v21  ;;  %v498_v27 = vsel %vm493_vm10, %v492_v21, %v490_v61  ;;  %v2407_v28 = vsel %vm674_vm11, %v862_v31, %v859_v5  ;;  %v2410_v32 = vsel %vm674_vm11, %v859_v5, %v862_v31  ;;  %v455_v31 = vpop.permute.xlu2 %454 }
  0xbb   : > { %v506_v35 = vmul.f32 %v3235_v63, %v494_v22  ;;  %v507_v36 = vmul.f32 %v3234_v2, %v498_v27  ;;  %v926_v30 = vmul.f32 %v2407_v28, %v3247_v3  ;;  %v927_v61 = vmul.f32 %v2410_v32, %v3246_v4 }
  0xbd   : > { %613 = vmatpush.msra.mxu0 %v506_v35  ;;  %633 = vmatpush.msra.mxu1 %v507_v36  ;;  %v1957_v35 = vld [vmem:[%s3209_s1 + $0x26] ss:$8 sm:$0x3] }
  0xbe   : > { %947 = vmatpush.msra.mxu2 %v926_v30  ;;  %967 = vmatpush.msra.mxu3 %v927_v61  ;;  %v1940_v36 = vld [vmem:[%s3209_s1 + $0x6] ss:$8 sm:$0x3]  ;;  %v1956_v30 = vld [vmem:[%s3209_s1 + $0x25] ss:$8 sm:$0x3] }
  0xbf   : > { %v2444_v61 = vperm.slane %v1957_v35, 0  ;;  %v2446_v48 = vperm.slane %v1957_v35, 1  ;;  %v2456_v63 = vperm.slane %v1956_v30, 1 }
  0xc1   : > { %v473_v55 = vpop.permute.xlu1 %472  ;;  %v471_v5 = vpop.permute.xlu0 %470 }
  0xc2   : > { %v475_v21 = vsel %vm3262_vm12, %v471_v5, %v473_v55  ;;  %v479_v22 = vsel %vm3262_vm12, %v473_v55, %v471_v5  ;;  %v2448_v55 = vperm.slane %v1940_v36, 0  ;;  %v2450_v5 = vperm.slane %v1940_v36, 1  ;;  %v2469_v36 = vld [vmem:[%s3209_s1 + $0x24] ss:$8 sm:$0x3] }
  0xc3   : > { %v487_v27 = vmul.f32 %v2425_v49, %v475_v21  ;;  %v488_v2 = vmul.f32 %v2427_v54, %v479_v22  ;;  %v2452_v21 = vpop.permute.xlu2 %413  ;;  %vm361_vm12 = vcmask 48128  }
  0xc5   : > { %614 = vmatpush.msra.mxu0 %v487_v27  ;;  %634 = vmatpush.msra.mxu1 %v488_v2  ;;  %v2454_v27 = vperm.slane %v1956_v30, 0 }
  0xc7   : > { %615 = vmatpush.msra.mxu0 %v2140_v1  ;;  %635 = vmatpush.msra.mxu1 %v2138_v0 }
  0xc9   : > { %v452_v2 = vpop.permute.xlu1 %451  ;;  %v851_v22 = vpop.permute.xlu0 %850 }
  0xca   : > { %v2459_v18 = vsel %vm655_vm13, %v851_v22, %v848_v62  ;;  %v2462_v17 = vsel %vm655_vm13, %v848_v62, %v851_v22  ;;  %v457_v35 = vsel %vm3253_vm14, %v455_v31, %v452_v2  ;;  %v460_v60 = vsel %vm3253_vm14, %v452_v2, %v455_v31  ;;  %v2480_v22 = vld [vmem:[%s3209_s1 + $0x5] ss:$8 sm:$0x3] }
  0xcb   : > { %v924_v59 = vmul.f32 %v2459_v18, %v2444_v61  ;;  %v925_v30 = vmul.f32 %v2462_v17, %v2446_v48  ;;  %v468_v45 = vmul.f32 %v2448_v55, %v460_v60  ;;  %v469_v62 = vmul.f32 %v2450_v5, %v457_v35 }
  0xcc   : > { %v3257_v31 = vperm.slane %v2469_v36, 0  ;;  %v3248_v2 = vperm.slane %v2469_v36, 1  ;;  %v922_v60 = vmul.f32 %v2255_v24, %v2454_v27  ;;  %v3250_v35 = vperm.slane %v2480_v22, 0 }
  0xcd   : > { %948 = vmatpush.msra.mxu2 %v924_v59  ;;  %968 = vmatpush.msra.mxu3 %v925_v30  ;;  %v923_v59 = vmul.f32 %v2252_v23, %v2456_v63  ;;  %v3249_v30 = vperm.slane %v2480_v22, 1  ;;  %v3252_v24 = vperm.slane %v2487_v44, 1  ;;  %vm3261_vm14 = vcmask 31744  }
  0xce   : > { %616 = vmatpush.msra.mxu0 %v468_v45  ;;  %636 = vmatpush.msra.mxu1 %v469_v62  ;;  %v2500_v45 = vld [vmem:[%s3209_s1 + $0x22] ss:$8 sm:$0x3]  ;;  %v3254_v62 = vperm.slane %v2487_v44, 0  ;;  %v911_v20 = vmul.f32 %v2284_v38, %v3257_v31  ;;  %v912_v19 = vmul.f32 %v2281_v37, %v3248_v2 }
  0xcf   : > { %949 = vmatpush.msra.mxu2 %v2140_v1  ;;  %969 = vmatpush.msra.mxu3 %v2138_v0  ;;  %v2507_v0 = vld [vmem:[%s3209_s1 + $0x21] ss:$8 sm:$0x3]  ;;  %v3256_v4 = vperm.slane %v2500_v45, 0  ;;  %v3255_v3 = vperm.slane %v2500_v45, 1 }
  0xd0   : > { %v2533_v2 = vld [vmem:[%s3209_s1 + $0x17] ss:$8 sm:$0x3] }
  0xd1   : > { %v436_v1 = vpop.permute.xlu1 %435  ;;  %950 = vmatpush.msra.mxu2 %v922_v60  ;;  %970 = vmatpush.msra.mxu3 %v923_v59  ;;  %v433_v23 = vpop.permute.xlu0 %432  ;;  %v2522_v60 = vld [vmem:[%s3209_s1 + $0x20] ss:$8 sm:$0x3]  ;;  %v3259_v59 = vperm.slane %v2507_v0, 0 }
  0xd2   : > { %v438_v12 = vsel %vm3251_vm15, %v436_v1, %v433_v23  ;;  %v441_v10 = vsel %vm3251_vm15, %v433_v23, %v436_v1  ;;  %v3258_v1 = vperm.slane %v2507_v0, 1  ;;  %v398_v23 = vpop.permute.xlu2 %397  ;;  %vm3260_vm15 = vcmask 23552  }
  0xd3   : > { %951 = vmatpush.msra.mxu2 %v911_v20  ;;  %971 = vmatpush.msra.mxu3 %v912_v19  ;;  %v449_v38 = vmul.f32 %v3250_v35, %v441_v10  ;;  %v450_v37 = vmul.f32 %v3249_v30, %v438_v12  ;;  %v900_v19 = vmul.f32 %v2312_v53, %v3254_v62  ;;  %v2544_v12 = vld [vmem:[%s3209_s1 + $0x4] ss:$8 sm:$0x3]  ;;  %v2549_v20 = vld [vmem:[%s3209_s1 + $0x3] ss:$8 sm:$0x3] }
  0xd4   : > { %v901_v10 = vmul.f32 %v2309_v52, %v3252_v24  ;;  %v682_v30 = vperm.slane %v2522_v60, 0  ;;  %v683_v53 = vperm.slane %v2522_v60, 1  ;;  %v889_v52 = vmul.f32 %v2357_v26, %v3256_v4 }
  0xd5   : > { %617 = vmatpush.msra.mxu0 %v449_v38  ;;  %637 = vmatpush.msra.mxu1 %v450_v37  ;;  %v890_v35 = vmul.f32 %v2353_v25, %v3255_v3  ;;  %v3275_v24 = vperm.slane %v2533_v2, 0  ;;  %v3273_v38 = vperm.slane %v2544_v12, 0  ;;  %v3272_v37 = vperm.slane %v2544_v12, 1 }
  0xd6   : > { %952 = vmatpush.msra.mxu2 %v900_v19  ;;  %972 = vmatpush.msra.mxu3 %v901_v10  ;;  %v3266_v62 = vperm.slane %v2549_v20, 1  ;;  %v878_v26 = vmul.f32 %v2382_v51, %v3259_v59  ;;  %v879_v25 = vmul.f32 %v2379_v50, %v3258_v1  ;;  %v3274_v19 = vperm.slane %v2533_v2, 1 }
  0xd7   : > { %v3267_v10 = vperm.slane %v2549_v20, 0  ;;  %v867_v31 = vmul.f32 %v2410_v32, %v682_v30 }
  0xd8   : > { %953 = vmatpush.msra.mxu2 %v889_v52  ;;  %973 = vmatpush.msra.mxu3 %v890_v35  ;;  %v868_v35 = vmul.f32 %v2407_v28, %v683_v53 }
  0xd9   : > { %v395_v3 = vpop.permute.xlu1 %394  ;;  %v417_v4 = vpop.permute.xlu0 %416 }
  0xda   : > { %954 = vmatpush.msra.mxu2 %v878_v26  ;;  %974 = vmatpush.msra.mxu3 %v879_v25  ;;  %v419_v51 = vsel %vm3260_vm15, %v417_v4, %v2452_v21  ;;  %v422_v50 = vsel %vm3260_vm15, %v2452_v21, %v417_v4  ;;  %v400_v52 = vsel %vm3261_vm14, %v398_v23, %v395_v3  ;;  %v2600_v21 = vld [vmem:[%s3209_s1 + $0x2] ss:$8 sm:$0x3]  ;;  %vm3263_vm15 = vcmask 39936  }
  0xdb   : > { %v403_v1 = vsel %vm3261_vm14, %v395_v3, %v398_v23  ;;  %v430_v59 = vmul.f32 %v3273_v38, %v422_v50  ;;  %v431_v32 = vmul.f32 %v3272_v37, %v419_v51  ;;  %v412_v28 = vmul.f32 %v3266_v62, %v400_v52  ;;  %v846_v23 = vld [vmem:[%s3212_s4] sm:$0xff] }
  0xdc   : > { %955 = vmatpush.msra.mxu2 %v867_v31  ;;  %975 = vmatpush.msra.mxu3 %v868_v35  ;;  %v856_v26 = vmul.f32 %v2462_v17, %v3275_v24  ;;  %v857_v4 = vmul.f32 %v2459_v18, %v3274_v19  ;;  %v411_v3 = vmul.f32 %v3267_v10, %v403_v1  ;;  %v357_v31 = vpop.permute.xlu2 %356  ;;  %v3265_v17 = vperm.slane %v2600_v21, 0  ;;  %v2618_v52 = vld [vmem:[%s3209_s1 + $0x1] ss:$8 sm:$0x3] }
  0xdd   : > { %618 = vmatpush.msra.mxu0 %v430_v59  ;;  %638 = vmatpush.msra.mxu1 %v431_v32  ;;  %v3264_v18 = vperm.slane %v2600_v21, 1  ;;  %vm603_vm14 = vcmask 982016   ;;  %v2623_v32 = vld [vmem:[%s3209_s1] ss:$8 sm:$0x3] }
  0xde   : > { %956 = vmatpush.msra.mxu2 %v856_v26  ;;  %976 = vmatpush.msra.mxu3 %v857_v4  ;;  %v3271_v26 = vperm.slane %v2618_v52, 0  ;;  %v3270_v4 = vperm.slane %v2618_v52, 1 }
  0xdf   : > { %619 = vmatpush.msra.mxu0 %v411_v3  ;;  %639 = vmatpush.msra.mxu1 %v412_v28  ;;  %v3269_v3 = vperm.slane %v2623_v32, 0 }
  0xe0   : > { %1964 = vmatmul.msk.f32.vlgmr.msra.gmra.mxu2 %vm603_vm14, %v846_v23  ;;  %1965 = vmatmul.msk.f32.vlgmr.msra.gmra.mxu3 %vm603_vm14, %v846_v23  ;;  %v3268_v23 = vperm.slane %v2623_v32, 1 }
  0xe1   : > { %v379_v59 = vpop.permute.xlu1 %378  ;;  %v376_v1 = vpop.permute.xlu0 %375 }
  0xe2   : > { %v381_v25 = vsel %vm3263_vm15, %v379_v59, %v376_v1  ;;  %v384_v35 = vsel %vm3263_vm15, %v376_v1, %v379_v59  ;;  %vm343_vm15 = vcmask 56320  }
  0xe3   : > { %v392_v51 = vmul.f32 %v3265_v17, %v384_v35  ;;  %v393_v50 = vmul.f32 %v3264_v18, %v381_v25 }
  0xe4   : > { %v342_v28 = vpop.permute.xlu2 %341 }
  0xe5   : > { %620 = vmatpush.msra.mxu0 %v392_v51  ;;  %640 = vmatpush.msra.mxu1 %v393_v50 }
  0xe9   : > { %v360_v59 = vpop.permute.xlu0 %359  ;;  %v338_v1 = vpop.permute.xlu1 %337 }
  0xea   : > { %v362_v25 = vsel %vm361_vm12, %v360_v59, %v357_v31  ;;  %v365_v35 = vsel %vm361_vm12, %v357_v31, %v360_v59  ;;  %v344_v51 = vsel %vm343_vm15, %v342_v28, %v338_v1  ;;  %v347_v50 = vsel %vm343_vm15, %v338_v1, %v342_v28  ;;  %v335_v31 = vld [vmem:[%s3210_s2] sm:$0xff] }
  0xeb   : > { %v373_v18 = vmul.f32 %v3271_v26, %v365_v35  ;;  %v374_v17 = vmul.f32 %v3270_v4, %v362_v25  ;;  %v354_v62 = vmul.f32 %v3269_v3, %v347_v50  ;;  %v355_v10 = vmul.f32 %v3268_v23, %v344_v51 }
  0xed   : > { %621 = vmatpush.msra.mxu0 %v373_v18  ;;  %641 = vmatpush.msra.mxu1 %v374_v17 }
  0xef   : > { %622 = vmatpush.msra.mxu0 %v354_v62  ;;  %642 = vmatpush.msra.mxu1 %v355_v10 }
  0xf0   : > { %1948 = vmatmul.msk.f32.vlgmr.msra.gmra.mxu0 %vm603_vm14, %v335_v31  ;;  %1949 = vmatmul.msk.f32.vlgmr.msra.gmra.mxu1 %vm603_vm14, %v335_v31 }
 0x163   : > { %v2674_v62 = vpop.f32.mrf.mxu2  ;;  %v2682_v10 = vpop.f32.mrf.mxu3 }
 0x16d   : > { %v2646_v28 = vpop.f32.mrf.mxu0  ;;  %v2648_v59 = vpop.f32.mrf.mxu1 }
 0x16e   : > { %767 = vrot.lane.b32.xlu1 %v2646_v28, %s2049_s15  ;;  %745 = vrot.lane.b32.xlu2 %v2648_v59, %s2052_s18 }
 0x16f   : > { %764 = vrot.lane.b32.xlu0 %v2648_v59, %s2049_s15 }
 0x176   : > { %726 = vrot.lane.b32.xlu1 %v2648_v59, %s2054_s20  ;;  %729 = vrot.lane.b32.xlu2 %v2646_v28, %s2054_s20  ;;  %s3280_s20 = smov 4  }
 0x177   : > { %748 = vrot.lane.b32.xlu0 %v2646_v28, %s2052_s18  ;;  %s3277_s18 = smov 1  }
 0x17e   : > { %710 = vrot.lane.b32.xlu1 %v2646_v28, %s2056_s22  ;;  %691 = vrot.lane.b32.xlu2 %v2646_v28, %s2058_s24 }
 0x17f   : > { %707 = vrot.lane.b32.xlu0 %v2648_v59, %s2056_s22  ;;  %s3282_s22 = smov 6  }
 0x186   : > { %688 = vrot.lane.b32.xlu1 %v2648_v59, %s2058_s24  ;;  %669 = vrot.lane.b32.xlu2 %v2648_v59, %s2060_s26 }
 0x187   : > { %672 = vrot.lane.b32.xlu0 %v2646_v28, %s2060_s26 }
 0x18e   : > { %653 = vrot.lane.b32.xlu1 %v2646_v28, %s2062_s28  ;;  %1127 = vrot.lane.b32.xlu2 %v2674_v62, %s2050_s16 }
 0x18f   : > { %649 = vrot.lane.b32.xlu0 %v2648_v59, %s2062_s28 }
 0x196   : > { %1118 = vrot.lane.b32.xlu1 %v2682_v10, %s2051_s17  ;;  %1107 = vrot.lane.b32.xlu2 %v2682_v10, %s2053_s19 }
 0x197   : > { %1129 = vrot.lane.b32.xlu0 %v2682_v10, %s2050_s16  ;;  %s3276_s16 = smov 127  }
 0x19e   : > { %1105 = vrot.lane.b32.xlu1 %v2674_v62, %s2053_s19  ;;  %1094 = vrot.lane.b32.xlu2 %v2674_v62, %s2055_s21  ;;  %s3279_s19 = smov 3  }
 0x19f   : > { %1116 = vrot.lane.b32.xlu0 %v2674_v62, %s2051_s17  ;;  %s3278_s17 = smov 2  }
 0x1a6   : > { %1083 = vrot.lane.b32.xlu1 %v2674_v62, %s2057_s23  ;;  %1085 = vrot.lane.b32.xlu2 %v2682_v10, %s2057_s23  ;;  %s3283_s23 = smov 7  }
 0x1a7   : > { %1096 = vrot.lane.b32.xlu0 %v2682_v10, %s2055_s21  ;;  %s3281_s21 = smov 5  }
 0x1ae   : > { %1074 = vrot.lane.b32.xlu1 %v2682_v10, %s2059_s25  ;;  %1061 = vrot.lane.b32.xlu2 %v2674_v62, %s3276_s16 }
 0x1af   : > { %1072 = vrot.lane.b32.xlu0 %v2674_v62, %s2059_s25 }
 0x1b6   : > { %1050 = vrot.lane.b32.xlu1 %v2682_v10, %s3277_s18  ;;  %1053 = vrot.lane.b32.xlu2 %v2674_v62, %s3277_s18 }
 0x1b7   : > { %1063 = vrot.lane.b32.xlu0 %v2682_v10, %s3276_s16 }
 0x1be   : > { %1042 = vrot.lane.b32.xlu1 %v2674_v62, %s3278_s17  ;;  %1028 = vrot.lane.b32.xlu2 %v2682_v10, %s3279_s19 }
 0x1bf   : > { %1039 = vrot.lane.b32.xlu0 %v2682_v10, %s3278_s17 }
 0x1c6   : > { %1017 = vrot.lane.b32.xlu1 %v2682_v10, %s3280_s20  ;;  %1020 = vrot.lane.b32.xlu2 %v2674_v62, %s3280_s20 }
 0x1c7   : > { %1031 = vrot.lane.b32.xlu0 %v2674_v62, %s3279_s19 }
 0x1c8   : > { %v746_v17 = vpop.permute.xlu2 %745 }
 0x1ce   : > { %1009 = vrot.lane.b32.xlu1 %v2674_v62, %s3281_s21  ;;  %995 = vrot.lane.b32.xlu2 %v2682_v10, %s3282_s22 }
 0x1cf   : > { %1006 = vrot.lane.b32.xlu0 %v2682_v10, %s3281_s21 }
 0x1d0   : > { %v730_v18 = vpop.permute.xlu2 %729 }
 0x1d6   : > { %983 = vrot.lane.b32.xlu1 %v2682_v10, %s3283_s23  ;;  %987 = vrot.lane.b32.xlu2 %v2674_v62, %s3283_s23 }
 0x1d7   : > { %998 = vrot.lane.b32.xlu0 %v2674_v62, %s3282_s22 }
 0x1d8   : > { %v692_v1 = vpop.permute.xlu2 %691 }
 0x1e0   : > { %v768_v25 = vpop.permute.xlu1 %767  ;;  %v670_v3 = vpop.permute.xlu2 %669 }
 0x1e1   : > { %v765_v35 = vpop.permute.xlu0 %764 }
 0x1e2   : > { %v770_v51 = vsel %vm769_vm2, %v768_v25, %v765_v35  ;;  %v773_v50 = vsel %vm769_vm2, %v765_v35, %v768_v25 }
 0x1e3   : > { %v844_v31 = vmul.f32 %v840_v13, %v770_v51  ;;  %v845_v23 = vmul.f32 %v841_v14, %v773_v50 }
 0x1e5   : > { %1185 = vmatpush.msrb.mxu2 %v844_v31  ;;  %1205 = vmatpush.msrb.mxu3 %v845_v23 }
 0x1e8   : > { %v727_v4 = vpop.permute.xlu1 %726  ;;  %v1128_v23 = vpop.permute.xlu2 %1127 }
 0x1e9   : > { %v749_v26 = vpop.permute.xlu0 %748  ;;  %v732_v37 = vsel %vm731_vm5, %v730_v18, %v727_v4  ;;  %v735_v38 = vsel %vm731_vm5, %v727_v4, %v730_v18 }
 0x1ea   : > { %v751_v19 = vsel %vm750_vm3, %v749_v26, %v746_v17  ;;  %v754_v24 = vsel %vm750_vm3, %v746_v17, %v749_v26  ;;  %v826_v13 = vmul.f32 %v822_v46, %v732_v37  ;;  %v827_v14 = vmul.f32 %v823_v47, %v735_v38 }
 0x1eb   : > { %v835_v25 = vmul.f32 %v831_v33, %v751_v19  ;;  %v836_v9 = vmul.f32 %v832_v34, %v754_v24 }
 0x1ed   : > { %1186 = vmatpush.msrb.mxu2 %v835_v25  ;;  %1206 = vmatpush.msrb.mxu3 %v836_v9 }
 0x1ef   : > { %1187 = vmatpush.msrb.mxu2 %v826_v13  ;;  %1207 = vmatpush.msrb.mxu3 %v827_v14  ;;  %v3285_v13 = vperm.slane %v2398_v57, 1 }
 0x1f0   : > { %v711_v4 = vpop.permute.xlu1 %710  ;;  %v1108_v42 = vpop.permute.xlu2 %1107 }
 0x1f1   : > { %v708_v18 = vpop.permute.xlu0 %707 }
 0x1f2   : > { %v713_v26 = vsel %vm712_vm7, %v711_v4, %v708_v18  ;;  %v716_v33 = vsel %vm712_vm7, %v708_v18, %v711_v4 }
 0x1f3   : > { %v817_v29 = vmul.f32 %v813_v15, %v713_v26  ;;  %v818_v34 = vmul.f32 %v814_v16, %v716_v33  ;;  %v3284_v15 = vperm.slane %v2398_v57, 0  ;;  %v781_v57 = vmul.f32 %v2454_v27, %v773_v50 }
 0x1f5   : > { %1188 = vmatpush.msrb.mxu2 %v817_v29  ;;  %1208 = vmatpush.msrb.mxu3 %v818_v34  ;;  %v782_v29 = vmul.f32 %v2456_v63, %v770_v51  ;;  %v3289_v51 = vperm.slane %v2229_v8, 1 }
 0x1f8   : > { %v689_v46 = vpop.permute.xlu1 %688 }
 0x1f9   : > { %v694_v47 = vsel %vm693_vm9, %v692_v1, %v689_v46  ;;  %v697_v17 = vsel %vm693_vm9, %v689_v46, %v692_v1  ;;  %v673_v35 = vpop.permute.xlu0 %672 }
 0x1fa   : > { %v675_v31 = vsel %vm674_vm11, %v673_v35, %v670_v3  ;;  %v678_v25 = vsel %vm674_vm11, %v670_v3, %v673_v35  ;;  %v808_v9 = vmul.f32 %v804_v40, %v694_v47  ;;  %v809_v6 = vmul.f32 %v805_v43, %v697_v17  ;;  %v2776_v40 = vpop.permute.xlu2 %1094 }
 0x1fb   : > { %v799_v16 = vmul.f32 %v3284_v15, %v675_v31  ;;  %v800_v14 = vmul.f32 %v3285_v13, %v678_v25  ;;  %v3286_v35 = vperm.slane %v2469_v36, 0 }
 0x1fc   : > { %1189 = vmatpush.msrb.mxu2 %v808_v9  ;;  %1209 = vmatpush.msrb.mxu3 %v809_v6  ;;  %v3287_v6 = vperm.slane %v2469_v36, 1 }
 0x1fd   : > { %v762_v9 = vmul.f32 %v3286_v35, %v754_v24  ;;  %v3291_v24 = vperm.slane %v2487_v44, 1  ;;  %v686_v35 = vmul.f32 %v682_v30, %v678_v25  ;;  %v3298_v30 = vperm.slane %v2533_v2, 0 }
 0x1fe   : > { %1190 = vmatpush.msrb.mxu2 %v799_v16  ;;  %1210 = vmatpush.msrb.mxu3 %v800_v14  ;;  %v763_v15 = vmul.f32 %v3287_v6, %v751_v19  ;;  %v3290_v14 = vperm.slane %v2487_v44, 0  ;;  %v3292_v19 = vperm.slane %v2500_v45, 0  ;;  %v3295_v44 = vperm.slane %v2507_v0, 1 }
 0x200   : > { %v654_v1 = vpop.permute.xlu1 %653 }
 0x201   : > { %v650_v4 = vpop.permute.xlu0 %649 }
 0x202   : > { %v656_v3 = vsel %vm655_vm13, %v654_v1, %v650_v4  ;;  %v659_v18 = vsel %vm655_vm13, %v650_v4, %v654_v1  ;;  %v743_v1 = vmul.f32 %v3290_v14, %v735_v38  ;;  %v744_v4 = vmul.f32 %v3291_v24, %v732_v37  ;;  %v1086_v36 = vpop.permute.xlu2 %1085 }
 0x203   : > { %v790_v39 = vmul.f32 %v2444_v61, %v656_v3  ;;  %v791_v43 = vmul.f32 %v2446_v48, %v659_v18  ;;  %v706_v37 = vmul.f32 %v3295_v44, %v694_v47  ;;  %v667_v60 = vmul.f32 %v3298_v30, %v659_v18 }
 0x204   : > { %v3304_v14 = vperm.slane %v2345_v7, 0  ;;  %v3305_v24 = vperm.slane %v2345_v7, 1  ;;  %v3314_v30 = vperm.slane %v2480_v22, 0 }
 0x205   : > { %1191 = vmatpush.msrb.mxu2 %v790_v39  ;;  %1211 = vmatpush.msrb.mxu3 %v791_v43  ;;  %v3293_v39 = vperm.slane %v2500_v45, 1 }
 0x207   : > { %1192 = vmatpush.msrb.mxu2 %v2646_v28  ;;  %1212 = vmatpush.msrb.mxu3 %v2648_v59  ;;  %v3288_v59 = vperm.slane %v2229_v8, 0  ;;  %v725_v43 = vmul.f32 %v3293_v39, %v713_v26 }
 0x208   : > { %v1119_v34 = vpop.permute.xlu1 %1118 }
 0x209   : > { %1193 = vmatpush.msrb.mxu2 %v781_v57  ;;  %1213 = vmatpush.msrb.mxu3 %v782_v29  ;;  %v1130_v46 = vpop.permute.xlu0 %1129  ;;  %v3294_v57 = vperm.slane %v2507_v0, 0  ;;  %v3296_v0 = vperm.slane %v2240_v11, 0 }
 0x20a   : > { %v1131_v16 = vsel %vm588_vm1, %v1128_v23, %v1130_v46  ;;  %v1135_v28 = vsel %vm588_vm1, %v1130_v46, %v1128_v23  ;;  %v724_v23 = vmul.f32 %v3292_v19, %v716_v33  ;;  %v687_v33 = vmul.f32 %v683_v53, %v675_v31 }
 0x20b   : > { %1194 = vmatpush.msrb.mxu2 %v762_v9  ;;  %1214 = vmatpush.msrb.mxu3 %v763_v15  ;;  %v1136_v50 = vmul.f32 %v1131_v16, %v3288_v59  ;;  %v1137_v13 = vmul.f32 %v1135_v28, %v3289_v51  ;;  %v705_v38 = vmul.f32 %v3294_v57, %v697_v17  ;;  %v3297_v9 = vperm.slane %v2240_v11, 1  ;;  %v1062_v11 = vpop.permute.xlu2 %1061 }
 0x20c   : > { %v3299_v53 = vperm.slane %v2533_v2, 1  ;;  %v3300_v31 = vperm.slane %v2295_v41, 0  ;;  %v3303_v51 = vperm.slane %v2327_v58, 1 }
 0x20d   : > { %1142 = vmatpush.msrb.mxu0 %v1136_v50  ;;  %1162 = vmatpush.msrb.mxu1 %v1137_v13 }
 0x20e   : > { %1195 = vmatpush.msrb.mxu2 %v743_v1  ;;  %1215 = vmatpush.msrb.mxu3 %v744_v4 }
 0x210   : > { %1196 = vmatpush.msrb.mxu2 %v724_v23  ;;  %1216 = vmatpush.msrb.mxu3 %v725_v43  ;;  %v1106_v8 = vpop.permute.xlu1 %1105 }
 0x211   : > { %v1109_v29 = vsel %vm550_vm4, %v1106_v8, %v1108_v42  ;;  %v1117_v46 = vpop.permute.xlu0 %1116  ;;  %v1113_v45 = vsel %vm550_vm4, %v1108_v42, %v1106_v8  ;;  %v668_v42 = vmul.f32 %v3299_v53, %v656_v3  ;;  %v3307_v8 = vperm.slane %v2393_v56, 1 }
 0x212   : > { %1197 = vmatpush.msrb.mxu2 %v705_v38  ;;  %1217 = vmatpush.msrb.mxu3 %v706_v37  ;;  %v1120_v26 = vsel %vm569_vm0, %v1117_v46, %v1119_v34  ;;  %v1124_v17 = vsel %vm569_vm0, %v1119_v34, %v1117_v46  ;;  %v1114_v25 = vmul.f32 %v1109_v29, %v3300_v31  ;;  %v3301_v34 = vperm.slane %v2295_v41, 1  ;;  %v647_v29 = vld [vmem:[%s3211_s3] sm:$0xff] }
 0x213   : > { %v1125_v47 = vmul.f32 %v1120_v26, %v3296_v0  ;;  %v1126_v6 = vmul.f32 %v1124_v17, %v3297_v9  ;;  %v3302_v41 = vperm.slane %v2327_v58, 0  ;;  %v1054_v19 = vpop.permute.xlu2 %1053  ;;  %v3306_v58 = vperm.slane %v2393_v56, 0 }
 0x214   : > { %1198 = vmatpush.msrb.mxu2 %v686_v35  ;;  %1218 = vmatpush.msrb.mxu3 %v687_v33  ;;  %v1115_v15 = vmul.f32 %v1113_v45, %v3301_v34  ;;  %vm3308_vm0 = vcmask 1039360   ;;  %vm3310_vm4 = vcmask 7168   ;;  %v3315_v53 = vperm.slane %v2480_v22, 1 }
 0x215   : > { %1143 = vmatpush.msrb.mxu0 %v1125_v47  ;;  %1163 = vmatpush.msrb.mxu1 %v1126_v6  ;;  %vm3309_vm1 = vmmov %vm3308_vm0 }
 0x216   : > { %1199 = vmatpush.msrb.mxu2 %v667_v60  ;;  %1219 = vmatpush.msrb.mxu3 %v668_v42  ;;  %vm3311_vm5 = vmmov %vm3310_vm4 }
 0x217   : > { %1144 = vmatpush.msrb.mxu0 %v1114_v25  ;;  %1164 = vmatpush.msrb.mxu1 %v1115_v15 }
 0x218   : > { %v1084_v16 = vpop.permute.xlu1 %1083  ;;  %1968 = vmatmul.msk.f32.vlgmr.msrb.gmra.mxu2 %vm603_vm14, %v647_v29  ;;  %1969 = vmatmul.msk.f32.vlgmr.msrb.gmra.mxu3 %vm603_vm14, %v647_v29 }
 0x219   : > { %v1097_v28 = vpop.permute.xlu0 %1096  ;;  %v1087_v18 = vsel %vm512_vm8, %v1084_v16, %v1086_v36  ;;  %v1091_v2 = vsel %vm512_vm8, %v1086_v36, %v1084_v16  ;;  %vm3316_vm8 = vcmask 31744   ;;  %v3320_v16 = vperm.slane %v2544_v12, 0 }
 0x21a   : > { %v1098_v3 = vsel %vm531_vm6, %v2776_v40, %v1097_v28  ;;  %v1102_v59 = vsel %vm531_vm6, %v1097_v28, %v2776_v40  ;;  %v1092_v1 = vmul.f32 %v1087_v18, %v3304_v14  ;;  %v1093_v4 = vmul.f32 %v1091_v2, %v3305_v24  ;;  %vm3317_vm9 = vmmov %vm3316_vm8 }
 0x21b   : > { %v1103_v50 = vmul.f32 %v1098_v3, %v3302_v41  ;;  %v1104_v13 = vmul.f32 %v1102_v59, %v3303_v51  ;;  %v1029_v46 = vpop.permute.xlu2 %1028  ;;  %vm3312_vm6 = vcmask 15360   ;;  %v3321_v18 = vperm.slane %v2544_v12, 1 }
 0x21c   : > { %vm3313_vm7 = vmmov %vm3312_vm6  ;;  %v3322_v2 = vperm.slane %v2549_v20, 0  ;;  %v3323_v59 = vperm.slane %v2549_v20, 1  ;;  %v3326_v12 = vperm.slane %v2600_v21, 0 }
 0x21d   : > { %1145 = vmatpush.msrb.mxu0 %v1103_v50  ;;  %1165 = vmatpush.msrb.mxu1 %v1104_v13 }
 0x21f   : > { %1146 = vmatpush.msrb.mxu0 %v1092_v1  ;;  %1166 = vmatpush.msrb.mxu1 %v1093_v4  ;;  %v3327_v4 = vperm.slane %v2600_v21, 1 }
 0x220   : > { %v1075_v36 = vpop.permute.xlu1 %1074 }
 0x221   : > { %v1073_v23 = vpop.permute.xlu0 %1072 }
 0x222   : > { %v1076_v40 = vsel %vm493_vm10, %v1073_v23, %v1075_v36  ;;  %v1080_v39 = vsel %vm493_vm10, %v1075_v36, %v1073_v23  ;;  %vm3318_vm10 = vcmask 23552  }
 0x223   : > { %v1081_v43 = vmul.f32 %v1076_v40, %v3306_v58  ;;  %v1082_v57 = vmul.f32 %v1080_v39, %v3307_v8  ;;  %v1021_v42 = vpop.permute.xlu2 %1020  ;;  %vm3319_vm11 = vmmov %vm3318_vm10  ;;  %v3328_v8 = vperm.slane %v2618_v52, 0 }
 0x225   : > { %1147 = vmatpush.msrb.mxu0 %v1081_v43  ;;  %1167 = vmatpush.msrb.mxu1 %v1082_v57 }
 0x228   : > { %v1051_v38 = vpop.permute.xlu1 %1050 }
 0x229   : > { %v1064_v7 = vpop.permute.xlu0 %1063  ;;  %v1055_v56 = vsel %vm3310_vm4, %v1054_v19, %v1051_v38  ;;  %v1058_v45 = vsel %vm3311_vm5, %v1051_v38, %v1054_v19  ;;  %v3329_v38 = vperm.slane %v2618_v52, 1  ;;  %vm1262_vm5 = vcmask 121856  }
 0x22a   : > { %v1065_v44 = vsel %vm3308_vm0, %v1062_v11, %v1064_v7  ;;  %v1069_v37 = vsel %vm3309_vm1, %v1064_v7, %v1062_v11  ;;  %v1059_v26 = vmul.f32 %v1058_v45, %v2448_v55  ;;  %v1060_v17 = vmul.f32 %v1055_v56, %v2450_v5 }
 0x22b   : > { %v1070_v35 = vmul.f32 %v1065_v44, %v2425_v49  ;;  %v1071_v33 = vmul.f32 %v1069_v37, %v2427_v54  ;;  %v996_v50 = vpop.permute.xlu2 %995  ;;  %vm3324_vm0 = vcmask 39936   ;;  %v3330_v7 = vperm.slane %v2623_v32, 0 }
 0x22c   : > { %vm3325_vm1 = vmmov %vm3324_vm0  ;;  %v3331_v37 = vperm.slane %v2623_v32, 1 }
 0x22d   : > { %1148 = vmatpush.msrb.mxu0 %v1070_v35  ;;  %1168 = vmatpush.msrb.mxu1 %v1071_v33 }
 0x22f   : > { %1149 = vmatpush.msrb.mxu0 %v2674_v62  ;;  %1169 = vmatpush.msrb.mxu1 %v2682_v10 }
 0x230   : > { %v1043_v0 = vpop.permute.xlu1 %1042 }
 0x231   : > { %1150 = vmatpush.msrb.mxu0 %v1059_v26  ;;  %1170 = vmatpush.msrb.mxu1 %v1060_v17  ;;  %v1040_v47 = vpop.permute.xlu0 %1039  ;;  %v2941_v17 = vld [vmem:[%s3209_s1 + $0x40] ss:$8 sm:$0x3] }
 0x232   : > { %v1044_v9 = vsel %vm3312_vm6, %v1043_v0, %v1040_v47  ;;  %v1047_v6 = vsel %vm3313_vm7, %v1040_v47, %v1043_v0  ;;  %v1341_v0 = vperm.slane %v2941_v17, 0  ;;  %v1342_v47 = vperm.slane %v2941_v17, 1 }
 0x233   : > { %v1048_v60 = vmul.f32 %v1047_v6, %v3314_v30  ;;  %v1049_v62 = vmul.f32 %v1044_v9, %v3315_v53  ;;  %v988_v20 = vpop.permute.xlu2 %987  ;;  %vm3334_vm6 = vcmask 7168  }
 0x234   : > { %vm3335_vm7 = vmmov %vm3334_vm6 }
 0x235   : > { %1151 = vmatpush.msrb.mxu0 %v1048_v60  ;;  %1171 = vmatpush.msrb.mxu1 %v1049_v62 }
 0x238   : > { %v1018_v10 = vpop.permute.xlu1 %1017 }
 0x239   : > { %v1032_v31 = vpop.permute.xlu0 %1031  ;;  %v1022_v25 = vsel %vm3316_vm8, %v1021_v42, %v1018_v10  ;;  %v1025_v34 = vsel %vm3317_vm9, %v1018_v10, %v1021_v42  ;;  %v2954_v10 = vld [vmem:[%s3209_s1 + $0x37] ss:$8 sm:$0x3]  ;;  %vm1232_vm8 = vcmask 138240   ;;  %vm1347_vm9 = vcmask 588800  }
 0x23a   : > { %v1033_v15 = vsel %vm3318_vm10, %v1032_v31, %v1029_v46  ;;  %v1036_v11 = vsel %vm3319_vm11, %v1029_v46, %v1032_v31  ;;  %v1026_v3 = vmul.f32 %v1025_v34, %v3322_v2  ;;  %v1027_v41 = vmul.f32 %v1022_v25, %v3323_v59  ;;  %v981_v46 = vld [vmem:[%s3213_s5] sm:$0xff] }
 0x23b   : > { %v1037_v28 = vmul.f32 %v1036_v11, %v3320_v16  ;;  %v1038_v22 = vmul.f32 %v1033_v15, %v3321_v18  ;;  %v1311_v25 = vperm.slane %v2954_v10, 0  ;;  %v1312_v34 = vperm.slane %v2954_v10, 1 }
 0x23d   : > { %1152 = vmatpush.msrb.mxu0 %v1037_v28  ;;  %1172 = vmatpush.msrb.mxu1 %v1038_v22 }
 0x23f   : > { %1153 = vmatpush.msrb.mxu0 %v1026_v3  ;;  %1173 = vmatpush.msrb.mxu1 %v1027_v41 }
 0x240   : > { %v1010_v51 = vpop.permute.xlu1 %1009 }
 0x241   : > { %v1007_v13 = vpop.permute.xlu0 %1006 }
 0x242   : > { %v1011_v14 = vsel %vm3324_vm0, %v1010_v51, %v1007_v13  ;;  %v1014_v1 = vsel %vm3325_vm1, %v1007_v13, %v1010_v51  ;;  %vm3338_vm0 = vmmov %vm3334_vm6 }
 0x243   : > { %v1015_v24 = vmul.f32 %v1014_v1, %v3326_v12  ;;  %v1016_v36 = vmul.f32 %v1011_v14, %v3327_v4  ;;  %vm3339_vm1 = vmmov %vm3338_vm0 }
 0x245   : > { %1154 = vmatpush.msrb.mxu0 %v1015_v24  ;;  %1174 = vmatpush.msrb.mxu1 %v1016_v36  ;;  %v2975_v24 = vld [vmem:[%s3209_s1 + $0x36] ss:$8 sm:$0x3] }
 0x246   : > { %v1270_v36 = vperm.slane %v2975_v24, 0 }
 0x248   : > { %v984_v19 = vpop.permute.xlu1 %983 }
 0x249   : > { %v999_v23 = vpop.permute.xlu0 %998  ;;  %v989_v40 = vsel %vm343_vm15, %v988_v20, %v984_v19  ;;  %v992_v39 = vsel %vm343_vm15, %v984_v19, %v988_v20  ;;  %vm3332_vm15 = vcmask 1039360   ;;  %v1271_v19 = vperm.slane %v2975_v24, 1 }
 0x24a   : > { %v1000_v58 = vsel %vm361_vm12, %v999_v23, %v996_v50  ;;  %v1003_v43 = vsel %vm361_vm12, %v996_v50, %v999_v23  ;;  %v993_v44 = vmul.f32 %v992_v39, %v3330_v7  ;;  %v994_v29 = vmul.f32 %v989_v40, %v3331_v37  ;;  %vm3333_vm4 = vmmov %vm3332_vm15 }
 0x24b   : > { %v1004_v57 = vmul.f32 %v1003_v43, %v3328_v8  ;;  %v1005_v21 = vmul.f32 %v1000_v58, %v3329_v38  ;;  %vm1332_vm12 = vcmask 908288   ;;  %vm3336_vm10 = vmmov %vm3333_vm4 }
 0x24c   : > { %vm3337_vm11 = vmmov %vm3333_vm4 }
 0x24d   : > { %1155 = vmatpush.msrb.mxu0 %v1004_v57  ;;  %1175 = vmatpush.msrb.mxu1 %v1005_v21 }
 0x24f   : > { %1156 = vmatpush.msrb.mxu0 %v993_v44  ;;  %1176 = vmatpush.msrb.mxu1 %v994_v29 }
 0x250   : > { %1966 = vmatmul.msk.f32.vlgmr.msrb.gmra.mxu0 %vm603_vm14, %v981_v46  ;;  %1967 = vmatmul.msk.f32.vlgmr.msrb.gmra.mxu1 %vm603_vm14, %v981_v46  ;;  %vm1302_vm14 = vcmask 924672  }
 0x29b   : > { %v1201_v52 = vpop.f32.mrf.mxu2  ;;  %v1221_v35 = vpop.f32.mrf.mxu3 }
 0x2cd   : > { %v1158_v33 = vpop.f32.mrf.mxu0  ;;  %v1178_v56 = vpop.f32.mrf.mxu1 }
 0x2ce   : > { %v2902_v45 = vadd.f32 %v1201_v52, %v1158_v33  ;;  %v2904_v26 = vadd.f32 %v1221_v35, %v1178_v56  ;;  %v1970_v35 = vld [vmem:[%s3209_s1 + $0x35] ss:$8 sm:$0x3] }
 0x2cf   : > { %v2998_v33 = vperm.slane %v1970_v35, 0  ;;  %v3000_v56 = vperm.slane %v1970_v35, 1 }
 0x2d0   : > { %1317 = vrot.lane.b32.xlu2 %v2902_v45, %s2062_s28  ;;  %1328 = vrot.lane.b32.xlu0 %v2902_v45, %s2070_s29 }
 0x2d1   : > { %1330 = vrot.lane.b32.xlu1 %v2904_v26, %s2070_s29 }
 0x2d8   : > { %1300 = vrot.lane.b32.xlu2 %v2904_v26, %s2071_s11  ;;  %1319 = vrot.lane.b32.xlu0 %v2904_v26, %s2062_s28 }
 0x2d9   : > { %1298 = vrot.lane.b32.xlu1 %v2902_v45, %s2071_s11 }
 0x2e0   : > { %1276 = vrot.lane.b32.xlu2 %v2904_v26, %s3277_s18  ;;  %1287 = vrot.lane.b32.xlu0 %v2902_v45, %s3276_s16 }
 0x2e1   : > { %1289 = vrot.lane.b32.xlu1 %v2904_v26, %s3276_s16 }
 0x2e8   : > { %1260 = vrot.lane.b32.xlu2 %v2902_v45, %s2072_s12  ;;  %1279 = vrot.lane.b32.xlu0 %v2902_v45, %s3277_s18 }
 0x2e9   : > { %1257 = vrot.lane.b32.xlu1 %v2904_v26, %s2072_s12 }
 0x2f0   : > { %1226 = vrot.lane.b32.xlu2 %v2904_v26, %s2073_s13  ;;  %1246 = vrot.lane.b32.xlu0 %v2904_v26, %s2049_s15 }
 0x2f1   : > { %1249 = vrot.lane.b32.xlu1 %v2902_v45, %s2049_s15 }
 0x2f8   : > { %1230 = vrot.lane.b32.xlu0 %v2902_v45, %s2073_s13 }
 0x32a   : > { %v1318_v32 = vpop.permute.xlu2 %1317 }
 0x332   : > { %v1301_v42 = vpop.permute.xlu2 %1300 }
 0x33a   : > { %v1277_v41 = vpop.permute.xlu2 %1276 }
 0x342   : > { %v1329_v9 = vpop.permute.xlu0 %1328  ;;  %v1261_v20 = vpop.permute.xlu2 %1260 }
 0x343   : > { %v1331_v6 = vpop.permute.xlu1 %1330 }
 0x344   : > { %v1333_v30 = vsel %vm1332_vm12, %v1329_v9, %v1331_v6  ;;  %v1337_v60 = vsel %vm1332_vm12, %v1331_v6, %v1329_v9 }
 0x345   : > { %v1345_v53 = vmul.f32 %v1341_v0, %v1333_v30  ;;  %v1346_v62 = vmul.f32 %v1342_v47, %v1337_v60 }
 0x347   : > { %1358 = vmatpush.msra.mxu0 %v1345_v53  ;;  %1378 = vmatpush.msra.mxu1 %v1346_v62  ;;  %v1224_v62 = vld [vmem:[%s3214_s6] sm:$0xff] }
 0x34a   : > { %v1320_v31 = vpop.permute.xlu0 %1319 }
 0x34b   : > { %v1321_v15 = vsel %vm655_vm13, %v1318_v32, %v1320_v31  ;;  %v1325_v11 = vsel %vm655_vm13, %v1320_v31, %v1318_v32  ;;  %v1299_v16 = vpop.permute.xlu1 %1298  ;;  %v1227_v32 = vpop.permute.xlu2 %1226 }
 0x34c   : > { %v1326_v28 = vmul.f32 %v1321_v15, %v2444_v61  ;;  %v1327_v18 = vmul.f32 %v1325_v11, %v2446_v48  ;;  %v1303_v22 = vsel %vm1302_vm14, %v1299_v16, %v1301_v42  ;;  %v1307_v2 = vsel %vm1302_vm14, %v1301_v42, %v1299_v16 }
 0x34d   : > { %v1315_v3 = vmul.f32 %v1311_v25, %v1303_v22  ;;  %v1316_v59 = vmul.f32 %v1312_v34, %v1307_v2 }
 0x34e   : > { %1359 = vmatpush.msra.mxu0 %v1326_v28  ;;  %1379 = vmatpush.msra.mxu1 %v1327_v18 }
 0x350   : > { %1360 = vmatpush.msra.mxu0 %v1315_v3  ;;  %1380 = vmatpush.msra.mxu1 %v1316_v59 }
 0x352   : > { %v1288_v50 = vpop.permute.xlu0 %1287 }
 0x353   : > { %v1290_v51 = vpop.permute.xlu1 %1289 }
 0x354   : > { %v1291_v13 = vsel %vm3332_vm15, %v1288_v50, %v1290_v51  ;;  %v1295_v14 = vsel %vm3333_vm4, %v1290_v51, %v1288_v50  ;;  %vm3340_vm15 = vmmov %vm3333_vm4 }
 0x355   : > { %v1296_v1 = vmul.f32 %v1291_v13, %v2425_v49  ;;  %v1297_v12 = vmul.f32 %v1295_v14, %v2427_v54 }
 0x357   : > { %1361 = vmatpush.msra.mxu0 %v1296_v1  ;;  %1381 = vmatpush.msra.mxu1 %v1297_v12 }
 0x359   : > { %1362 = vmatpush.msra.mxu0 %v2902_v45  ;;  %1382 = vmatpush.msra.mxu1 %v2904_v26 }
 0x35a   : > { %v1280_v4 = vpop.permute.xlu0 %1279 }
 0x35b   : > { %v1281_v23 = vsel %vm3334_vm6, %v1280_v4, %v1277_v41  ;;  %v1284_v40 = vsel %vm3335_vm7, %v1277_v41, %v1280_v4  ;;  %v1258_v39 = vpop.permute.xlu1 %1257 }
 0x35c   : > { %v1285_v58 = vmul.f32 %v1284_v40, %v2448_v55  ;;  %v1286_v43 = vmul.f32 %v1281_v23, %v2450_v5  ;;  %v1263_v8 = vsel %vm1262_vm5, %v1261_v20, %v1258_v39  ;;  %v1266_v57 = vsel %vm1262_vm5, %v1258_v39, %v1261_v20 }
 0x35d   : > { %v1274_v38 = vmul.f32 %v1270_v36, %v1266_v57  ;;  %v1275_v21 = vmul.f32 %v1271_v19, %v1263_v8 }
 0x35e   : > { %1363 = vmatpush.msra.mxu0 %v1285_v58  ;;  %1383 = vmatpush.msra.mxu1 %v1286_v43 }
 0x360   : > { %1364 = vmatpush.msra.mxu0 %v1274_v38  ;;  %1384 = vmatpush.msra.mxu1 %v1275_v21 }
 0x362   : > { %v1247_v7 = vpop.permute.xlu0 %1246 }
 0x363   : > { %v1250_v44 = vpop.permute.xlu1 %1249 }
 0x364   : > { %v1251_v37 = vsel %vm769_vm2, %v1250_v44, %v1247_v7  ;;  %v1254_v29 = vsel %vm769_vm2, %v1247_v7, %v1250_v44 }
 0x365   : > { %v1255_v46 = vmul.f32 %v1254_v29, %v2454_v27  ;;  %v1256_v52 = vmul.f32 %v1251_v37, %v2456_v63 }
 0x367   : > { %1365 = vmatpush.msra.mxu0 %v1255_v46  ;;  %1385 = vmatpush.msra.mxu1 %v1256_v52 }
 0x36a   : > { %v1231_v9 = vpop.permute.xlu0 %1230 }
 0x36b   : > { %v1233_v6 = vsel %vm1232_vm8, %v1231_v9, %v1227_v32  ;;  %v1236_v30 = vsel %vm1232_vm8, %v1227_v32, %v1231_v9 }
 0x36c   : > { %v1244_v60 = vmul.f32 %v2998_v33, %v1236_v30  ;;  %v1245_v53 = vmul.f32 %v3000_v56, %v1233_v6  ;;  %v1393_v30 = vld [vmem:[%s3215_s7] sm:$0xff] }
 0x36e   : > { %1366 = vmatpush.msra.mxu0 %v1244_v60  ;;  %1386 = vmatpush.msra.mxu1 %v1245_v53 }
 0x36f   : > { %1974 = vmatmul.msk.f32.vlgmr.msra.gmra.mxu0 %vm1347_vm9, %v1224_v62  ;;  %1975 = vmatmul.msk.f32.vlgmr.msra.gmra.mxu1 %vm1347_vm9, %v1224_v62 }
 0x3ec   : > { %v1368_v42 = vpop.f32.mrf.mxu0  ;;  %v1388_v31 = vpop.f32.mrf.mxu1 }
 0x3ed   : > { %v1391_v15 = vmax.f32 %v1368_v42, 0.0  ;;  %v1392_v11 = vmax.f32 %v1388_v31, 0.0  ;;  %v1983_v31 = vld [vmem:[%s3209_s1 + $0x10] ss:$8 sm:$0x3] }
 0x3ef   : > { %1462 = vrot.lane.b32.xlu0 %v1391_v15, %s2062_s28  ;;  %1473 = vrot.lane.b32.xlu1 %v1391_v15, %s2070_s29 }
 0x3f0   : > { %1475 = vrot.lane.b32.xlu2 %v1392_v11, %s2070_s29 }
 0x3f7   : > { %1453 = vrot.lane.b32.xlu0 %v1392_v11, %s2071_s11  ;;  %1464 = vrot.lane.b32.xlu1 %v1392_v11, %s2062_s28 }
 0x3f8   : > { %1451 = vrot.lane.b32.xlu2 %v1391_v15, %s2071_s11 }
 0x3ff   : > { %1429 = vrot.lane.b32.xlu0 %v1392_v11, %s3277_s18  ;;  %1440 = vrot.lane.b32.xlu1 %v1391_v15, %s3276_s16 }
 0x400   : > { %1442 = vrot.lane.b32.xlu2 %v1392_v11, %s3276_s16 }
 0x407   : > { %1421 = vrot.lane.b32.xlu0 %v1391_v15, %s2072_s12  ;;  %1432 = vrot.lane.b32.xlu1 %v1391_v15, %s3277_s18 }
 0x408   : > { %1418 = vrot.lane.b32.xlu2 %v1392_v11, %s2072_s12 }
 0x40f   : > { %1395 = vrot.lane.b32.xlu0 %v1392_v11, %s2073_s13  ;;  %1407 = vrot.lane.b32.xlu1 %v1392_v11, %s2049_s15 }
 0x410   : > { %1410 = vrot.lane.b32.xlu2 %v1391_v15, %s2049_s15 }
 0x417   : > { %1399 = vrot.lane.b32.xlu1 %v1391_v15, %s2073_s13 }
 0x44a   : > { %v1476_v16 = vpop.permute.xlu2 %1475 }
 0x452   : > { %v1452_v3 = vpop.permute.xlu2 %1451 }
 0x461   : > { %v1463_v28 = vpop.permute.xlu0 %1462  ;;  %v1474_v18 = vpop.permute.xlu1 %1473 }
 0x462   : > { %v1477_v22 = vsel %vm1332_vm12, %v1474_v18, %v1476_v16  ;;  %v1481_v2 = vsel %vm1332_vm12, %v1476_v16, %v1474_v18  ;;  %v1982_v16 = vld [vmem:[%s3209_s1 + $0x36] ss:$8 sm:$0x3] }
 0x463   : > { %v1482_v59 = vmul.f32 %v1477_v22, %v1341_v0  ;;  %v1483_v41 = vmul.f32 %v1481_v2, %v1342_v47  ;;  %v1443_v0 = vpop.permute.xlu2 %1442 }
 0x465   : > { %1494 = vmatpush.msra.mxu2 %v1482_v59  ;;  %1514 = vmatpush.msra.mxu3 %v1483_v41  ;;  %v1632_v59 = vperm.slane %v1982_v16, 1 }
 0x469   : > { %v1454_v50 = vpop.permute.xlu0 %1453  ;;  %v1465_v51 = vpop.permute.xlu1 %1464 }
 0x46a   : > { %v1455_v13 = vsel %vm1302_vm14, %v1452_v3, %v1454_v50  ;;  %v1459_v14 = vsel %vm1302_vm14, %v1454_v50, %v1452_v3  ;;  %v1466_v1 = vsel %vm655_vm13, %v1463_v28, %v1465_v51  ;;  %v1470_v12 = vsel %vm655_vm13, %v1465_v51, %v1463_v28 }
 0x46b   : > { %v1471_v4 = vmul.f32 %v1466_v1, %v2444_v61  ;;  %v1472_v20 = vmul.f32 %v1470_v12, %v2446_v48  ;;  %v1460_v17 = vmul.f32 %v1455_v13, %v1311_v25  ;;  %v1461_v47 = vmul.f32 %v1459_v14, %v1312_v34  ;;  %v1419_v25 = vpop.permute.xlu2 %1418  ;;  %v1981_v1 = vld [vmem:[%s3209_s1 + $0x25] ss:$8 sm:$0x3] }
 0x46c   : > { %v1631_v3 = vperm.slane %v1982_v16, 0 }
 0x46d   : > { %1495 = vmatpush.msra.mxu2 %v1471_v4  ;;  %1515 = vmatpush.msra.mxu3 %v1472_v20  ;;  %v1614_v20 = vperm.slane %v1981_v1, 0 }
 0x46f   : > { %1496 = vmatpush.msra.mxu2 %v1460_v17  ;;  %1516 = vmatpush.msra.mxu3 %v1461_v47 }
 0x471   : > { %v1430_v23 = vpop.permute.xlu0 %1429  ;;  %v1441_v40 = vpop.permute.xlu1 %1440 }
 0x472   : > { %v1444_v39 = vsel %vm3336_vm10, %v1441_v40, %v1443_v0  ;;  %v1448_v58 = vsel %vm3337_vm11, %v1443_v0, %v1441_v40  ;;  %v1615_v0 = vperm.slane %v1981_v1, 1 }
 0x473   : > { %v1449_v61 = vmul.f32 %v1444_v39, %v2425_v49  ;;  %v1450_v48 = vmul.f32 %v1448_v58, %v2427_v54  ;;  %v1411_v44 = vpop.permute.xlu2 %1410 }
 0x475   : > { %1497 = vmatpush.msra.mxu2 %v1449_v61  ;;  %1517 = vmatpush.msra.mxu3 %v1450_v48  ;;  %v1980_v61 = vld [vmem:[%s3216_s8 + $0x8] sm:$0xff] }
 0x476   : > { %v1999_v48 = vld [vmem:[%s3209_s1 + $0x40] ss:$8 sm:$0x3] }
 0x477   : > { %1498 = vmatpush.msra.mxu2 %v1391_v15  ;;  %1518 = vmatpush.msra.mxu3 %v1392_v11  ;;  %v1648_v15 = vperm.slane %v1983_v31, 0  ;;  %v1649_v11 = vperm.slane %v1983_v31, 1  ;;  %v1996_v31 = vld [vmem:[%s3216_s8 + $0x18] sm:$0xff] }
 0x479   : > { %v1422_v10 = vpop.permute.xlu0 %1421  ;;  %v1433_v34 = vpop.permute.xlu1 %1432 }
 0x47a   : > { %v1423_v43 = vsel %vm1262_vm5, %v1422_v10, %v1419_v25  ;;  %v1426_v8 = vsel %vm1262_vm5, %v1419_v25, %v1422_v10  ;;  %v1434_v57 = vsel %vm3338_vm0, %v1433_v34, %v1430_v23  ;;  %v1437_v38 = vsel %vm3339_vm1, %v1430_v23, %v1433_v34 }
 0x47b   : > { %v1438_v21 = vmul.f32 %v1437_v38, %v2448_v55  ;;  %v1439_v49 = vmul.f32 %v1434_v57, %v2450_v5  ;;  %v1427_v54 = vmul.f32 %v1426_v8, %v1270_v36  ;;  %v1428_v7 = vmul.f32 %v1423_v43, %v1271_v19 }
 0x47c   : > { %v1819_v10 = vperm.slane %v1999_v48, 0  ;;  %v1820_v34 = vperm.slane %v1999_v48, 1 }
 0x47d   : > { %1499 = vmatpush.msra.mxu2 %v1438_v21  ;;  %1519 = vmatpush.msra.mxu3 %v1439_v49 }
 0x47f   : > { %1500 = vmatpush.msra.mxu2 %v1427_v54  ;;  %1520 = vmatpush.msra.mxu3 %v1428_v7 }
 0x481   : > { %v1408_v37 = vpop.permute.xlu1 %1407  ;;  %v1396_v36 = vpop.permute.xlu0 %1395 }
 0x482   : > { %v1412_v29 = vsel %vm769_vm2, %v1411_v44, %v1408_v37  ;;  %v1415_v46 = vsel %vm769_vm2, %v1408_v37, %v1411_v44 }
 0x483   : > { %v1416_v52 = vmul.f32 %v1415_v46, %v2454_v27  ;;  %v1417_v35 = vmul.f32 %v1412_v29, %v2456_v63  ;;  %v1998_v29 = vld [vmem:[%s3209_s1 + $0x26] ss:$8 sm:$0x3] }
 0x485   : > { %1501 = vmatpush.msra.mxu2 %v1416_v52  ;;  %1521 = vmatpush.msra.mxu3 %v1417_v35  ;;  %v1997_v35 = vld [vmem:[%s3209_s1 + $0x10] ss:$8 sm:$0x3] }
 0x489   : > { %v1400_v32 = vpop.permute.xlu1 %1399 }
 0x48a   : > { %v1401_v24 = vsel %vm1232_vm8, %v1400_v32, %v1396_v36  ;;  %v1404_v19 = vsel %vm1232_vm8, %v1396_v36, %v1400_v32  ;;  %v1794_v32 = vperm.slane %v1997_v35, 0 }
 0x48b   : > { %v1405_v9 = vmul.f32 %v1404_v19, %v2998_v33  ;;  %v1406_v6 = vmul.f32 %v1401_v24, %v3000_v56  ;;  %v1795_v24 = vperm.slane %v1997_v35, 1 }
 0x48d   : > { %1502 = vmatpush.msra.mxu2 %v1405_v9  ;;  %1522 = vmatpush.msra.mxu3 %v1406_v6 }
 0x48e   : > { %1976 = vmatmul.msk.f32.vlgmr.msra.gmra.mxu2 %vm1347_vm9, %v1393_v30  ;;  %1977 = vmatmul.msk.f32.vlgmr.msra.gmra.mxu3 %vm1347_vm9, %v1393_v30 }
 0x511   : > { %v1504_v60 = vpop.f32.mrf.mxu2  ;;  %v1524_v53 = vpop.f32.mrf.mxu3 }
 0x512   : > { %v3071_v62 = vadd.f32 %v1504_v60, %v2902_v45  ;;  %v3074_v42 = vadd.f32 %v1524_v53, %v2904_v26 }
 0x514   : > { %1637 = vrot.lane.b32.xlu2 %v3071_v62, %s3276_s16  ;;  %1580 = vmatpush.msrb.mxu0 %v3071_v62 }
 0x515   : > { %1620 = vrot.lane.b32.xlu1 %v3074_v42, %s2072_s12  ;;  %1639 = vrot.lane.b32.xlu0 %v3074_v42, %s3276_s16 }
 0x516   : > { %1600 = vmatpush.msrb.mxu1 %v3074_v42 }
 0x51c   : > { %1623 = vrot.lane.b32.xlu2 %v3071_v62, %s2072_s12 }
 0x51d   : > { %1546 = vrot.lane.b32.xlu1 %v3071_v62, %s2049_s15  ;;  %1543 = vrot.lane.b32.xlu0 %v3074_v42, %s2049_s15 }
 0x524   : > { %1554 = vrot.lane.b32.xlu2 %v3074_v42, %s3277_s18 }
 0x525   : > { %1808 = vrot.lane.b32.xlu1 %v3071_v62, %s2070_s29  ;;  %1557 = vrot.lane.b32.xlu0 %v3071_v62, %s3277_s18 }
 0x52c   : > { %1810 = vrot.lane.b32.xlu2 %v3074_v42, %s2070_s29 }
 0x52d   : > { %1729 = vrot.lane.b32.xlu1 %v3074_v42, %s2062_s28  ;;  %1727 = vrot.lane.b32.xlu0 %v3071_v62, %s2062_s28 }
 0x534   : > { %1531 = vrot.lane.b32.xlu2 %v3074_v42, %s2073_s13 }
 0x535   : > { %1710 = vrot.lane.b32.xlu1 %v3071_v62, %s2071_s11  ;;  %1535 = vrot.lane.b32.xlu0 %v3071_v62, %s2073_s13  ;;  %s2007_s13 = sshll.u32 %s3344_s10, 6 }
 0x536   : > { %s332_s20 = scalar_lea.vmem %s3217_s9, %s2007_s13 }
 0x53c   : > { %1712 = vrot.lane.b32.xlu2 %v3074_v42, %s2071_s11 }
 0x56e   : > { %v1638_v45 = vpop.permute.xlu2 %1637 }
 0x576   : > { %v1624_v26 = vpop.permute.xlu2 %1623 }
 0x57e   : > { %v1555_v51 = vpop.permute.xlu2 %1554 }
 0x586   : > { %v1811_v25 = vpop.permute.xlu2 %1810 }
 0x587   : > { %v1621_v28 = vpop.permute.xlu1 %1620  ;;  %v1640_v18 = vpop.permute.xlu0 %1639 }
 0x588   : > { %v3117_v22 = vsel %vm3340_vm15, %v1638_v45, %v1640_v18  ;;  %v3120_v2 = vsel %vm3333_vm4, %v1640_v18, %v1638_v45  ;;  %v1625_v13 = vsel %vm1262_vm5, %v1624_v26, %v1621_v28  ;;  %v1628_v14 = vsel %vm1262_vm5, %v1621_v28, %v1624_v26  ;;  %vm3342_vm5 = vmmov %vm3338_vm0  ;;  %v1991_v45 = vld [vmem:[%s3209_s1 + $0x26] ss:$8 sm:$0x3]  ;;  %v1990_v26 = vld [vmem:[%s3209_s1 + $0x37] ss:$8 sm:$0x3] }
 0x589   : > { %v1652_v41 = vmul.f32 %v1648_v15, %v3117_v22  ;;  %v1653_v50 = vmul.f32 %v1649_v11, %v3120_v2  ;;  %v1635_v12 = vmul.f32 %v1631_v3, %v1628_v14  ;;  %v1636_v4 = vmul.f32 %v1632_v59, %v1625_v13 }
 0x58a   : > { %v1798_v60 = vmul.f32 %v1794_v32, %v3117_v22  ;;  %v1799_v53 = vmul.f32 %v1795_v24, %v3120_v2  ;;  %v1738_v15 = vperm.slane %v1991_v45, 0  ;;  %v1739_v11 = vperm.slane %v1991_v45, 1 }
 0x58b   : > { %1669 = vmatpush.msrb.mxu2 %v1652_v41  ;;  %1689 = vmatpush.msrb.mxu3 %v1653_v50  ;;  %v1721_v22 = vperm.slane %v1990_v26, 0  ;;  %v1722_v2 = vperm.slane %v1990_v26, 1  ;;  %v1989_v41 = vld [vmem:[%s3209_s1 + $0x6] ss:$8 sm:$0x3] }
 0x58d   : > { %1670 = vmatpush.msrb.mxu2 %v3071_v62  ;;  %1690 = vmatpush.msrb.mxu3 %v3074_v42 }
 0x58e   : > { %v1532_v36 = vpop.permute.xlu2 %1531 }
 0x58f   : > { %v1547_v17 = vpop.permute.xlu1 %1546  ;;  %1671 = vmatpush.msrb.mxu2 %v1635_v12  ;;  %1691 = vmatpush.msrb.mxu3 %v1636_v4  ;;  %v1544_v47 = vpop.permute.xlu0 %1543  ;;  %v1529_v4 = vld [vmem:[%s3216_s8] sm:$0xff] }
 0x590   : > { %v1548_v23 = vsel %vm769_vm2, %v1547_v17, %v1544_v47  ;;  %v1551_v40 = vsel %vm769_vm2, %v1544_v47, %v1547_v17  ;;  %vm3341_vm2 = vmmov %vm3338_vm0 }
 0x591   : > { %v1618_v39 = vmul.f32 %v1614_v20, %v1551_v40  ;;  %v1619_v58 = vmul.f32 %v1615_v0, %v1548_v23  ;;  %v1552_v46 = vmul.f32 %v1551_v40, %v2454_v27  ;;  %v1553_v52 = vmul.f32 %v1548_v23, %v2456_v63  ;;  %v1988_v23 = vld [vmem:[%s3216_s8 + $0x10] sm:$0xff] }
 0x592   : > { %v1704_v20 = vperm.slane %v1989_v41, 0  ;;  %v1705_v0 = vperm.slane %v1989_v41, 1 }
 0x593   : > { %1672 = vmatpush.msrb.mxu2 %v1618_v39  ;;  %1692 = vmatpush.msrb.mxu3 %v1619_v58 }
 0x594   : > { %1984 = vmatmul.msk.f32.vlgmr.msrb.gmra.mxu2 %vm750_vm3, %v1980_v61  ;;  %1985 = vmatmul.msk.f32.vlgmr.msrb.gmra.mxu3 %vm750_vm3, %v1980_v61 }
 0x596   : > { %v1713_v18 = vpop.permute.xlu2 %1712 }
 0x597   : > { %v1809_v43 = vpop.permute.xlu1 %1808  ;;  %v1558_v8 = vpop.permute.xlu0 %1557 }
 0x598   : > { %v1812_v57 = vsel %vm1332_vm12, %v1809_v43, %v1811_v25  ;;  %v1816_v38 = vsel %vm1332_vm12, %v1811_v25, %v1809_v43  ;;  %v3144_v21 = vsel %vm3341_vm2, %v1558_v8, %v1555_v51  ;;  %v3147_v49 = vsel %vm3342_vm5, %v1555_v51, %v1558_v8 }
 0x599   : > { %v1823_v54 = vmul.f32 %v1819_v10, %v1812_v57  ;;  %v1824_v7 = vmul.f32 %v1820_v34, %v1816_v38  ;;  %v1563_v44 = vmul.f32 %v3147_v49, %v2448_v55  ;;  %v1564_v37 = vmul.f32 %v3144_v21, %v2450_v5 }
 0x59a   : > { %v1802_v55 = vperm.slane %v1998_v29, 0  ;;  %v1803_v5 = vperm.slane %v1998_v29, 1 }
 0x59b   : > { %1581 = vmatpush.msrb.mxu0 %v1563_v44  ;;  %1601 = vmatpush.msrb.mxu1 %v1564_v37 }
 0x59c   : > { %1840 = vmatpush.msra.mxu2 %v1823_v54  ;;  %1860 = vmatpush.msra.mxu3 %v1824_v7 }
 0x59d   : > { %1582 = vmatpush.msrb.mxu0 %v1552_v46  ;;  %1602 = vmatpush.msrb.mxu1 %v1553_v52 }
 0x59f   : > { %v1730_v19 = vpop.permute.xlu1 %1729  ;;  %v1728_v9 = vpop.permute.xlu0 %1727 }
 0x5a0   : > { %v1731_v27 = vsel %vm655_vm13, %v1728_v9, %v1730_v19  ;;  %v1735_v63 = vsel %vm655_vm13, %v1730_v19, %v1728_v9 }
 0x5a1   : > { %v1806_v6 = vmul.f32 %v1802_v55, %v1731_v27  ;;  %v1807_v30 = vmul.f32 %v1803_v5, %v1735_v63  ;;  %v1742_v1 = vmul.f32 %v1738_v15, %v1731_v27  ;;  %v1743_v12 = vmul.f32 %v1739_v11, %v1735_v63 }
 0x5a3   : > { %1841 = vmatpush.msra.mxu2 %v1806_v6  ;;  %1861 = vmatpush.msra.mxu3 %v1807_v30 }
 0x5a5   : > { %1842 = vmatpush.msra.mxu2 %v1798_v60  ;;  %1862 = vmatpush.msra.mxu3 %v1799_v53 }
 0x5a7   : > { %v1711_v16 = vpop.permute.xlu1 %1710  ;;  %1843 = vmatpush.msra.mxu2 %v3071_v62  ;;  %1863 = vmatpush.msra.mxu3 %v3074_v42  ;;  %v1536_v28 = vpop.permute.xlu0 %1535 }
 0x5a8   : > { %v1537_v3 = vsel %vm1232_vm8, %v1536_v28, %v1532_v36  ;;  %v1540_v59 = vsel %vm1232_vm8, %v1532_v36, %v1536_v28  ;;  %2000 = vmatmul.msk.f32.vlgmr.msra.gmra.mxu2 %vm750_vm3, %v1996_v31  ;;  %v1714_v50 = vsel %vm1302_vm14, %v1711_v16, %v1713_v18  ;;  %v1718_v51 = vsel %vm1302_vm14, %v1713_v18, %v1711_v16 }
 0x5a9   : > { %v1541_v13 = vmul.f32 %v1540_v59, %v2998_v33  ;;  %v1542_v14 = vmul.f32 %v1537_v3, %v3000_v56  ;;  %2001 = vmatmul.msk.f32.vlgmr.msra.gmra.mxu3 %vm750_vm3, %v1996_v31  ;;  %v1725_v17 = vmul.f32 %v1721_v22, %v1714_v50  ;;  %v1726_v47 = vmul.f32 %v1722_v2, %v1718_v51 }
 0x5aa   : > { %v1708_v33 = vmul.f32 %v1704_v20, %v3147_v49  ;;  %v1709_v56 = vmul.f32 %v1705_v0, %v3144_v21 }
 0x5ab   : > { %1583 = vmatpush.msrb.mxu0 %v1541_v13  ;;  %1603 = vmatpush.msrb.mxu1 %v1542_v14 }
 0x5ac   : > { %1978 = vmatmul.msk.f32.vlgmr.msrb.gmra.mxu0 %vm750_vm3, %v1529_v4  ;;  %1979 = vmatmul.msk.f32.vlgmr.msrb.gmra.mxu1 %vm750_vm3, %v1529_v4 }
 0x5ad   : > { %1759 = vmatpush.msra.mxu0 %v1742_v1  ;;  %1779 = vmatpush.msra.mxu1 %v1743_v12 }
 0x5af   : > { %1760 = vmatpush.msra.mxu0 %v1725_v17  ;;  %1780 = vmatpush.msra.mxu1 %v1726_v47 }
 0x5b1   : > { %1761 = vmatpush.msra.mxu0 %v3071_v62  ;;  %1781 = vmatpush.msra.mxu1 %v3074_v42 }
 0x5b3   : > { %1762 = vmatpush.msra.mxu0 %v1708_v33  ;;  %1782 = vmatpush.msra.mxu1 %v1709_v56 }
 0x5b4   : > { %1992 = vmatmul.msk.f32.vlgmr.msra.gmra.mxu0 %vm750_vm3, %v1988_v23  ;;  %1993 = vmatmul.msk.f32.vlgmr.msra.gmra.mxu1 %vm750_vm3, %v1988_v23 }
 0x617   : > { %v1674_v40 = vpop.f32.mrf.mxu2  ;;  %v1694_v39 = vpop.f32.mrf.mxu3 }
 0x618   : > { %1986 = vst [vmem:[%s332_s20 + $0x10] sm:$0xff] %v1674_v40 }
 0x619   : > { %1987 = vst [vmem:[%s332_s20 + $0x18] sm:$0xff] %v1694_v39 }
 0x629   : > { %v1585_v62 = vpop.f32.mrf.mxu0  ;;  %v1605_v42 = vpop.f32.mrf.mxu1 }
 0x62a   : > { %1608 = vst [vmem:[%s332_s20] sm:$0xff] %v1585_v62 }
 0x62b   : > { %v1845_v58 = vpop.f32.mrf.mxu2  ;;  %1609 = vst [vmem:[%s332_s20 + $0x8] sm:$0xff] %v1605_v42 }
 0x62c   : > { %v1865_v61 = vpop.f32.mrf.mxu3  ;;  %2002 = vst [vmem:[%s332_s20 + $0x30] sm:$0xff] %v1845_v58 }
 0x62d   : > { %2003 = vst [vmem:[%s332_s20 + $0x38] sm:$0xff] %v1865_v61 }
 0x631   : > { %v1764_v48 = vpop.f32.mrf.mxu0  ;;  %v1784_v25 = vpop.f32.mrf.mxu1 }
 0x632   : > { %1994 = vst [vmem:[%s332_s20 + $0x20] sm:$0xff] %v1764_v48 }
 0x633   : > { %1995 = vst [vmem:[%s332_s20 + $0x28] sm:$0xff] %v1784_v25 }
 0x634 PF: > { %s19_s30 = sadd.s32 1, %s2047_s30  }
 0x635   : > { %p16_p4 = scmp.ge.s32.totalorder %s19_s30, 4  }
 0x637   :  { %18 = sbr.rel (!%p16_p4) target bundleno = 1 (0x1), region = 123 }

</bundles_post_ra>
